<compile_context>
chip_gen: v7x
topology: tpu7x:2x2x1
jax: 0.10.0
libtpu: 0.0.40
codegen_flags: <defaults>
</compile_context>

<pallas_src>
import functools
import math

import jax
import jax.numpy as jnp
from jax.experimental import pallas as pl
from jax.experimental.pallas import tpu as pltpu


_EPS = 1e-5  # torch nn.LayerNorm default


# ----------------------------- small helpers ---------------------------------

def _layernorm(x, gamma, beta, eps=_EPS):
    mu = jnp.mean(x, axis=-1, keepdims=True)
    var = jnp.mean(jnp.square(x - mu), axis=-1, keepdims=True)
    return (x - mu) * jax.lax.rsqrt(var + eps) * gamma + beta


def _vmem_budget_bytes():
    """Usable VMEM budget per generation (v5e/v6e: 128 MiB, v7x: 64 MiB phys)."""
    try:
        cap = int(pltpu.get_tpu_info().vmem_capacity_bytes)
    except Exception:
        cap = 64 * 1024 * 1024
    return max(16 * 1024 * 1024, int(cap * 0.6))


def _choose_hw_tile(hw, lq, cm, mf_itemsize, budget_bytes):
    """Largest 128-multiple divisor of hw whose double-buffered working set
    (feature tile in + f32 output tile out + mask-embed slab) fits the budget.
    Returns None when hw is not a multiple of 128 (caller uses fallback)."""
    if hw % 128 != 0:
        return None
    per_col = 2 * (cm * mf_itemsize + lq * 4)     # dbl-buffered mf tile + out tile
    fixed = 2 * lq * (cm + 1) * 4 + (2 << 20)     # me + bias (dbl-buf) + headroom
    avail = max(budget_bytes - fixed, 128 * per_col)
    max_tile = max(128, (avail // per_col) // 128 * 128)
    best = 128
    t = 128
    while t <= hw and t <= max_tile:
        if hw % t == 0:
            best = t
        t += 128
    return best


# ----------------------------- kernel bodies ----------------------------------

def _attn_ln(x, x_pos, kv, kv_pos, v_src,
             wq, wk, wv, bq, bk, bv, wo, bo, lnw, lnb, num_heads):
    """Post-norm MHA block: LayerNorm(x + Wo @ MHA(x+x_pos, kv+kv_pos, v_src) + bo)."""
    q_in = (x + x_pos).astype(jnp.bfloat16)
    k_in = (kv + kv_pos).astype(jnp.bfloat16)
    v_in = v_src.astype(jnp.bfloat16)

    C = x.shape[-1]
    dh = C // num_heads
    scale = 1.0 / math.sqrt(dh)

    # Single bf16 cast right after the bias add; 1/sqrt(dh) folded into q.
    q = ((jnp.dot(q_in, wq, preferred_element_type=jnp.float32) + bq) * scale
         ).astype(jnp.bfloat16)
    k = (jnp.dot(k_in, wk, preferred_element_type=jnp.float32) + bk
         ).astype(jnp.bfloat16)
    v = (jnp.dot(v_in, wv, preferred_element_type=jnp.float32) + bv
         ).astype(jnp.bfloat16)

    heads = []
    for h in range(num_heads):                    # static unroll, 2-D matmuls only
        sl = slice(h * dh, (h + 1) * dh)
        s = jax.lax.dot_general(q[:, sl], k[:, sl], (((1,), (1,)), ((), ())),
                                preferred_element_type=jnp.float32)   # (Lq, Lk)
        p = jnp.exp(s - jnp.max(s, axis=-1, keepdims=True))
        p = p * pl.reciprocal(jnp.sum(p, axis=-1, keepdims=True), approx=True)
        heads.append(jnp.dot(p.astype(jnp.bfloat16), v[:, sl],
                             preferred_element_type=jnp.float32))     # (Lq, dh)

    # Concat heads lane-wise -> one full-contraction out-projection (fills MXU).
    o = jnp.concatenate(heads, axis=-1).astype(jnp.bfloat16)          # (Lq, C)
    y = jnp.dot(o, wo, preferred_element_type=jnp.float32) + bo
    return _layernorm(x + y, lnw, lnb)


def _ffn_ln(x, w1, b1, w2, b2, lnw, lnb):
    h = jnp.dot(x.astype(jnp.bfloat16), w1, preferred_element_type=jnp.float32) + b1
    h = jnp.maximum(h, 0.0)
    y = jnp.dot(h.astype(jnp.bfloat16), w2, preferred_element_type=jnp.float32) + b2
    return _layernorm(x + y, lnw, lnb)


def _frame_transformer_kernel(
        fe_ref, qfeat_ref, qpos_ref, fpos_ref,
        cwq, cwk, cwv, cbq, cbk, cbv, cwo, cbo, clnw, clnb,
        swq, swk, swv, sbq, sbk, sbv, swo, sbo, slnw, slnb,
        fw1, fb1, fw2, fb2, flnw, flnb,
        pw_ref, pb_ref,
        dec_ref, state_ref, *, num_heads):
    """One (batch b, frame t, layer l) grid step of the full decoder stack."""
    t = pl.program_id(1)
    l = pl.program_id(2)
    n_l = pl.num_programs(2)

    @pl.when(jnp.logical_and(t == 0, l == 0))
    def _():
        state_ref[...] = qfeat_ref[...]           # query_feat seeds frame 0

    x = state_ref[...]                            # (Q, C) carried query state
    mem = fe_ref[...]                             # (Nf, C) frame memory
    qpos = qpos_ref[...]

    # cross-attention: q = x + qpos, k = mem + fpos, v = mem
    x = _attn_ln(x, qpos, mem, fpos_ref[...], mem,
                 cwq[...], cwk[...], cwv[...], cbq[...], cbk[...], cbv[...],
                 cwo[...], cbo[...], clnw[...], clnb[...], num_heads)
    # self-attention: q = k = x + qpos, v = x
    x = _attn_ln(x, qpos, x, qpos, x,
                 swq[...], swk[...], swv[...], sbq[...], sbk[...], sbv[...],
                 swo[...], sbo[...], slnw[...], slnb[...], num_heads)
    # FFN
    x = _ffn_ln(x, fw1[...], fb1[...], fw2[...], fb2[...], flnw[...], flnb[...])

    dec_ref[...] = x                              # (b, t, l) block of (B,T,L,Q,C)

    @pl.when(l == n_l - 1)                        # frame_proj seeds next frame
    def _():
        state_ref[...] = (jnp.dot(x.astype(jnp.bfloat16), pw_ref[...],
                                  preferred_element_type=jnp.float32)
                          + pb_ref[...])

    @pl.when(l != n_l - 1)
    def _():
        state_ref[...] = x


def _pred_head_kernel(x_ref, lnw_ref, lnb_ref, wc_ref, bc_ref,
                      w1_ref, b1_ref, w2_ref, b2_ref,
                      w3_ref, b3_ref, ws_ref, bs_ref,
                      logit_ref, me_ref, mb_ref):
    """decoder_norm + class head (lane-padded) + mask-embed MLP with the 1x1
    mask_feature_proj conv folded into the last layer (done at prepare time)."""
    y = _layernorm(x_ref[...], lnw_ref[...], lnb_ref[...])
    yb = y.astype(jnp.bfloat16)
    logit_ref[...] = (jnp.dot(yb, wc_ref[...], preferred_element_type=jnp.float32)
                      + bc_ref[...])
    h = jnp.dot(yb, w1_ref[...], preferred_element_type=jnp.float32) + b1_ref[...]
    h = jnp.maximum(h, 0.0)
    h = jnp.dot(h.astype(jnp.bfloat16), w2_ref[...],
                preferred_element_type=jnp.float32) + b2_ref[...]
    h = jnp.maximum(h, 0.0)
    me_ref[...] = (jnp.dot(h.astype(jnp.bfloat16), w3_ref[...],
                           preferred_element_type=jnp.float32) + b3_ref[...])
    # per-query scalar from the folded conv bias:  me @ conv_b
    mb_ref[...] = jnp.sum(h * ws_ref[...], axis=-1, keepdims=True) + bs_ref[...]


def _mask_kernel(me_ref, mb_ref, mf_ref, o_ref, *, direct_layout, L, Q):
    """mask logits for one (b, t, hw-tile): me' @ mf (native dtype) + bias."""
    me = me_ref[...].astype(jnp.bfloat16)                  # (L*Q, Cm)
    mf = mf_ref[...].astype(jnp.bfloat16)                  # (Cm, hw_tile)
    out = jnp.dot(me, mf, preferred_element_type=jnp.float32) + mb_ref[...]
    if direct_layout:
        o_ref[...] = out.reshape(L, Q, out.shape[-1])      # (L, Q, hw_tile)
    else:
        o_ref[...] = out                                   # (L*Q, HW) fallback


# ----------------------------- kernel wrappers --------------------------------

def transformer_stack(fe, params, num_heads):
    """fe: (B, T, Nf, C) -> decoder outputs (B, T, L, Q, C) in one pallas_call."""
    B, T, Nf, C = fe.shape
    Q = params['query_feat'].shape[0]
    cr, sa, ff = params['cross'], params['self_'], params['ffn']
    L = cr['wq'].shape[0]

    def const_spec(a):
        zeros = (0,) * a.ndim
        return pl.BlockSpec(a.shape, lambda b, t, l, _z=zeros: _z)

    def layer_spec(a):
        zeros = (0,) * (a.ndim - 1)
        return pl.BlockSpec((None,) + tuple(a.shape[1:]),
                            lambda b, t, l, _z=zeros: (l,) + _z)

    attn_keys = ('wq', 'wk', 'wv', 'bq', 'bk', 'bv', 'wo', 'bo', 'lnw', 'lnb')
    ffn_keys = ('w1', 'b1', 'w2', 'b2', 'lnw', 'lnb')

    args = ([fe, params['query_feat'], params['query_embed'], params['frame_pos']]
            + [cr[k] for k in attn_keys] + [sa[k] for k in attn_keys]
            + [ff[k] for k in ffn_keys]
            + [params['frame_proj_w'], params['frame_proj_b']])
    in_specs = (
        [pl.BlockSpec((None, None, Nf, C), lambda b, t, l: (b, t, 0, 0)),
         const_spec(params['query_feat']), const_spec(params['query_embed']),
         const_spec(params['frame_pos'])]
        + [layer_spec(cr[k]) for k in attn_keys]
        + [layer_spec(sa[k]) for k in attn_keys]
        + [layer_spec(ff[k]) for k in ffn_keys]
        + [const_spec(params['frame_proj_w']), const_spec(params['frame_proj_b'])])

    # TODO(synk): with production B=1 the single-step "parallel" axis leaves one
    # v7x TensorCore idle; splitting query rows / head groups needs a different
    # self-attention decomposition and is not done here.
    return pl.pallas_call(
        functools.partial(_frame_transformer_kernel, num_heads=num_heads),
        out_shape=jax.ShapeDtypeStruct((B, T, L, Q, C), jnp.float32),
        grid=(B, T, L),
        in_specs=in_specs,
        out_specs=pl.BlockSpec((None, None, None, Q, C),
                               lambda b, t, l: (b, t, l, 0, 0)),
        scratch_shapes=[pltpu.VMEM((Q, C), jnp.float32)],
        compiler_params=pltpu.CompilerParams(
            dimension_semantics=("parallel", "arbitrary", "arbitrary"),
            vmem_limit_bytes=_vmem_budget_bytes()),
    )(*args)


def pred_head(dec_flat, params):
    """dec_flat: (B*T, L*Q, C) -> (logits_padded, mask_embed', conv-bias term)."""
    G, R, C = dec_flat.shape
    NCp = params['class_w'].shape[-1]
    Cm = params['mask_w3'].shape[-1]

    def const_spec(a):
        zeros = (0,) * a.ndim
        return pl.BlockSpec(a.shape, lambda g, _z=zeros: _z)

    wkeys = ('dec_norm_w', 'dec_norm_b', 'class_w', 'class_b',
             'mlp_w1', 'mlp_b1', 'mlp_w2', 'mlp_b2',
             'mask_w3', 'mask_b3', 'mask_ws', 'mask_bs')
    return pl.pallas_call(
        _pred_head_kernel,
        out_shape=(jax.ShapeDtypeStruct((G, R, NCp), jnp.float32),
                   jax.ShapeDtypeStruct((G, R, Cm), jnp.float32),
                   jax.ShapeDtypeStruct((G, R, 1), jnp.float32)),
        grid=(G,),
        in_specs=[pl.BlockSpec((None, R, C), lambda g: (g, 0, 0))]
                 + [const_spec(params[k]) for k in wkeys],
        out_specs=(pl.BlockSpec((None, R, NCp), lambda g: (g, 0, 0)),
                   pl.BlockSpec((None, R, Cm), lambda g: (g, 0, 0)),
                   pl.BlockSpec((None, R, 1), lambda g: (g, 0, 0))),
        compiler_params=pltpu.CompilerParams(dimension_semantics=("parallel",)),
    )(dec_flat, *[params[k] for k in wkeys])


def mask_logits(me_bt, mb_bt, mask_features, L, Q):
    """me_bt: (B,T,L*Q,Cm) projected embeds, mb_bt: (B,T,L*Q,1) conv-bias term,
    mask_features: (B,T,Cm,H,W) in native dtype.  Returns (L,B,Q,T,H,W) f32."""
    B, T, LQ, Cm = me_bt.shape
    H, W = mask_features.shape[-2:]
    HW = H * W
    mf = mask_features.reshape(B, T, Cm, HW)          # no f32 upcast of features
    budget = _vmem_budget_bytes()
    hw_tile = _choose_hw_tile(HW, LQ, Cm, mf.dtype.itemsize, budget)

    if hw_tile is not None:
        n_hw = HW // hw_tile
        out = pl.pallas_call(
            functools.partial(_mask_kernel, direct_layout=True, L=L, Q=Q),
            out_shape=jax.ShapeDtypeStruct((L, B, Q, T * HW), jnp.float32),
            grid=(B, T, n_hw),
            in_specs=[
                pl.BlockSpec((None, None, LQ, Cm), lambda b, t, s: (b, t, 0, 0)),
                pl.BlockSpec((None, None, LQ, 1), lambda b, t, s: (b, t, 0, 0)),
                pl.BlockSpec((None, None, Cm, hw_tile),
                             lambda b, t, s: (b, t, 0, s)),
            ],
            out_specs=pl.BlockSpec((L, None, Q, hw_tile),
                                   lambda b, t, s: (0, b, 0, t * n_hw + s)),
            compiler_params=pltpu.CompilerParams(
                dimension_semantics=("parallel", "parallel", "parallel"),
                vmem_limit_bytes=budget),
        )(me_bt, mb_bt, mf)
        return out.reshape(L, B, Q, T, H, W)

    # TODO(synk): pad H*W to a multiple of 128 so the lane-dense direct-layout
    # path (no XLA transpose of the big mask tensor) also covers odd resolutions.
    out = pl.pallas_call(
        functools.partial(_mask_kernel, direct_layout=False, L=L, Q=Q),
        out_shape=jax.ShapeDtypeStruct((B, T, LQ, HW), jnp.float32),
        grid=(B, T),
        in_specs=[
            pl.BlockSpec((None, None, LQ, Cm), lambda b, t: (b, t, 0, 0)),
            pl.BlockSpec((None, None, LQ, 1), lambda b, t: (b, t, 0, 0)),
            pl.BlockSpec((None, None, Cm, HW), lambda b, t: (b, t, 0, 0)),
        ],
        out_specs=pl.BlockSpec((None, None, LQ, HW), lambda b, t: (b, t, 0, 0)),
        compiler_params=pltpu.CompilerParams(
            dimension_semantics=("parallel", "parallel"),
            vmem_limit_bytes=budget),
    )(me_bt, mb_bt, mf)
    return out.reshape(B, T, L, Q, H, W).transpose(2, 0, 3, 1, 4, 5)


# ----------------------------- parameters -------------------------------------

def init_params(key, *, num_q, C, F, L, mask_dim, class_num, frame_pos_n=100):
    """Random params in torch layouts (Linear weight = (out, in), etc.)."""
    keys = iter(jax.random.split(key, 1024))

    def nrm(shape, scale=0.02):
        return (scale * jax.random.normal(next(keys), shape)).astype(jnp.float32)

    def zeros(shape):
        return jnp.zeros(shape, jnp.float32)

    def ones(shape):
        return jnp.ones(shape, jnp.float32)

    def attn_p():
        return {'in_w': nrm((3 * C, C)), 'in_b': zeros((3 * C,)),
                'out_w': nrm((C, C)), 'out_b': zeros((C,)),
                'norm_w': ones((C,)), 'norm_b': zeros((C,))}

    return {
        'query_feat': nrm((num_q, C), 1.0),
        'query_embed': nrm((num_q, C), 1.0),
        'frame_pos': nrm((frame_pos_n, C), 1.0),
        'dec_norm_w': ones((C,)), 'dec_norm_b': zeros((C,)),
        'class_w': nrm((class_num + 1, C)), 'class_b': zeros((class_num + 1,)),
        'mlp': [{'w': nrm((C, C)), 'b': zeros((C,))},
                {'w': nrm((C, C)), 'b': zeros((C,))},
                {'w': nrm((mask_dim, C)), 'b': zeros((mask_dim,))}],
        'mask_proj_w': nrm((mask_dim, mask_dim)),   # torch conv (Cm,Cm,1,1) squeezed
        'mask_proj_b': zeros((mask_dim,)),
        'frame_proj_w': nrm((C, C)), 'frame_proj_b': zeros((C,)),
        'layers': [{'cross': attn_p(), 'self': attn_p(),
                    'ffn': {'w1': nrm((F, C)), 'b1': zeros((F,)),
                            'w2': nrm((C, F)), 'b2': zeros((C,)),
                            'norm_w': ones((C,)), 'norm_b': zeros((C,))}}
                   for _ in range(L)],
    }


def prepare_params(p, num_classes_p1):
    """Torch layout -> kernel layout.  Per-layer weights are stacked along a
    leading L axis (indexed by the grid's layer axis), matmul weights are
    transposed to (in, out) and cast to bf16 once, biases / LN params stay f32
    (1, N) rows.  The 1x1 mask_feature_proj conv is folded into the final
    mask-embed MLP layer; the class head is zero-padded to 128 output lanes."""
    bf = lambda w: w.astype(jnp.bfloat16)
    row = lambda v: v.reshape(1, -1).astype(jnp.float32)
    C = p['query_feat'].shape[1]

    def stack_attn(key):
        blocks = [layer[key] for layer in p['layers']]
        return {
            'wq': bf(jnp.stack([a['in_w'][:C].T for a in blocks])),
            'wk': bf(jnp.stack([a['in_w'][C:2 * C].T for a in blocks])),
            'wv': bf(jnp.stack([a['in_w'][2 * C:].T for a in blocks])),
            'bq': jnp.stack([row(a['in_b'][:C]) for a in blocks]),
            'bk': jnp.stack([row(a['in_b'][C:2 * C]) for a in blocks]),
            'bv': jnp.stack([row(a['in_b'][2 * C:]) for a in blocks]),
            'wo': bf(jnp.stack([a['out_w'].T for a in blocks])),
            'bo': jnp.stack([row(a['out_b']) for a in blocks]),
            'lnw': jnp.stack([row(a['norm_w']) for a in blocks]),
            'lnb': jnp.stack([row(a['norm_b']) for a in blocks]),
        }

    ffn_blocks = [layer['ffn'] for layer in p['layers']]
    ffn = {
        'w1': bf(jnp.stack([f['w1'].T for f in ffn_blocks])),
        'b1': jnp.stack([row(f['b1']) for f in ffn_blocks]),
        'w2': bf(jnp.stack([f['w2'].T for f in ffn_blocks])),
        'b2': jnp.stack([row(f['b2']) for f in ffn_blocks]),
        'lnw': jnp.stack([row(f['norm_w']) for f in ffn_blocks]),
        'lnb': jnp.stack([row(f['norm_b']) for f in ffn_blocks]),
    }

    # class head padded to a lane-dense multiple of 128 (sliced outside kernel)
    nc_pad = max(128, ((num_classes_p1 + 127) // 128) * 128)
    class_w = jnp.zeros((C, nc_pad), jnp.float32).at[:, :num_classes_p1].set(
        p['class_w'].T)
    class_b = jnp.zeros((1, nc_pad), jnp.float32).at[:, :num_classes_p1].set(
        p['class_b'])

    # fold mask_feature_proj (1x1 conv) into the final mask-embed MLP layer:
    #   mask[q,p] = (me @ conv_w) . mf[:,p] + me @ conv_b
    w3t = p['mlp'][2]['w'].T          # (C, Cm)
    b3 = p['mlp'][2]['b']             # (Cm,)
    cw = p['mask_proj_w']             # (Cm_out, Cm_in)
    cb = p['mask_proj_b']             # (Cm_out,)

    return {
        'query_feat': p['query_feat'].astype(jnp.float32),
        'query_embed': p['query_embed'].astype(jnp.float32),
        'frame_pos': p['frame_pos'].astype(jnp.float32),
        'cross': stack_attn('cross'),
        'self_': stack_attn('self'),
        'ffn': ffn,
        'frame_proj_w': bf(p['frame_proj_w'].T),
        'frame_proj_b': row(p['frame_proj_b']),
        'dec_norm_w': row(p['dec_norm_w']), 'dec_norm_b': row(p['dec_norm_b']),
        'class_w': bf(class_w), 'class_b': class_b,
        'mlp_w1': bf(p['mlp'][0]['w'].T), 'mlp_b1': row(p['mlp'][0]['b']),
        'mlp_w2': bf(p['mlp'][1]['w'].T), 'mlp_b2': row(p['mlp'][1]['b']),
        'mask_w3': bf(w3t @ cw), 'mask_b3': row(b3 @ cw),
        'mask_ws': row(w3t @ cb),
        'mask_bs': jnp.reshape(jnp.dot(b3, cb), (1, 1)).astype(jnp.float32),
    }


# ----------------------------- forward ----------------------------------------

def query_tracker_forward(params, frame_embeds, mask_features, *,
                          num_heads, num_layers, num_classes):
    """frame_embeds: (B, C, T, Nf);  mask_features: (B, T, Cm, H, W)."""
    B, C, T, Nf = frame_embeds.shape
    _, _, Cm, H, W = mask_features.shape
    Q = params['query_feat'].shape[0]
    L = num_layers
    assert params['frame_pos'].shape[0] == Nf, (
        "per-frame memory length must equal frame_pos_embed rows (100)")
    assert C % num_heads == 0

    fe = jnp.transpose(frame_embeds, (0, 2, 3, 1)).astype(jnp.float32)  # (B,T,Nf,C)

    # full decoder stack: one pallas_call, output already in pred-head layout
    dec = transformer_stack(fe, params, num_heads)             # (B, T, L, Q, C)

    logits, me, mbias = pred_head(dec.reshape(B * T, L * Q, C), params)

    NC = num_classes
    outputs_class = (logits[..., :NC].reshape(B, T, L, Q, NC)
                     .transpose(2, 0, 3, 1, 4))                # (L, B, Q, T, NC)

    outputs_mask = mask_logits(me.reshape(B, T, L * Q, Cm),
                               mbias.reshape(B, T, L * Q, 1),
                               mask_features, L, Q)            # (L, B, Q, T, H, W)

    pred_embds = jnp.transpose(dec[:, :, L - 1], (0, 3, 1, 2))  # (B, C, T, Q)

    return {
        'pred_logits': outputs_class[-1],
        'pred_masks': outputs_mask[-1],
        'aux_outputs': [{'pred_logits': a, 'pred_masks': b}
                        for a, b in zip(outputs_class[:-1], outputs_mask[:-1])],
        'pred_embds': pred_embds,
    }


# ----------------------------------- main --------------------------------------

if __name__ == "__main__":
    # small config consistent with the module's constructor
    B, C, T = 2, 32, 2
    NUM_Q, HEADS, LAYERS = 8, 4, 2
    FFN_DIM, MASK_DIM, CLASS_NUM = 64, 32, 5
    # nn.Embedding(100, C) is hardcoded; the per-frame memory length must be 100
    # for the positional add to broadcast (as in the torch module).
    FRAME_POS_N = 100
    H = W = 16

    key = jax.random.PRNGKey(0)
    kp, kf, km = jax.random.split(key, 3)
    torch_params = init_params(kp, num_q=NUM_Q, C=C, F=FFN_DIM, L=LAYERS,
                               mask_dim=MASK_DIM, class_num=CLASS_NUM,
                               frame_pos_n=FRAME_POS_N)
    params = prepare_params(torch_params, CLASS_NUM + 1)

    frame_embeds = jax.random.normal(kf, (B, C, T, FRAME_POS_N), jnp.float32)
    mask_features = jax.random.normal(km, (B, T, MASK_DIM, H, W), jnp.float32)

    fwd = jax.jit(functools.partial(query_tracker_forward,
                                    num_heads=HEADS, num_layers=LAYERS,
                                    num_classes=CLASS_NUM + 1))
    out = fwd(params, frame_embeds, mask_features)

    jax.block_until_ready(out['pred_logits'])
    jax.block_until_ready(out['pred_masks'])
    jax.block_until_ready(out['pred_embds'])
    for aux in out['aux_outputs']:
        jax.block_until_ready(aux['pred_logits'])
        jax.block_until_ready(aux['pred_masks'])

    assert out['pred_logits'].shape == (B, NUM_Q, T, CLASS_NUM + 1)
    assert out['pred_masks'].shape == (B, NUM_Q, T, H, W)
    assert out['pred_embds'].shape == (B, C, T, NUM_Q)
    assert len(out['aux_outputs']) == LAYERS - 1
    assert bool(jnp.all(jnp.isfinite(out['pred_logits'])))
    assert bool(jnp.all(jnp.isfinite(out['pred_masks'])))

    print("KERNEL_OK")
</pallas_src>

<mosaic_0001>
module attributes {stable_mosaic.version = 11 : i64} {
  func.func @_frame_transformer_kernel(%arg0: i32, %arg1: i32, %arg2: i32, %arg3: memref<1x1x100x32xf32, #tpu.memory_space<vmem>>, %arg4: memref<8x32xf32, #tpu.memory_space<vmem>>, %arg5: memref<8x32xf32, #tpu.memory_space<vmem>>, %arg6: memref<100x32xf32, #tpu.memory_space<vmem>>, %arg7: memref<1x32x32xbf16, #tpu.memory_space<vmem>>, %arg8: memref<1x32x32xbf16, #tpu.memory_space<vmem>>, %arg9: memref<1x32x32xbf16, #tpu.memory_space<vmem>>, %arg10: memref<1x1x32xf32, #tpu.memory_space<vmem>>, %arg11: memref<1x1x32xf32, #tpu.memory_space<vmem>>, %arg12: memref<1x1x32xf32, #tpu.memory_space<vmem>>, %arg13: memref<1x32x32xbf16, #tpu.memory_space<vmem>>, %arg14: memref<1x1x32xf32, #tpu.memory_space<vmem>>, %arg15: memref<1x1x32xf32, #tpu.memory_space<vmem>>, %arg16: memref<1x1x32xf32, #tpu.memory_space<vmem>>, %arg17: memref<1x32x32xbf16, #tpu.memory_space<vmem>>, %arg18: memref<1x32x32xbf16, #tpu.memory_space<vmem>>, %arg19: memref<1x32x32xbf16, #tpu.memory_space<vmem>>, %arg20: memref<1x1x32xf32, #tpu.memory_space<vmem>>, %arg21: memref<1x1x32xf32, #tpu.memory_space<vmem>>, %arg22: memref<1x1x32xf32, #tpu.memory_space<vmem>>, %arg23: memref<1x32x32xbf16, #tpu.memory_space<vmem>>, %arg24: memref<1x1x32xf32, #tpu.memory_space<vmem>>, %arg25: memref<1x1x32xf32, #tpu.memory_space<vmem>>, %arg26: memref<1x1x32xf32, #tpu.memory_space<vmem>>, %arg27: memref<1x32x64xbf16, #tpu.memory_space<vmem>>, %arg28: memref<1x1x64xf32, #tpu.memory_space<vmem>>, %arg29: memref<1x64x32xbf16, #tpu.memory_space<vmem>>, %arg30: memref<1x1x32xf32, #tpu.memory_space<vmem>>, %arg31: memref<1x1x32xf32, #tpu.memory_space<vmem>>, %arg32: memref<1x1x32xf32, #tpu.memory_space<vmem>>, %arg33: memref<32x32xbf16, #tpu.memory_space<vmem>>, %arg34: memref<1x32xf32, #tpu.memory_space<vmem>>, %arg35: memref<1x1x1x8x32xf32, #tpu.memory_space<vmem>>, %arg36: memref<8x32xf32, #tpu.memory_space<vmem>>) attributes {dimension_semantics = [#tpu.dimension_semantics<parallel>, #tpu.dimension_semantics<arbitrary>, #tpu.dimension_semantics<arbitrary>], iteration_bounds = array<i64: 2, 2, 2>, scalar_prefetch = 0 : i64, scratch_operands = 1 : i64, tpu.core_type = #tpu.core_type<tc>, window_params = [{transform_indices = @transform_0, window_bounds = array<i64: 1, 1, 100, 32>}, {pipeline_mode = #tpu.pipeline_mode<synchronous>, transform_indices = @transform_1, window_bounds = array<i64: 8, 32>}, {pipeline_mode = #tpu.pipeline_mode<synchronous>, transform_indices = @transform_2, window_bounds = array<i64: 8, 32>}, {pipeline_mode = #tpu.pipeline_mode<synchronous>, transform_indices = @transform_3, window_bounds = array<i64: 100, 32>}, {transform_indices = @transform_4, window_bounds = array<i64: 1, 32, 32>}, {transform_indices = @transform_5, window_bounds = array<i64: 1, 32, 32>}, {transform_indices = @transform_6, window_bounds = array<i64: 1, 32, 32>}, {transform_indices = @transform_7, window_bounds = array<i64: 1, 1, 32>}, {transform_indices = @transform_8, window_bounds = array<i64: 1, 1, 32>}, {transform_indices = @transform_9, window_bounds = array<i64: 1, 1, 32>}, {transform_indices = @transform_10, window_bounds = array<i64: 1, 32, 32>}, {transform_indices = @transform_11, window_bounds = array<i64: 1, 1, 32>}, {transform_indices = @transform_12, window_bounds = array<i64: 1, 1, 32>}, {transform_indices = @transform_13, window_bounds = array<i64: 1, 1, 32>}, {transform_indices = @transform_14, window_bounds = array<i64: 1, 32, 32>}, {transform_indices = @transform_15, window_bounds = array<i64: 1, 32, 32>}, {transform_indices = @transform_16, window_bounds = array<i64: 1, 32, 32>}, {transform_indices = @transform_17, window_bounds = array<i64: 1, 1, 32>}, {transform_indices = @transform_18, window_bounds = array<i64: 1, 1, 32>}, {transform_indices = @transform_19, window_bounds = array<i64: 1, 1, 32>}, {transform_indices = @transform_20, window_bounds = array<i64: 1, 32, 32>}, {transform_indices = @transform_21, window_bounds = array<i64: 1, 1, 32>}, {transform_indices = @transform_22, window_bounds = array<i64: 1, 1, 32>}, {transform_indices = @transform_23, window_bounds = array<i64: 1, 1, 32>}, {transform_indices = @transform_24, window_bounds = array<i64: 1, 32, 64>}, {transform_indices = @transform_25, window_bounds = array<i64: 1, 1, 64>}, {transform_indices = @transform_26, window_bounds = array<i64: 1, 64, 32>}, {transform_indices = @transform_27, window_bounds = array<i64: 1, 1, 32>}, {transform_indices = @transform_28, window_bounds = array<i64: 1, 1, 32>}, {transform_indices = @transform_29, window_bounds = array<i64: 1, 1, 32>}, {pipeline_mode = #tpu.pipeline_mode<synchronous>, transform_indices = @transform_30, window_bounds = array<i64: 32, 32>}, {pipeline_mode = #tpu.pipeline_mode<synchronous>, transform_indices = @transform_31, window_bounds = array<i64: 1, 32>}, {transform_indices = @transform_32, window_bounds = array<i64: 1, 1, 1, 8, 32>}]} {
    %c0_i32 = arith.constant 0 : i32
    %0 = arith.cmpi eq, %arg1, %c0_i32 : i32
    %c0_i32_0 = arith.constant 0 : i32
    %1 = arith.cmpi eq, %arg2, %c0_i32_0 : i32
    %2 = arith.andi %0, %1 : i1
    %3 = arith.extui %2 : i1 to i32
    %c0_i32_1 = arith.constant 0 : i32
    %4 = arith.cmpi ne, %3, %c0_i32_1 : i32
    scf.if %4 {
      %c0_156 = arith.constant 0 : index
      %c0_157 = arith.constant 0 : index
      %326 = vector.load %arg4[%c0_156, %c0_157] : memref<8x32xf32, #tpu.memory_space<vmem>>, vector<8x32xf32>
      %c0_158 = arith.constant 0 : index
      %c0_159 = arith.constant 0 : index
      %327 = vector.load %arg36[%c0_158, %c0_159] : memref<8x32xf32, #tpu.memory_space<vmem>>, vector<8x32xf32>
      tpu.vector_store %arg36[%c0_158, %c0_159], %326 {strides = array<i32>} : memref<8x32xf32, #tpu.memory_space<vmem>>, vector<8x32xf32>,
    } else {
    }
    %c0 = arith.constant 0 : index
    %c0_2 = arith.constant 0 : index
    %5 = vector.load %arg36[%c0, %c0_2] : memref<8x32xf32, #tpu.memory_space<vmem>>, vector<8x32xf32>
    %c0_3 = arith.constant 0 : index
    %c0_4 = arith.constant 0 : index
    %c0_5 = arith.constant 0 : index
    %c0_6 = arith.constant 0 : index
    %6 = vector.load %arg3[%c0_3, %c0_4, %c0_5, %c0_6] : memref<1x1x100x32xf32, #tpu.memory_space<vmem>>, vector<1x1x100x32xf32>
    %7 = vector.shape_cast %6 : vector<1x1x100x32xf32> to vector<100x32xf32>
    %c0_7 = arith.constant 0 : index
    %c0_8 = arith.constant 0 : index
    %8 = vector.load %arg5[%c0_7, %c0_8] : memref<8x32xf32, #tpu.memory_space<vmem>>, vector<8x32xf32>
    %c0_9 = arith.constant 0 : index
    %c0_10 = arith.constant 0 : index
    %9 = vector.load %arg6[%c0_9, %c0_10] : memref<100x32xf32, #tpu.memory_space<vmem>>, vector<100x32xf32>
    %c0_11 = arith.constant 0 : index
    %c0_12 = arith.constant 0 : index
    %c0_13 = arith.constant 0 : index
    %10 = vector.load %arg7[%c0_11, %c0_12, %c0_13] : memref<1x32x32xbf16, #tpu.memory_space<vmem>>, vector<1x32x32xbf16>
    %11 = vector.shape_cast %10 : vector<1x32x32xbf16> to vector<32x32xbf16>
    %c0_14 = arith.constant 0 : index
    %c0_15 = arith.constant 0 : index
    %c0_16 = arith.constant 0 : index
    %12 = vector.load %arg8[%c0_14, %c0_15, %c0_16] : memref<1x32x32xbf16, #tpu.memory_space<vmem>>, vector<1x32x32xbf16>
    %13 = vector.shape_cast %12 : vector<1x32x32xbf16> to vector<32x32xbf16>
    %c0_17 = arith.constant 0 : index
    %c0_18 = arith.constant 0 : index
    %c0_19 = arith.constant 0 : index
    %14 = vector.load %arg9[%c0_17, %c0_18, %c0_19] : memref<1x32x32xbf16, #tpu.memory_space<vmem>>, vector<1x32x32xbf16>
    %15 = vector.shape_cast %14 : vector<1x32x32xbf16> to vector<32x32xbf16>
    %c0_20 = arith.constant 0 : index
    %c0_21 = arith.constant 0 : index
    %c0_22 = arith.constant 0 : index
    %16 = vector.load %arg10[%c0_20, %c0_21, %c0_22] : memref<1x1x32xf32, #tpu.memory_space<vmem>>, vector<1x1x32xf32>
    %17 = vector.shape_cast %16 : vector<1x1x32xf32> to vector<1x32xf32>
    %c0_23 = arith.constant 0 : index
    %c0_24 = arith.constant 0 : index
    %c0_25 = arith.constant 0 : index
    %18 = vector.load %arg11[%c0_23, %c0_24, %c0_25] : memref<1x1x32xf32, #tpu.memory_space<vmem>>, vector<1x1x32xf32>
    %19 = vector.shape_cast %18 : vector<1x1x32xf32> to vector<1x32xf32>
    %c0_26 = arith.constant 0 : index
    %c0_27 = arith.constant 0 : index
    %c0_28 = arith.constant 0 : index
    %20 = vector.load %arg12[%c0_26, %c0_27, %c0_28] : memref<1x1x32xf32, #tpu.memory_space<vmem>>, vector<1x1x32xf32>
    %21 = vector.shape_cast %20 : vector<1x1x32xf32> to vector<1x32xf32>
    %c0_29 = arith.constant 0 : index
    %c0_30 = arith.constant 0 : index
    %c0_31 = arith.constant 0 : index
    %22 = vector.load %arg13[%c0_29, %c0_30, %c0_31] : memref<1x32x32xbf16, #tpu.memory_space<vmem>>, vector<1x32x32xbf16>
    %23 = vector.shape_cast %22 : vector<1x32x32xbf16> to vector<32x32xbf16>
    %c0_32 = arith.constant 0 : index
    %c0_33 = arith.constant 0 : index
    %c0_34 = arith.constant 0 : index
    %24 = vector.load %arg14[%c0_32, %c0_33, %c0_34] : memref<1x1x32xf32, #tpu.memory_space<vmem>>, vector<1x1x32xf32>
    %25 = vector.shape_cast %24 : vector<1x1x32xf32> to vector<1x32xf32>
    %c0_35 = arith.constant 0 : index
    %c0_36 = arith.constant 0 : index
    %c0_37 = arith.constant 0 : index
    %26 = vector.load %arg15[%c0_35, %c0_36, %c0_37] : memref<1x1x32xf32, #tpu.memory_space<vmem>>, vector<1x1x32xf32>
    %27 = vector.shape_cast %26 : vector<1x1x32xf32> to vector<1x32xf32>
    %c0_38 = arith.constant 0 : index
    %c0_39 = arith.constant 0 : index
    %c0_40 = arith.constant 0 : index
    %28 = vector.load %arg16[%c0_38, %c0_39, %c0_40] : memref<1x1x32xf32, #tpu.memory_space<vmem>>, vector<1x1x32xf32>
    %29 = vector.shape_cast %28 : vector<1x1x32xf32> to vector<1x32xf32>
    %30 = arith.addf %5, %8 : vector<8x32xf32>
    %31 = arith.truncf %30 : vector<8x32xf32> to vector<8x32xbf16>
    %32 = arith.addf %7, %9 : vector<100x32xf32>
    %33 = arith.truncf %32 : vector<100x32xf32> to vector<100x32xbf16>
    %34 = arith.truncf %7 : vector<100x32xf32> to vector<100x32xbf16>
    %cst = arith.constant dense<0.000000e+00> : vector<8x32xf32>
    %35 = tpu.matmul %31, %11, %cst {dimension_numbers = #tpu.dot_dimension_numbers<[1], [0], [0], [1], [0, 0, 1, 1], [], []>} : vector<8x32xbf16>, vector<32x32xbf16>, vector<8x32xf32> -> vector<8x32xf32>
    %36 = vector.broadcast %17 : vector<1x32xf32> to vector<8x32xf32>
    %37 = arith.addf %35, %36 : vector<8x32xf32>
    %cst_41 = arith.constant 0.353553385 : f32
    %38 = vector.broadcast %cst_41 : f32 to vector<8x32xf32>
    %39 = arith.mulf %37, %38 : vector<8x32xf32>
    %40 = arith.truncf %39 : vector<8x32xf32> to vector<8x32xbf16>
    %cst_42 = arith.constant dense<0.000000e+00> : vector<100x32xf32>
    %41 = tpu.matmul %33, %13, %cst_42 {dimension_numbers = #tpu.dot_dimension_numbers<[1], [0], [0], [1], [0, 0, 1, 1], [], []>} : vector<100x32xbf16>, vector<32x32xbf16>, vector<100x32xf32> -> vector<100x32xf32>
    %42 = vector.broadcast %19 : vector<1x32xf32> to vector<100x32xf32>
    %43 = arith.addf %41, %42 : vector<100x32xf32>
    %44 = arith.truncf %43 : vector<100x32xf32> to vector<100x32xbf16>
    %cst_43 = arith.constant dense<0.000000e+00> : vector<100x32xf32>
    %45 = tpu.matmul %34, %15, %cst_43 {dimension_numbers = #tpu.dot_dimension_numbers<[1], [0], [0], [1], [0, 0, 1, 1], [], []>} : vector<100x32xbf16>, vector<32x32xbf16>, vector<100x32xf32> -> vector<100x32xf32>
    %46 = vector.broadcast %21 : vector<1x32xf32> to vector<100x32xf32>
    %47 = arith.addf %45, %46 : vector<100x32xf32>
    %48 = arith.truncf %47 : vector<100x32xf32> to vector<100x32xbf16>
    %49 = vector.extract_strided_slice %40 {offsets = [0, 0], sizes = [8, 8], strides = [1, 1]} : vector<8x32xbf16> to vector<8x8xbf16>
    %50 = vector.extract_strided_slice %44 {offsets = [0, 0], sizes = [100, 8], strides = [1, 1]} : vector<100x32xbf16> to vector<100x8xbf16>
    %cst_44 = arith.constant dense<0.000000e+00> : vector<8x100xf32>
    %51 = tpu.matmul %49, %50, %cst_44 {dimension_numbers = #tpu.dot_dimension_numbers<[1], [1], [0], [0], [0, 0, 1, 0], [], []>} : vector<8x8xbf16>, vector<100x8xbf16>, vector<8x100xf32> -> vector<8x100xf32>
    %cst_45 = arith.constant dense<0xFF800000> : vector<8xf32>
    %52 = vector.multi_reduction <maximumf>, %51, %cst_45 [1] : vector<8x100xf32> to vector<8xf32>
    %53 = vector.shape_cast %52 : vector<8xf32> to vector<8x1xf32>
    %54 = vector.broadcast %53 : vector<8x1xf32> to vector<8x100xf32>
    %55 = arith.subf %51, %54 : vector<8x100xf32>
    %56 = math.exp %55 : vector<8x100xf32>
    %cst_46 = arith.constant dense<0.000000e+00> : vector<8xf32>
    %57 = vector.multi_reduction <add>, %56, %cst_46 [1] : vector<8x100xf32> to vector<8xf32>
    %58 = vector.shape_cast %57 : vector<8xf32> to vector<8x1xf32>
    %59 = tpu.reciprocal %58 {approx = true} : vector<8x1xf32> -> vector<8x1xf32>
    %60 = vector.broadcast %59 : vector<8x1xf32> to vector<8x100xf32>
    %61 = arith.mulf %56, %60 : vector<8x100xf32>
    %62 = arith.truncf %61 : vector<8x100xf32> to vector<8x100xbf16>
    %63 = vector.extract_strided_slice %48 {offsets = [0, 0], sizes = [100, 8], strides = [1, 1]} : vector<100x32xbf16> to vector<100x8xbf16>
    %cst_47 = arith.constant dense<0.000000e+00> : vector<8x8xf32>
    %64 = tpu.matmul %62, %63, %cst_47 {dimension_numbers = #tpu.dot_dimension_numbers<[1], [0], [0], [1], [0, 0, 1, 1], [], []>} : vector<8x100xbf16>, vector<100x8xbf16>, vector<8x8xf32> -> vector<8x8xf32>
    %65 = vector.extract_strided_slice %40 {offsets = [0, 8], sizes = [8, 8], strides = [1, 1]} : vector<8x32xbf16> to vector<8x8xbf16>
    %66 = vector.extract_strided_slice %44 {offsets = [0, 8], sizes = [100, 8], strides = [1, 1]} : vector<100x32xbf16> to vector<100x8xbf16>
    %cst_48 = arith.constant dense<0.000000e+00> : vector<8x100xf32>
    %67 = tpu.matmul %65, %66, %cst_48 {dimension_numbers = #tpu.dot_dimension_numbers<[1], [1], [0], [0], [0, 0, 1, 0], [], []>} : vector<8x8xbf16>, vector<100x8xbf16>, vector<8x100xf32> -> vector<8x100xf32>
    %cst_49 = arith.constant dense<0xFF800000> : vector<8xf32>
    %68 = vector.multi_reduction <maximumf>, %67, %cst_49 [1] : vector<8x100xf32> to vector<8xf32>
    %69 = vector.shape_cast %68 : vector<8xf32> to vector<8x1xf32>
    %70 = vector.broadcast %69 : vector<8x1xf32> to vector<8x100xf32>
    %71 = arith.subf %67, %70 : vector<8x100xf32>
    %72 = math.exp %71 : vector<8x100xf32>
    %cst_50 = arith.constant dense<0.000000e+00> : vector<8xf32>
    %73 = vector.multi_reduction <add>, %72, %cst_50 [1] : vector<8x100xf32> to vector<8xf32>
    %74 = vector.shape_cast %73 : vector<8xf32> to vector<8x1xf32>
    %75 = tpu.reciprocal %74 {approx = true} : vector<8x1xf32> -> vector<8x1xf32>
    %76 = vector.broadcast %75 : vector<8x1xf32> to vector<8x100xf32>
    %77 = arith.mulf %72, %76 : vector<8x100xf32>
    %78 = arith.truncf %77 : vector<8x100xf32> to vector<8x100xbf16>
    %79 = vector.extract_strided_slice %48 {offsets = [0, 8], sizes = [100, 8], strides = [1, 1]} : vector<100x32xbf16> to vector<100x8xbf16>
    %cst_51 = arith.constant dense<0.000000e+00> : vector<8x8xf32>
    %80 = tpu.matmul %78, %79, %cst_51 {dimension_numbers = #tpu.dot_dimension_numbers<[1], [0], [0], [1], [0, 0, 1, 1], [], []>} : vector<8x100xbf16>, vector<100x8xbf16>, vector<8x8xf32> -> vector<8x8xf32>
    %81 = vector.extract_strided_slice %40 {offsets = [0, 16], sizes = [8, 8], strides = [1, 1]} : vector<8x32xbf16> to vector<8x8xbf16>
    %82 = vector.extract_strided_slice %44 {offsets = [0, 16], sizes = [100, 8], strides = [1, 1]} : vector<100x32xbf16> to vector<100x8xbf16>
    %cst_52 = arith.constant dense<0.000000e+00> : vector<8x100xf32>
    %83 = tpu.matmul %81, %82, %cst_52 {dimension_numbers = #tpu.dot_dimension_numbers<[1], [1], [0], [0], [0, 0, 1, 0], [], []>} : vector<8x8xbf16>, vector<100x8xbf16>, vector<8x100xf32> -> vector<8x100xf32>
    %cst_53 = arith.constant dense<0xFF800000> : vector<8xf32>
    %84 = vector.multi_reduction <maximumf>, %83, %cst_53 [1] : vector<8x100xf32> to vector<8xf32>
    %85 = vector.shape_cast %84 : vector<8xf32> to vector<8x1xf32>
    %86 = vector.broadcast %85 : vector<8x1xf32> to vector<8x100xf32>
    %87 = arith.subf %83, %86 : vector<8x100xf32>
    %88 = math.exp %87 : vector<8x100xf32>
    %cst_54 = arith.constant dense<0.000000e+00> : vector<8xf32>
    %89 = vector.multi_reduction <add>, %88, %cst_54 [1] : vector<8x100xf32> to vector<8xf32>
    %90 = vector.shape_cast %89 : vector<8xf32> to vector<8x1xf32>
    %91 = tpu.reciprocal %90 {approx = true} : vector<8x1xf32> -> vector<8x1xf32>
    %92 = vector.broadcast %91 : vector<8x1xf32> to vector<8x100xf32>
    %93 = arith.mulf %88, %92 : vector<8x100xf32>
    %94 = arith.truncf %93 : vector<8x100xf32> to vector<8x100xbf16>
    %95 = vector.extract_strided_slice %48 {offsets = [0, 16], sizes = [100, 8], strides = [1, 1]} : vector<100x32xbf16> to vector<100x8xbf16>
    %cst_55 = arith.constant dense<0.000000e+00> : vector<8x8xf32>
    %96 = tpu.matmul %94, %95, %cst_55 {dimension_numbers = #tpu.dot_dimension_numbers<[1], [0], [0], [1], [0, 0, 1, 1], [], []>} : vector<8x100xbf16>, vector<100x8xbf16>, vector<8x8xf32> -> vector<8x8xf32>
    %97 = vector.extract_strided_slice %40 {offsets = [0, 24], sizes = [8, 8], strides = [1, 1]} : vector<8x32xbf16> to vector<8x8xbf16>
    %98 = vector.extract_strided_slice %44 {offsets = [0, 24], sizes = [100, 8], strides = [1, 1]} : vector<100x32xbf16> to vector<100x8xbf16>
    %cst_56 = arith.constant dense<0.000000e+00> : vector<8x100xf32>
    %99 = tpu.matmul %97, %98, %cst_56 {dimension_numbers = #tpu.dot_dimension_numbers<[1], [1], [0], [0], [0, 0, 1, 0], [], []>} : vector<8x8xbf16>, vector<100x8xbf16>, vector<8x100xf32> -> vector<8x100xf32>
    %cst_57 = arith.constant dense<0xFF800000> : vector<8xf32>
    %100 = vector.multi_reduction <maximumf>, %99, %cst_57 [1] : vector<8x100xf32> to vector<8xf32>
    %101 = vector.shape_cast %100 : vector<8xf32> to vector<8x1xf32>
    %102 = vector.broadcast %101 : vector<8x1xf32> to vector<8x100xf32>
    %103 = arith.subf %99, %102 : vector<8x100xf32>
    %104 = math.exp %103 : vector<8x100xf32>
    %cst_58 = arith.constant dense<0.000000e+00> : vector<8xf32>
    %105 = vector.multi_reduction <add>, %104, %cst_58 [1] : vector<8x100xf32> to vector<8xf32>
    %106 = vector.shape_cast %105 : vector<8xf32> to vector<8x1xf32>
    %107 = tpu.reciprocal %106 {approx = true} : vector<8x1xf32> -> vector<8x1xf32>
    %108 = vector.broadcast %107 : vector<8x1xf32> to vector<8x100xf32>
    %109 = arith.mulf %104, %108 : vector<8x100xf32>
    %110 = arith.truncf %109 : vector<8x100xf32> to vector<8x100xbf16>
    %111 = vector.extract_strided_slice %48 {offsets = [0, 24], sizes = [100, 8], strides = [1, 1]} : vector<100x32xbf16> to vector<100x8xbf16>
    %cst_59 = arith.constant dense<0.000000e+00> : vector<8x8xf32>
    %112 = tpu.matmul %110, %111, %cst_59 {dimension_numbers = #tpu.dot_dimension_numbers<[1], [0], [0], [1], [0, 0, 1, 1], [], []>} : vector<8x100xbf16>, vector<100x8xbf16>, vector<8x8xf32> -> vector<8x8xf32>
    %113 = tpu.concatenate %64, %80, %96, %112 in 1 : vector<8x8xf32>, vector<8x8xf32>, vector<8x8xf32>, vector<8x8xf32> -> vector<8x32xf32>
    %114 = arith.truncf %113 : vector<8x32xf32> to vector<8x32xbf16>
    %cst_60 = arith.constant dense<0.000000e+00> : vector<8x32xf32>
    %115 = tpu.matmul %114, %23, %cst_60 {dimension_numbers = #tpu.dot_dimension_numbers<[1], [0], [0], [1], [0, 0, 1, 1], [], []>} : vector<8x32xbf16>, vector<32x32xbf16>, vector<8x32xf32> -> vector<8x32xf32>
    %116 = vector.broadcast %25 : vector<1x32xf32> to vector<8x32xf32>
    %117 = arith.addf %115, %116 : vector<8x32xf32>
    %118 = arith.addf %5, %117 : vector<8x32xf32>
    %cst_61 = arith.constant dense<0.000000e+00> : vector<8xf32>
    %119 = vector.multi_reduction <add>, %118, %cst_61 [1] : vector<8x32xf32> to vector<8xf32>
    %120 = vector.shape_cast %119 : vector<8xf32> to vector<8x1xf32>
    %cst_62 = arith.constant 3.200000e+01 : f32
    %121 = vector.broadcast %cst_62 : f32 to vector<8x1xf32>
    %122 = arith.divf %120, %121 : vector<8x1xf32>
    %123 = vector.broadcast %122 : vector<8x1xf32> to vector<8x32xf32>
    %124 = arith.subf %118, %123 : vector<8x32xf32>
    %125 = arith.mulf %124, %124 : vector<8x32xf32>
    %cst_63 = arith.constant dense<0.000000e+00> : vector<8xf32>
    %126 = vector.multi_reduction <add>, %125, %cst_63 [1] : vector<8x32xf32> to vector<8xf32>
    %127 = vector.shape_cast %126 : vector<8xf32> to vector<8x1xf32>
    %cst_64 = arith.constant 3.200000e+01 : f32
    %128 = vector.broadcast %cst_64 : f32 to vector<8x1xf32>
    %129 = arith.divf %127, %128 : vector<8x1xf32>
    %130 = vector.broadcast %122 : vector<8x1xf32> to vector<8x32xf32>
    %131 = arith.subf %118, %130 : vector<8x32xf32>
    %cst_65 = arith.constant 9.99999974E-6 : f32
    %132 = vector.broadcast %cst_65 : f32 to vector<8x1xf32>
    %133 = arith.addf %129, %132 : vector<8x1xf32>
    %134 = math.rsqrt %133 : vector<8x1xf32>
    %135 = vector.broadcast %134 : vector<8x1xf32> to vector<8x32xf32>
    %136 = arith.mulf %131, %135 : vector<8x32xf32>
    %137 = vector.broadcast %27 : vector<1x32xf32> to vector<8x32xf32>
    %138 = arith.mulf %136, %137 : vector<8x32xf32>
    %139 = vector.broadcast %29 : vector<1x32xf32> to vector<8x32xf32>
    %140 = arith.addf %138, %139 : vector<8x32xf32>
    %c0_66 = arith.constant 0 : index
    %c0_67 = arith.constant 0 : index
    %c0_68 = arith.constant 0 : index
    %141 = vector.load %arg17[%c0_66, %c0_67, %c0_68] : memref<1x32x32xbf16, #tpu.memory_space<vmem>>, vector<1x32x32xbf16>
    %142 = vector.shape_cast %141 : vector<1x32x32xbf16> to vector<32x32xbf16>
    %c0_69 = arith.constant 0 : index
    %c0_70 = arith.constant 0 : index
    %c0_71 = arith.constant 0 : index
    %143 = vector.load %arg18[%c0_69, %c0_70, %c0_71] : memref<1x32x32xbf16, #tpu.memory_space<vmem>>, vector<1x32x32xbf16>
    %144 = vector.shape_cast %143 : vector<1x32x32xbf16> to vector<32x32xbf16>
    %c0_72 = arith.constant 0 : index
    %c0_73 = arith.constant 0 : index
    %c0_74 = arith.constant 0 : index
    %145 = vector.load %arg19[%c0_72, %c0_73, %c0_74] : memref<1x32x32xbf16, #tpu.memory_space<vmem>>, vector<1x32x32xbf16>
    %146 = vector.shape_cast %145 : vector<1x32x32xbf16> to vector<32x32xbf16>
    %c0_75 = arith.constant 0 : index
    %c0_76 = arith.constant 0 : index
    %c0_77 = arith.constant 0 : index
    %147 = vector.load %arg20[%c0_75, %c0_76, %c0_77] : memref<1x1x32xf32, #tpu.memory_space<vmem>>, vector<1x1x32xf32>
    %148 = vector.shape_cast %147 : vector<1x1x32xf32> to vector<1x32xf32>
    %c0_78 = arith.constant 0 : index
    %c0_79 = arith.constant 0 : index
    %c0_80 = arith.constant 0 : index
    %149 = vector.load %arg21[%c0_78, %c0_79, %c0_80] : memref<1x1x32xf32, #tpu.memory_space<vmem>>, vector<1x1x32xf32>
    %150 = vector.shape_cast %149 : vector<1x1x32xf32> to vector<1x32xf32>
    %c0_81 = arith.constant 0 : index
    %c0_82 = arith.constant 0 : index
    %c0_83 = arith.constant 0 : index
    %151 = vector.load %arg22[%c0_81, %c0_82, %c0_83] : memref<1x1x32xf32, #tpu.memory_space<vmem>>, vector<1x1x32xf32>
    %152 = vector.shape_cast %151 : vector<1x1x32xf32> to vector<1x32xf32>
    %c0_84 = arith.constant 0 : index
    %c0_85 = arith.constant 0 : index
    %c0_86 = arith.constant 0 : index
    %153 = vector.load %arg23[%c0_84, %c0_85, %c0_86] : memref<1x32x32xbf16, #tpu.memory_space<vmem>>, vector<1x32x32xbf16>
    %154 = vector.shape_cast %153 : vector<1x32x32xbf16> to vector<32x32xbf16>
    %c0_87 = arith.constant 0 : index
    %c0_88 = arith.constant 0 : index
    %c0_89 = arith.constant 0 : index
    %155 = vector.load %arg24[%c0_87, %c0_88, %c0_89] : memref<1x1x32xf32, #tpu.memory_space<vmem>>, vector<1x1x32xf32>
    %156 = vector.shape_cast %155 : vector<1x1x32xf32> to vector<1x32xf32>
    %c0_90 = arith.constant 0 : index
    %c0_91 = arith.constant 0 : index
    %c0_92 = arith.constant 0 : index
    %157 = vector.load %arg25[%c0_90, %c0_91, %c0_92] : memref<1x1x32xf32, #tpu.memory_space<vmem>>, vector<1x1x32xf32>
    %158 = vector.shape_cast %157 : vector<1x1x32xf32> to vector<1x32xf32>
    %c0_93 = arith.constant 0 : index
    %c0_94 = arith.constant 0 : index
    %c0_95 = arith.constant 0 : index
    %159 = vector.load %arg26[%c0_93, %c0_94, %c0_95] : memref<1x1x32xf32, #tpu.memory_space<vmem>>, vector<1x1x32xf32>
    %160 = vector.shape_cast %159 : vector<1x1x32xf32> to vector<1x32xf32>
    %161 = arith.addf %140, %8 : vector<8x32xf32>
    %162 = arith.truncf %161 : vector<8x32xf32> to vector<8x32xbf16>
    %163 = arith.addf %140, %8 : vector<8x32xf32>
    %164 = arith.truncf %163 : vector<8x32xf32> to vector<8x32xbf16>
    %165 = arith.truncf %140 : vector<8x32xf32> to vector<8x32xbf16>
    %cst_96 = arith.constant dense<0.000000e+00> : vector<8x32xf32>
    %166 = tpu.matmul %162, %142, %cst_96 {dimension_numbers = #tpu.dot_dimension_numbers<[1], [0], [0], [1], [0, 0, 1, 1], [], []>} : vector<8x32xbf16>, vector<32x32xbf16>, vector<8x32xf32> -> vector<8x32xf32>
    %167 = vector.broadcast %148 : vector<1x32xf32> to vector<8x32xf32>
    %168 = arith.addf %166, %167 : vector<8x32xf32>
    %cst_97 = arith.constant 0.353553385 : f32
    %169 = vector.broadcast %cst_97 : f32 to vector<8x32xf32>
    %170 = arith.mulf %168, %169 : vector<8x32xf32>
    %171 = arith.truncf %170 : vector<8x32xf32> to vector<8x32xbf16>
    %cst_98 = arith.constant dense<0.000000e+00> : vector<8x32xf32>
    %172 = tpu.matmul %164, %144, %cst_98 {dimension_numbers = #tpu.dot_dimension_numbers<[1], [0], [0], [1], [0, 0, 1, 1], [], []>} : vector<8x32xbf16>, vector<32x32xbf16>, vector<8x32xf32> -> vector<8x32xf32>
    %173 = vector.broadcast %150 : vector<1x32xf32> to vector<8x32xf32>
    %174 = arith.addf %172, %173 : vector<8x32xf32>
    %175 = arith.truncf %174 : vector<8x32xf32> to vector<8x32xbf16>
    %cst_99 = arith.constant dense<0.000000e+00> : vector<8x32xf32>
    %176 = tpu.matmul %165, %146, %cst_99 {dimension_numbers = #tpu.dot_dimension_numbers<[1], [0], [0], [1], [0, 0, 1, 1], [], []>} : vector<8x32xbf16>, vector<32x32xbf16>, vector<8x32xf32> -> vector<8x32xf32>
    %177 = vector.broadcast %152 : vector<1x32xf32> to vector<8x32xf32>
    %178 = arith.addf %176, %177 : vector<8x32xf32>
    %179 = arith.truncf %178 : vector<8x32xf32> to vector<8x32xbf16>
    %180 = vector.extract_strided_slice %171 {offsets = [0, 0], sizes = [8, 8], strides = [1, 1]} : vector<8x32xbf16> to vector<8x8xbf16>
    %181 = vector.extract_strided_slice %175 {offsets = [0, 0], sizes = [8, 8], strides = [1, 1]} : vector<8x32xbf16> to vector<8x8xbf16>
    %cst_100 = arith.constant dense<0.000000e+00> : vector<8x8xf32>
    %182 = tpu.matmul %180, %181, %cst_100 {dimension_numbers = #tpu.dot_dimension_numbers<[1], [1], [0], [0], [0, 0, 1, 0], [], []>} : vector<8x8xbf16>, vector<8x8xbf16>, vector<8x8xf32> -> vector<8x8xf32>
    %cst_101 = arith.constant dense<0xFF800000> : vector<8xf32>
    %183 = vector.multi_reduction <maximumf>, %182, %cst_101 [1] : vector<8x8xf32> to vector<8xf32>
    %184 = vector.shape_cast %183 : vector<8xf32> to vector<8x1xf32>
    %185 = vector.broadcast %184 : vector<8x1xf32> to vector<8x8xf32>
    %186 = arith.subf %182, %185 : vector<8x8xf32>
    %187 = math.exp %186 : vector<8x8xf32>
    %cst_102 = arith.constant dense<0.000000e+00> : vector<8xf32>
    %188 = vector.multi_reduction <add>, %187, %cst_102 [1] : vector<8x8xf32> to vector<8xf32>
    %189 = vector.shape_cast %188 : vector<8xf32> to vector<8x1xf32>
    %190 = tpu.reciprocal %189 {approx = true} : vector<8x1xf32> -> vector<8x1xf32>
    %191 = vector.broadcast %190 : vector<8x1xf32> to vector<8x8xf32>
    %192 = arith.mulf %187, %191 : vector<8x8xf32>
    %193 = arith.truncf %192 : vector<8x8xf32> to vector<8x8xbf16>
    %194 = vector.extract_strided_slice %179 {offsets = [0, 0], sizes = [8, 8], strides = [1, 1]} : vector<8x32xbf16> to vector<8x8xbf16>
    %cst_103 = arith.constant dense<0.000000e+00> : vector<8x8xf32>
    %195 = tpu.matmul %193, %194, %cst_103 {dimension_numbers = #tpu.dot_dimension_numbers<[1], [0], [0], [1], [0, 0, 1, 1], [], []>} : vector<8x8xbf16>, vector<8x8xbf16>, vector<8x8xf32> -> vector<8x8xf32>
    %196 = vector.extract_strided_slice %171 {offsets = [0, 8], sizes = [8, 8], strides = [1, 1]} : vector<8x32xbf16> to vector<8x8xbf16>
    %197 = vector.extract_strided_slice %175 {offsets = [0, 8], sizes = [8, 8], strides = [1, 1]} : vector<8x32xbf16> to vector<8x8xbf16>
    %cst_104 = arith.constant dense<0.000000e+00> : vector<8x8xf32>
    %198 = tpu.matmul %196, %197, %cst_104 {dimension_numbers = #tpu.dot_dimension_numbers<[1], [1], [0], [0], [0, 0, 1, 0], [], []>} : vector<8x8xbf16>, vector<8x8xbf16>, vector<8x8xf32> -> vector<8x8xf32>
    %cst_105 = arith.constant dense<0xFF800000> : vector<8xf32>
    %199 = vector.multi_reduction <maximumf>, %198, %cst_105 [1] : vector<8x8xf32> to vector<8xf32>
    %200 = vector.shape_cast %199 : vector<8xf32> to vector<8x1xf32>
    %201 = vector.broadcast %200 : vector<8x1xf32> to vector<8x8xf32>
    %202 = arith.subf %198, %201 : vector<8x8xf32>
    %203 = math.exp %202 : vector<8x8xf32>
    %cst_106 = arith.constant dense<0.000000e+00> : vector<8xf32>
    %204 = vector.multi_reduction <add>, %203, %cst_106 [1] : vector<8x8xf32> to vector<8xf32>
    %205 = vector.shape_cast %204 : vector<8xf32> to vector<8x1xf32>
    %206 = tpu.reciprocal %205 {approx = true} : vector<8x1xf32> -> vector<8x1xf32>
    %207 = vector.broadcast %206 : vector<8x1xf32> to vector<8x8xf32>
    %208 = arith.mulf %203, %207 : vector<8x8xf32>
    %209 = arith.truncf %208 : vector<8x8xf32> to vector<8x8xbf16>
    %210 = vector.extract_strided_slice %179 {offsets = [0, 8], sizes = [8, 8], strides = [1, 1]} : vector<8x32xbf16> to vector<8x8xbf16>
    %cst_107 = arith.constant dense<0.000000e+00> : vector<8x8xf32>
    %211 = tpu.matmul %209, %210, %cst_107 {dimension_numbers = #tpu.dot_dimension_numbers<[1], [0], [0], [1], [0, 0, 1, 1], [], []>} : vector<8x8xbf16>, vector<8x8xbf16>, vector<8x8xf32> -> vector<8x8xf32>
    %212 = vector.extract_strided_slice %171 {offsets = [0, 16], sizes = [8, 8], strides = [1, 1]} : vector<8x32xbf16> to vector<8x8xbf16>
    %213 = vector.extract_strided_slice %175 {offsets = [0, 16], sizes = [8, 8], strides = [1, 1]} : vector<8x32xbf16> to vector<8x8xbf16>
    %cst_108 = arith.constant dense<0.000000e+00> : vector<8x8xf32>
    %214 = tpu.matmul %212, %213, %cst_108 {dimension_numbers = #tpu.dot_dimension_numbers<[1], [1], [0], [0], [0, 0, 1, 0], [], []>} : vector<8x8xbf16>, vector<8x8xbf16>, vector<8x8xf32> -> vector<8x8xf32>
    %cst_109 = arith.constant dense<0xFF800000> : vector<8xf32>
    %215 = vector.multi_reduction <maximumf>, %214, %cst_109 [1] : vector<8x8xf32> to vector<8xf32>
    %216 = vector.shape_cast %215 : vector<8xf32> to vector<8x1xf32>
    %217 = vector.broadcast %216 : vector<8x1xf32> to vector<8x8xf32>
    %218 = arith.subf %214, %217 : vector<8x8xf32>
    %219 = math.exp %218 : vector<8x8xf32>
    %cst_110 = arith.constant dense<0.000000e+00> : vector<8xf32>
    %220 = vector.multi_reduction <add>, %219, %cst_110 [1] : vector<8x8xf32> to vector<8xf32>
    %221 = vector.shape_cast %220 : vector<8xf32> to vector<8x1xf32>
    %222 = tpu.reciprocal %221 {approx = true} : vector<8x1xf32> -> vector<8x1xf32>
    %223 = vector.broadcast %222 : vector<8x1xf32> to vector<8x8xf32>
    %224 = arith.mulf %219, %223 : vector<8x8xf32>
    %225 = arith.truncf %224 : vector<8x8xf32> to vector<8x8xbf16>
    %226 = vector.extract_strided_slice %179 {offsets = [0, 16], sizes = [8, 8], strides = [1, 1]} : vector<8x32xbf16> to vector<8x8xbf16>
    %cst_111 = arith.constant dense<0.000000e+00> : vector<8x8xf32>
    %227 = tpu.matmul %225, %226, %cst_111 {dimension_numbers = #tpu.dot_dimension_numbers<[1], [0], [0], [1], [0, 0, 1, 1], [], []>} : vector<8x8xbf16>, vector<8x8xbf16>, vector<8x8xf32> -> vector<8x8xf32>
    %228 = vector.extract_strided_slice %171 {offsets = [0, 24], sizes = [8, 8], strides = [1, 1]} : vector<8x32xbf16> to vector<8x8xbf16>
    %229 = vector.extract_strided_slice %175 {offsets = [0, 24], sizes = [8, 8], strides = [1, 1]} : vector<8x32xbf16> to vector<8x8xbf16>
    %cst_112 = arith.constant dense<0.000000e+00> : vector<8x8xf32>
    %230 = tpu.matmul %228, %229, %cst_112 {dimension_numbers = #tpu.dot_dimension_numbers<[1], [1], [0], [0], [0, 0, 1, 0], [], []>} : vector<8x8xbf16>, vector<8x8xbf16>, vector<8x8xf32> -> vector<8x8xf32>
    %cst_113 = arith.constant dense<0xFF800000> : vector<8xf32>
    %231 = vector.multi_reduction <maximumf>, %230, %cst_113 [1] : vector<8x8xf32> to vector<8xf32>
    %232 = vector.shape_cast %231 : vector<8xf32> to vector<8x1xf32>
    %233 = vector.broadcast %232 : vector<8x1xf32> to vector<8x8xf32>
    %234 = arith.subf %230, %233 : vector<8x8xf32>
    %235 = math.exp %234 : vector<8x8xf32>
    %cst_114 = arith.constant dense<0.000000e+00> : vector<8xf32>
    %236 = vector.multi_reduction <add>, %235, %cst_114 [1] : vector<8x8xf32> to vector<8xf32>
    %237 = vector.shape_cast %236 : vector<8xf32> to vector<8x1xf32>
    %238 = tpu.reciprocal %237 {approx = true} : vector<8x1xf32> -> vector<8x1xf32>
    %239 = vector.broadcast %238 : vector<8x1xf32> to vector<8x8xf32>
    %240 = arith.mulf %235, %239 : vector<8x8xf32>
    %241 = arith.truncf %240 : vector<8x8xf32> to vector<8x8xbf16>
    %242 = vector.extract_strided_slice %179 {offsets = [0, 24], sizes = [8, 8], strides = [1, 1]} : vector<8x32xbf16> to vector<8x8xbf16>
    %cst_115 = arith.constant dense<0.000000e+00> : vector<8x8xf32>
    %243 = tpu.matmul %241, %242, %cst_115 {dimension_numbers = #tpu.dot_dimension_numbers<[1], [0], [0], [1], [0, 0, 1, 1], [], []>} : vector<8x8xbf16>, vector<8x8xbf16>, vector<8x8xf32> -> vector<8x8xf32>
    %244 = tpu.concatenate %195, %211, %227, %243 in 1 : vector<8x8xf32>, vector<8x8xf32>, vector<8x8xf32>, vector<8x8xf32> -> vector<8x32xf32>
    %245 = arith.truncf %244 : vector<8x32xf32> to vector<8x32xbf16>
    %cst_116 = arith.constant dense<0.000000e+00> : vector<8x32xf32>
    %246 = tpu.matmul %245, %154, %cst_116 {dimension_numbers = #tpu.dot_dimension_numbers<[1], [0], [0], [1], [0, 0, 1, 1], [], []>} : vector<8x32xbf16>, vector<32x32xbf16>, vector<8x32xf32> -> vector<8x32xf32>
    %247 = vector.broadcast %156 : vector<1x32xf32> to vector<8x32xf32>
    %248 = arith.addf %246, %247 : vector<8x32xf32>
    %249 = arith.addf %140, %248 : vector<8x32xf32>
    %cst_117 = arith.constant dense<0.000000e+00> : vector<8xf32>
    %250 = vector.multi_reduction <add>, %249, %cst_117 [1] : vector<8x32xf32> to vector<8xf32>
    %251 = vector.shape_cast %250 : vector<8xf32> to vector<8x1xf32>
    %cst_118 = arith.constant 3.200000e+01 : f32
    %252 = vector.broadcast %cst_118 : f32 to vector<8x1xf32>
    %253 = arith.divf %251, %252 : vector<8x1xf32>
    %254 = vector.broadcast %253 : vector<8x1xf32> to vector<8x32xf32>
    %255 = arith.subf %249, %254 : vector<8x32xf32>
    %256 = arith.mulf %255, %255 : vector<8x32xf32>
    %cst_119 = arith.constant dense<0.000000e+00> : vector<8xf32>
    %257 = vector.multi_reduction <add>, %256, %cst_119 [1] : vector<8x32xf32> to vector<8xf32>
    %258 = vector.shape_cast %257 : vector<8xf32> to vector<8x1xf32>
    %cst_120 = arith.constant 3.200000e+01 : f32
    %259 = vector.broadcast %cst_120 : f32 to vector<8x1xf32>
    %260 = arith.divf %258, %259 : vector<8x1xf32>
    %261 = vector.broadcast %253 : vector<8x1xf32> to vector<8x32xf32>
    %262 = arith.subf %249, %261 : vector<8x32xf32>
    %cst_121 = arith.constant 9.99999974E-6 : f32
    %263 = vector.broadcast %cst_121 : f32 to vector<8x1xf32>
    %264 = arith.addf %260, %263 : vector<8x1xf32>
    %265 = math.rsqrt %264 : vector<8x1xf32>
    %266 = vector.broadcast %265 : vector<8x1xf32> to vector<8x32xf32>
    %267 = arith.mulf %262, %266 : vector<8x32xf32>
    %268 = vector.broadcast %158 : vector<1x32xf32> to vector<8x32xf32>
    %269 = arith.mulf %267, %268 : vector<8x32xf32>
    %270 = vector.broadcast %160 : vector<1x32xf32> to vector<8x32xf32>
    %271 = arith.addf %269, %270 : vector<8x32xf32>
    %c0_122 = arith.constant 0 : index
    %c0_123 = arith.constant 0 : index
    %c0_124 = arith.constant 0 : index
    %272 = vector.load %arg27[%c0_122, %c0_123, %c0_124] : memref<1x32x64xbf16, #tpu.memory_space<vmem>>, vector<1x32x64xbf16>
    %273 = vector.shape_cast %272 : vector<1x32x64xbf16> to vector<32x64xbf16>
    %c0_125 = arith.constant 0 : index
    %c0_126 = arith.constant 0 : index
    %c0_127 = arith.constant 0 : index
    %274 = vector.load %arg28[%c0_125, %c0_126, %c0_127] : memref<1x1x64xf32, #tpu.memory_space<vmem>>, vector<1x1x64xf32>
    %275 = vector.shape_cast %274 : vector<1x1x64xf32> to vector<1x64xf32>
    %c0_128 = arith.constant 0 : index
    %c0_129 = arith.constant 0 : index
    %c0_130 = arith.constant 0 : index
    %276 = vector.load %arg29[%c0_128, %c0_129, %c0_130] : memref<1x64x32xbf16, #tpu.memory_space<vmem>>, vector<1x64x32xbf16>
    %277 = vector.shape_cast %276 : vector<1x64x32xbf16> to vector<64x32xbf16>
    %c0_131 = arith.constant 0 : index
    %c0_132 = arith.constant 0 : index
    %c0_133 = arith.constant 0 : index
    %278 = vector.load %arg30[%c0_131, %c0_132, %c0_133] : memref<1x1x32xf32, #tpu.memory_space<vmem>>, vector<1x1x32xf32>
    %279 = vector.shape_cast %278 : vector<1x1x32xf32> to vector<1x32xf32>
    %c0_134 = arith.constant 0 : index
    %c0_135 = arith.constant 0 : index
    %c0_136 = arith.constant 0 : index
    %280 = vector.load %arg31[%c0_134, %c0_135, %c0_136] : memref<1x1x32xf32, #tpu.memory_space<vmem>>, vector<1x1x32xf32>
    %281 = vector.shape_cast %280 : vector<1x1x32xf32> to vector<1x32xf32>
    %c0_137 = arith.constant 0 : index
    %c0_138 = arith.constant 0 : index
    %c0_139 = arith.constant 0 : index
    %282 = vector.load %arg32[%c0_137, %c0_138, %c0_139] : memref<1x1x32xf32, #tpu.memory_space<vmem>>, vector<1x1x32xf32>
    %283 = vector.shape_cast %282 : vector<1x1x32xf32> to vector<1x32xf32>
    %284 = arith.truncf %271 : vector<8x32xf32> to vector<8x32xbf16>
    %cst_140 = arith.constant dense<0.000000e+00> : vector<8x64xf32>
    %285 = tpu.matmul %284, %273, %cst_140 {dimension_numbers = #tpu.dot_dimension_numbers<[1], [0], [0], [1], [0, 0, 1, 1], [], []>} : vector<8x32xbf16>, vector<32x64xbf16>, vector<8x64xf32> -> vector<8x64xf32>
    %286 = vector.broadcast %275 : vector<1x64xf32> to vector<8x64xf32>
    %287 = arith.addf %285, %286 : vector<8x64xf32>
    %cst_141 = arith.constant 0.000000e+00 : f32
    %288 = vector.broadcast %cst_141 : f32 to vector<8x64xf32>
    %289 = arith.maximumf %287, %288 : vector<8x64xf32>
    %290 = arith.truncf %289 : vector<8x64xf32> to vector<8x64xbf16>
    %cst_142 = arith.constant dense<0.000000e+00> : vector<8x32xf32>
    %291 = tpu.matmul %290, %277, %cst_142 {dimension_numbers = #tpu.dot_dimension_numbers<[1], [0], [0], [1], [0, 0, 1, 1], [], []>} : vector<8x64xbf16>, vector<64x32xbf16>, vector<8x32xf32> -> vector<8x32xf32>
    %292 = vector.broadcast %279 : vector<1x32xf32> to vector<8x32xf32>
    %293 = arith.addf %291, %292 : vector<8x32xf32>
    %294 = arith.addf %271, %293 : vector<8x32xf32>
    %cst_143 = arith.constant dense<0.000000e+00> : vector<8xf32>
    %295 = vector.multi_reduction <add>, %294, %cst_143 [1] : vector<8x32xf32> to vector<8xf32>
    %296 = vector.shape_cast %295 : vector<8xf32> to vector<8x1xf32>
    %cst_144 = arith.constant 3.200000e+01 : f32
    %297 = vector.broadcast %cst_144 : f32 to vector<8x1xf32>
    %298 = arith.divf %296, %297 : vector<8x1xf32>
    %299 = vector.broadcast %298 : vector<8x1xf32> to vector<8x32xf32>
    %300 = arith.subf %294, %299 : vector<8x32xf32>
    %301 = arith.mulf %300, %300 : vector<8x32xf32>
    %cst_145 = arith.constant dense<0.000000e+00> : vector<8xf32>
    %302 = vector.multi_reduction <add>, %301, %cst_145 [1] : vector<8x32xf32> to vector<8xf32>
    %303 = vector.shape_cast %302 : vector<8xf32> to vector<8x1xf32>
    %cst_146 = arith.constant 3.200000e+01 : f32
    %304 = vector.broadcast %cst_146 : f32 to vector<8x1xf32>
    %305 = arith.divf %303, %304 : vector<8x1xf32>
    %306 = vector.broadcast %298 : vector<8x1xf32> to vector<8x32xf32>
    %307 = arith.subf %294, %306 : vector<8x32xf32>
    %cst_147 = arith.constant 9.99999974E-6 : f32
    %308 = vector.broadcast %cst_147 : f32 to vector<8x1xf32>
    %309 = arith.addf %305, %308 : vector<8x1xf32>
    %310 = math.rsqrt %309 : vector<8x1xf32>
    %311 = vector.broadcast %310 : vector<8x1xf32> to vector<8x32xf32>
    %312 = arith.mulf %307, %311 : vector<8x32xf32>
    %313 = vector.broadcast %281 : vector<1x32xf32> to vector<8x32xf32>
    %314 = arith.mulf %312, %313 : vector<8x32xf32>
    %315 = vector.broadcast %283 : vector<1x32xf32> to vector<8x32xf32>
    %316 = arith.addf %314, %315 : vector<8x32xf32>
    %c0_148 = arith.constant 0 : index
    %c0_149 = arith.constant 0 : index
    %c0_150 = arith.constant 0 : index
    %c0_151 = arith.constant 0 : index
    %c0_152 = arith.constant 0 : index
    %317 = vector.load %arg35[%c0_148, %c0_149, %c0_150, %c0_151, %c0_152] : memref<1x1x1x8x32xf32, #tpu.memory_space<vmem>>, vector<1x1x1x8x32xf32>
    %318 = vector.shape_cast %317 : vector<1x1x1x8x32xf32> to vector<8x32xf32>
    %319 = vector.shape_cast %316 : vector<8x32xf32> to vector<1x1x1x8x32xf32>
    tpu.vector_store %arg35[%c0_148, %c0_149, %c0_150, %c0_151, %c0_152], %319 {strides = array<i32>} : memref<1x1x1x8x32xf32, #tpu.memory_space<vmem>>, vector<1x1x1x8x32xf32>,
    %c1_i32 = arith.constant 1 : i32
    %320 = arith.cmpi eq, %arg2, %c1_i32 : i32
    %321 = arith.extui %320 : i1 to i32
    %c0_i32_153 = arith.constant 0 : i32
    %322 = arith.cmpi ne, %321, %c0_i32_153 : i32
    scf.if %322 {
      %326 = arith.truncf %316 : vector<8x32xf32> to vector<8x32xbf16>
      %c0_156 = arith.constant 0 : index
      %c0_157 = arith.constant 0 : index
      %327 = vector.load %arg33[%c0_156, %c0_157] : memref<32x32xbf16, #tpu.memory_space<vmem>>, vector<32x32xbf16>
      %cst_158 = arith.constant dense<0.000000e+00> : vector<8x32xf32>
      %328 = tpu.matmul %326, %327, %cst_158 {dimension_numbers = #tpu.dot_dimension_numbers<[1], [0], [0], [1], [0, 0, 1, 1], [], []>} : vector<8x32xbf16>, vector<32x32xbf16>, vector<8x32xf32> -> vector<8x32xf32>
      %c0_159 = arith.constant 0 : index
      %c0_160 = arith.constant 0 : index
      %329 = vector.load %arg34[%c0_159, %c0_160] : memref<1x32xf32, #tpu.memory_space<vmem>>, vector<1x32xf32>
      %330 = vector.broadcast %329 : vector<1x32xf32> to vector<8x32xf32>
      %331 = arith.addf %328, %330 : vector<8x32xf32>
      %c0_161 = arith.constant 0 : index
      %c0_162 = arith.constant 0 : index
      %332 = vector.load %arg36[%c0_161, %c0_162] : memref<8x32xf32, #tpu.memory_space<vmem>>, vector<8x32xf32>
      tpu.vector_store %arg36[%c0_161, %c0_162], %331 {strides = array<i32>} : memref<8x32xf32, #tpu.memory_space<vmem>>, vector<8x32xf32>,
    } else {
    }
    %c1_i32_154 = arith.constant 1 : i32
    %323 = arith.cmpi ne, %arg2, %c1_i32_154 : i32
    %324 = arith.extui %323 : i1 to i32
    %c0_i32_155 = arith.constant 0 : i32
    %325 = arith.cmpi ne, %324, %c0_i32_155 : i32
    scf.if %325 {
      %c0_156 = arith.constant 0 : index
      %c0_157 = arith.constant 0 : index
      %326 = vector.load %arg36[%c0_156, %c0_157] : memref<8x32xf32, #tpu.memory_space<vmem>>, vector<8x32xf32>
      tpu.vector_store %arg36[%c0_156, %c0_157], %316 {strides = array<i32>} : memref<8x32xf32, #tpu.memory_space<vmem>>, vector<8x32xf32>,
    } else {
    }
    return
  }
  func.func @transform_0(%arg0: i32, %arg1: i32, %arg2: i32) -> (i32, i32, i32, i32) {
    %c0_i32 = arith.constant 0 : i32
    %c0_i32_0 = arith.constant 0 : i32
    %c0_i32_1 = arith.constant 0 : i32
    return %arg0, %arg1, %c0_i32, %c0_i32_0 : i32, i32, i32, i32
  }
  func.func @transform_1(%arg0: i32, %arg1: i32, %arg2: i32) -> (i32, i32) {
    %c0_i32 = arith.constant 0 : i32
    %c0_i32_0 = arith.constant 0 : i32
    %c0_i32_1 = arith.constant 0 : i32
    return %c0_i32, %c0_i32_0 : i32, i32
  }
  func.func @transform_2(%arg0: i32, %arg1: i32, %arg2: i32) -> (i32, i32) {
    %c0_i32 = arith.constant 0 : i32
    %c0_i32_0 = arith.constant 0 : i32
    %c0_i32_1 = arith.constant 0 : i32
    return %c0_i32, %c0_i32_0 : i32, i32
  }
  func.func @transform_3(%arg0: i32, %arg1: i32, %arg2: i32) -> (i32, i32) {
    %c0_i32 = arith.constant 0 : i32
    %c0_i32_0 = arith.constant 0 : i32
    %c0_i32_1 = arith.constant 0 : i32
    return %c0_i32, %c0_i32_0 : i32, i32
  }
  func.func @transform_4(%arg0: i32, %arg1: i32, %arg2: i32) -> (i32, i32, i32) {
    %c0_i32 = arith.constant 0 : i32
    %c0_i32_0 = arith.constant 0 : i32
    %c0_i32_1 = arith.constant 0 : i32
    return %arg2, %c0_i32, %c0_i32_0 : i32, i32, i32
  }
  func.func @transform_5(%arg0: i32, %arg1: i32, %arg2: i32) -> (i32, i32, i32) {
    %c0_i32 = arith.constant 0 : i32
    %c0_i32_0 = arith.constant 0 : i32
    %c0_i32_1 = arith.constant 0 : i32
    return %arg2, %c0_i32, %c0_i32_0 : i32, i32, i32
  }
  func.func @transform_6(%arg0: i32, %arg1: i32, %arg2: i32) -> (i32, i32, i32) {
    %c0_i32 = arith.constant 0 : i32
    %c0_i32_0 = arith.constant 0 : i32
    %c0_i32_1 = arith.constant 0 : i32
    return %arg2, %c0_i32, %c0_i32_0 : i32, i32, i32
  }
  func.func @transform_7(%arg0: i32, %arg1: i32, %arg2: i32) -> (i32, i32, i32) {
    %c0_i32 = arith.constant 0 : i32
    %c0_i32_0 = arith.constant 0 : i32
    %c0_i32_1 = arith.constant 0 : i32
    return %arg2, %c0_i32, %c0_i32_0 : i32, i32, i32
  }
  func.func @transform_8(%arg0: i32, %arg1: i32, %arg2: i32) -> (i32, i32, i32) {
    %c0_i32 = arith.constant 0 : i32
    %c0_i32_0 = arith.constant 0 : i32
    %c0_i32_1 = arith.constant 0 : i32
    return %arg2, %c0_i32, %c0_i32_0 : i32, i32, i32
  }
  func.func @transform_9(%arg0: i32, %arg1: i32, %arg2: i32) -> (i32, i32, i32) {
    %c0_i32 = arith.constant 0 : i32
    %c0_i32_0 = arith.constant 0 : i32
    %c0_i32_1 = arith.constant 0 : i32
    return %arg2, %c0_i32, %c0_i32_0 : i32, i32, i32
  }
  func.func @transform_10(%arg0: i32, %arg1: i32, %arg2: i32) -> (i32, i32, i32) {
    %c0_i32 = arith.constant 0 : i32
    %c0_i32_0 = arith.constant 0 : i32
    %c0_i32_1 = arith.constant 0 : i32
    return %arg2, %c0_i32, %c0_i32_0 : i32, i32, i32
  }
  func.func @transform_11(%arg0: i32, %arg1: i32, %arg2: i32) -> (i32, i32, i32) {
    %c0_i32 = arith.constant 0 : i32
    %c0_i32_0 = arith.constant 0 : i32
    %c0_i32_1 = arith.constant 0 : i32
    return %arg2, %c0_i32, %c0_i32_0 : i32, i32, i32
  }
  func.func @transform_12(%arg0: i32, %arg1: i32, %arg2: i32) -> (i32, i32, i32) {
    %c0_i32 = arith.constant 0 : i32
    %c0_i32_0 = arith.constant 0 : i32
    %c0_i32_1 = arith.constant 0 : i32
    return %arg2, %c0_i32, %c0_i32_0 : i32, i32, i32
  }
  func.func @transform_13(%arg0: i32, %arg1: i32, %arg2: i32) -> (i32, i32, i32) {
    %c0_i32 = arith.constant 0 : i32
    %c0_i32_0 = arith.constant 0 : i32
    %c0_i32_1 = arith.constant 0 : i32
    return %arg2, %c0_i32, %c0_i32_0 : i32, i32, i32
  }
  func.func @transform_14(%arg0: i32, %arg1: i32, %arg2: i32) -> (i32, i32, i32) {
    %c0_i32 = arith.constant 0 : i32
    %c0_i32_0 = arith.constant 0 : i32
    %c0_i32_1 = arith.constant 0 : i32
    return %arg2, %c0_i32, %c0_i32_0 : i32, i32, i32
  }
  func.func @transform_15(%arg0: i32, %arg1: i32, %arg2: i32) -> (i32, i32, i32) {
    %c0_i32 = arith.constant 0 : i32
    %c0_i32_0 = arith.constant 0 : i32
    %c0_i32_1 = arith.constant 0 : i32
    return %arg2, %c0_i32, %c0_i32_0 : i32, i32, i32
  }
  func.func @transform_16(%arg0: i32, %arg1: i32, %arg2: i32) -> (i32, i32, i32) {
    %c0_i32 = arith.constant 0 : i32
    %c0_i32_0 = arith.constant 0 : i32
    %c0_i32_1 = arith.constant 0 : i32
    return %arg2, %c0_i32, %c0_i32_0 : i32, i32, i32
  }
  func.func @transform_17(%arg0: i32, %arg1: i32, %arg2: i32) -> (i32, i32, i32) {
    %c0_i32 = arith.constant 0 : i32
    %c0_i32_0 = arith.constant 0 : i32
    %c0_i32_1 = arith.constant 0 : i32
    return %arg2, %c0_i32, %c0_i32_0 : i32, i32, i32
  }
  func.func @transform_18(%arg0: i32, %arg1: i32, %arg2: i32) -> (i32, i32, i32) {
    %c0_i32 = arith.constant 0 : i32
    %c0_i32_0 = arith.constant 0 : i32
    %c0_i32_1 = arith.constant 0 : i32
    return %arg2, %c0_i32, %c0_i32_0 : i32, i32, i32
  }
  func.func @transform_19(%arg0: i32, %arg1: i32, %arg2: i32) -> (i32, i32, i32) {
    %c0_i32 = arith.constant 0 : i32
    %c0_i32_0 = arith.constant 0 : i32
    %c0_i32_1 = arith.constant 0 : i32
    return %arg2, %c0_i32, %c0_i32_0 : i32, i32, i32
  }
  func.func @transform_20(%arg0: i32, %arg1: i32, %arg2: i32) -> (i32, i32, i32) {
    %c0_i32 = arith.constant 0 : i32
    %c0_i32_0 = arith.constant 0 : i32
    %c0_i32_1 = arith.constant 0 : i32
    return %arg2, %c0_i32, %c0_i32_0 : i32, i32, i32
  }
  func.func @transform_21(%arg0: i32, %arg1: i32, %arg2: i32) -> (i32, i32, i32) {
    %c0_i32 = arith.constant 0 : i32
    %c0_i32_0 = arith.constant 0 : i32
    %c0_i32_1 = arith.constant 0 : i32
    return %arg2, %c0_i32, %c0_i32_0 : i32, i32, i32
  }
  func.func @transform_22(%arg0: i32, %arg1: i32, %arg2: i32) -> (i32, i32, i32) {
    %c0_i32 = arith.constant 0 : i32
    %c0_i32_0 = arith.constant 0 : i32
    %c0_i32_1 = arith.constant 0 : i32
    return %arg2, %c0_i32, %c0_i32_0 : i32, i32, i32
  }
  func.func @transform_23(%arg0: i32, %arg1: i32, %arg2: i32) -> (i32, i32, i32) {
    %c0_i32 = arith.constant 0 : i32
    %c0_i32_0 = arith.constant 0 : i32
    %c0_i32_1 = arith.constant 0 : i32
    return %arg2, %c0_i32, %c0_i32_0 : i32, i32, i32
  }
  func.func @transform_24(%arg0: i32, %arg1: i32, %arg2: i32) -> (i32, i32, i32) {
    %c0_i32 = arith.constant 0 : i32
    %c0_i32_0 = arith.constant 0 : i32
    %c0_i32_1 = arith.constant 0 : i32
    return %arg2, %c0_i32, %c0_i32_0 : i32, i32, i32
  }
  func.func @transform_25(%arg0: i32, %arg1: i32, %arg2: i32) -> (i32, i32, i32) {
    %c0_i32 = arith.constant 0 : i32
    %c0_i32_0 = arith.constant 0 : i32
    %c0_i32_1 = arith.constant 0 : i32
    return %arg2, %c0_i32, %c0_i32_0 : i32, i32, i32
  }
  func.func @transform_26(%arg0: i32, %arg1: i32, %arg2: i32) -> (i32, i32, i32) {
    %c0_i32 = arith.constant 0 : i32
    %c0_i32_0 = arith.constant 0 : i32
    %c0_i32_1 = arith.constant 0 : i32
    return %arg2, %c0_i32, %c0_i32_0 : i32, i32, i32
  }
  func.func @transform_27(%arg0: i32, %arg1: i32, %arg2: i32) -> (i32, i32, i32) {
    %c0_i32 = arith.constant 0 : i32
    %c0_i32_0 = arith.constant 0 : i32
    %c0_i32_1 = arith.constant 0 : i32
    return %arg2, %c0_i32, %c0_i32_0 : i32, i32, i32
  }
  func.func @transform_28(%arg0: i32, %arg1: i32, %arg2: i32) -> (i32, i32, i32) {
    %c0_i32 = arith.constant 0 : i32
    %c0_i32_0 = arith.constant 0 : i32
    %c0_i32_1 = arith.constant 0 : i32
    return %arg2, %c0_i32, %c0_i32_0 : i32, i32, i32
  }
  func.func @transform_29(%arg0: i32, %arg1: i32, %arg2: i32) -> (i32, i32, i32) {
    %c0_i32 = arith.constant 0 : i32
    %c0_i32_0 = arith.constant 0 : i32
    %c0_i32_1 = arith.constant 0 : i32
    return %arg2, %c0_i32, %c0_i32_0 : i32, i32, i32
  }
  func.func @transform_30(%arg0: i32, %arg1: i32, %arg2: i32) -> (i32, i32) {
    %c0_i32 = arith.constant 0 : i32
    %c0_i32_0 = arith.constant 0 : i32
    %c0_i32_1 = arith.constant 0 : i32
    return %c0_i32, %c0_i32_0 : i32, i32
  }
  func.func @transform_31(%arg0: i32, %arg1: i32, %arg2: i32) -> (i32, i32) {
    %c0_i32 = arith.constant 0 : i32
    %c0_i32_0 = arith.constant 0 : i32
    %c0_i32_1 = arith.constant 0 : i32
    return %c0_i32, %c0_i32_0 : i32, i32
  }
  func.func @transform_32(%arg0: i32, %arg1: i32, %arg2: i32) -> (i32, i32, i32, i32, i32) {
    %c0_i32 = arith.constant 0 : i32
    %c0_i32_0 = arith.constant 0 : i32
    %c0_i32_1 = arith.constant 0 : i32
    return %arg0, %arg1, %arg2, %c0_i32, %c0_i32_0 : i32, i32, i32, i32, i32
  }
}

module attributes {stable_mosaic.version = 11 : i64} {
  func.func @_mask_kernel(%arg0: i32, %arg1: i32, %arg2: i32, %arg3: memref<1x1x16x32xf32, #tpu.memory_space<vmem>>, %arg4: memref<1x1x16x1xf32, #tpu.memory_space<vmem>>, %arg5: memref<1x1x32x256xf32, #tpu.memory_space<vmem>>, %arg6: memref<2x1x8x256xf32, #tpu.memory_space<vmem>>) attributes {dimension_semantics = [#tpu.dimension_semantics<parallel>, #tpu.dimension_semantics<parallel>, #tpu.dimension_semantics<parallel>], iteration_bounds = array<i64: 2, 2, 1>, scalar_prefetch = 0 : i64, scratch_operands = 0 : i64, tpu.core_type = #tpu.core_type<tc>, window_params = [{transform_indices = @transform_0, window_bounds = array<i64: 1, 1, 16, 32>}, {transform_indices = @transform_1, window_bounds = array<i64: 1, 1, 16, 1>}, {transform_indices = @transform_2, window_bounds = array<i64: 1, 1, 32, 256>}, {transform_indices = @transform_3, window_bounds = array<i64: 2, 1, 8, 256>}]} {
    %c0 = arith.constant 0 : index
    %c0_0 = arith.constant 0 : index
    %c0_1 = arith.constant 0 : index
    %c0_2 = arith.constant 0 : index
    %0 = vector.load %arg3[%c0, %c0_0, %c0_1, %c0_2] : memref<1x1x16x32xf32, #tpu.memory_space<vmem>>, vector<1x1x16x32xf32>
    %1 = vector.shape_cast %0 : vector<1x1x16x32xf32> to vector<16x32xf32>
    %2 = arith.truncf %1 : vector<16x32xf32> to vector<16x32xbf16>
    %c0_3 = arith.constant 0 : index
    %c0_4 = arith.constant 0 : index
    %c0_5 = arith.constant 0 : index
    %c0_6 = arith.constant 0 : index
    %3 = vector.load %arg5[%c0_3, %c0_4, %c0_5, %c0_6] : memref<1x1x32x256xf32, #tpu.memory_space<vmem>>, vector<1x1x32x256xf32>
    %4 = vector.shape_cast %3 : vector<1x1x32x256xf32> to vector<32x256xf32>
    %5 = arith.truncf %4 : vector<32x256xf32> to vector<32x256xbf16>
    %cst = arith.constant dense<0.000000e+00> : vector<16x256xf32>
    %6 = tpu.matmul %2, %5, %cst {dimension_numbers = #tpu.dot_dimension_numbers<[1], [0], [0], [1], [0, 0, 1, 1], [], []>} : vector<16x32xbf16>, vector<32x256xbf16>, vector<16x256xf32> -> vector<16x256xf32>
    %c0_7 = arith.constant 0 : index
    %c0_8 = arith.constant 0 : index
    %c0_9 = arith.constant 0 : index
    %c0_10 = arith.constant 0 : index
    %7 = vector.load %arg4[%c0_7, %c0_8, %c0_9, %c0_10] : memref<1x1x16x1xf32, #tpu.memory_space<vmem>>, vector<1x1x16x1xf32>
    %8 = vector.shape_cast %7 : vector<1x1x16x1xf32> to vector<16x1xf32>
    %9 = vector.broadcast %8 : vector<16x1xf32> to vector<16x256xf32>
    %10 = arith.addf %6, %9 : vector<16x256xf32>
    %11 = vector.shape_cast %10 : vector<16x256xf32> to vector<2x8x256xf32>
    %c0_11 = arith.constant 0 : index
    %c0_12 = arith.constant 0 : index
    %c0_13 = arith.constant 0 : index
    %c0_14 = arith.constant 0 : index
    %12 = vector.load %arg6[%c0_11, %c0_12, %c0_13, %c0_14] : memref<2x1x8x256xf32, #tpu.memory_space<vmem>>, vector<2x1x8x256xf32>
    %13 = vector.shape_cast %12 : vector<2x1x8x256xf32> to vector<2x8x256xf32>
    %14 = vector.shape_cast %11 : vector<2x8x256xf32> to vector<2x1x8x256xf32>
    tpu.vector_store %arg6[%c0_11, %c0_12, %c0_13, %c0_14], %14 {strides = array<i32>} : memref<2x1x8x256xf32, #tpu.memory_space<vmem>>, vector<2x1x8x256xf32>,
    return
  }
  func.func @transform_0(%arg0: i32, %arg1: i32, %arg2: i32) -> (i32, i32, i32, i32) {
    %c0_i32 = arith.constant 0 : i32
    %c0_i32_0 = arith.constant 0 : i32
    %c0_i32_1 = arith.constant 0 : i32
    return %arg0, %arg1, %c0_i32, %c0_i32_0 : i32, i32, i32, i32
  }
  func.func @transform_1(%arg0: i32, %arg1: i32, %arg2: i32) -> (i32, i32, i32, i32) {
    %c0_i32 = arith.constant 0 : i32
    %c0_i32_0 = arith.constant 0 : i32
    %c0_i32_1 = arith.constant 0 : i32
    return %arg0, %arg1, %c0_i32, %c0_i32_0 : i32, i32, i32, i32
  }
  func.func @transform_2(%arg0: i32, %arg1: i32, %arg2: i32) -> (i32, i32, i32, i32) {
    %c0_i32 = arith.constant 0 : i32
    %c0_i32_0 = arith.constant 0 : i32
    return %arg0, %arg1, %c0_i32, %arg2 : i32, i32, i32, i32
  }
  func.func @transform_3(%arg0: i32, %arg1: i32, %arg2: i32) -> (i32, i32, i32, i32) {
    %c1_i32 = arith.constant 1 : i32
    %0 = arith.muli %arg1, %c1_i32 : i32
    %1 = arith.addi %0, %arg2 : i32
    %c0_i32 = arith.constant 0 : i32
    %c0_i32_0 = arith.constant 0 : i32
    %c0_i32_1 = arith.constant 0 : i32
    return %c0_i32, %arg0, %c0_i32_0, %1 : i32, i32, i32, i32
  }
}

module attributes {stable_mosaic.version = 11 : i64} {
  func.func @_pred_head_kernel(%arg0: i32, %arg1: memref<1x16x32xf32, #tpu.memory_space<vmem>>, %arg2: memref<1x32xf32, #tpu.memory_space<vmem>>, %arg3: memref<1x32xf32, #tpu.memory_space<vmem>>, %arg4: memref<32x128xbf16, #tpu.memory_space<vmem>>, %arg5: memref<1x128xf32, #tpu.memory_space<vmem>>, %arg6: memref<32x32xbf16, #tpu.memory_space<vmem>>, %arg7: memref<1x32xf32, #tpu.memory_space<vmem>>, %arg8: memref<32x32xbf16, #tpu.memory_space<vmem>>, %arg9: memref<1x32xf32, #tpu.memory_space<vmem>>, %arg10: memref<32x32xbf16, #tpu.memory_space<vmem>>, %arg11: memref<1x32xf32, #tpu.memory_space<vmem>>, %arg12: memref<1x32xf32, #tpu.memory_space<vmem>>, %arg13: memref<1x1xf32, #tpu.memory_space<vmem>>, %arg14: memref<1x16x128xf32, #tpu.memory_space<vmem>>, %arg15: memref<1x16x32xf32, #tpu.memory_space<vmem>>, %arg16: memref<1x16x1xf32, #tpu.memory_space<vmem>>) attributes {dimension_semantics = [#tpu.dimension_semantics<parallel>], iteration_bounds = array<i64: 4>, scalar_prefetch = 0 : i64, scratch_operands = 0 : i64, tpu.core_type = #tpu.core_type<tc>, window_params = [{transform_indices = @transform_0, window_bounds = array<i64: 1, 16, 32>}, {pipeline_mode = #tpu.pipeline_mode<synchronous>, transform_indices = @transform_1, window_bounds = array<i64: 1, 32>}, {pipeline_mode = #tpu.pipeline_mode<synchronous>, transform_indices = @transform_2, window_bounds = array<i64: 1, 32>}, {pipeline_mode = #tpu.pipeline_mode<synchronous>, transform_indices = @transform_3, window_bounds = array<i64: 32, 128>}, {pipeline_mode = #tpu.pipeline_mode<synchronous>, transform_indices = @transform_4, window_bounds = array<i64: 1, 128>}, {pipeline_mode = #tpu.pipeline_mode<synchronous>, transform_indices = @transform_5, window_bounds = array<i64: 32, 32>}, {pipeline_mode = #tpu.pipeline_mode<synchronous>, transform_indices = @transform_6, window_bounds = array<i64: 1, 32>}, {pipeline_mode = #tpu.pipeline_mode<synchronous>, transform_indices = @transform_7, window_bounds = array<i64: 32, 32>}, {pipeline_mode = #tpu.pipeline_mode<synchronous>, transform_indices = @transform_8, window_bounds = array<i64: 1, 32>}, {pipeline_mode = #tpu.pipeline_mode<synchronous>, transform_indices = @transform_9, window_bounds = array<i64: 32, 32>}, {pipeline_mode = #tpu.pipeline_mode<synchronous>, transform_indices = @transform_10, window_bounds = array<i64: 1, 32>}, {pipeline_mode = #tpu.pipeline_mode<synchronous>, transform_indices = @transform_11, window_bounds = array<i64: 1, 32>}, {pipeline_mode = #tpu.pipeline_mode<synchronous>, transform_indices = @transform_12, window_bounds = array<i64: 1, 1>}, {transform_indices = @transform_13, window_bounds = array<i64: 1, 16, 128>}, {transform_indices = @transform_14, window_bounds = array<i64: 1, 16, 32>}, {transform_indices = @transform_15, window_bounds = array<i64: 1, 16, 1>}]} {
    %c0 = arith.constant 0 : index
    %c0_0 = arith.constant 0 : index
    %c0_1 = arith.constant 0 : index
    %0 = vector.load %arg1[%c0, %c0_0, %c0_1] : memref<1x16x32xf32, #tpu.memory_space<vmem>>, vector<1x16x32xf32>
    %1 = vector.shape_cast %0 : vector<1x16x32xf32> to vector<16x32xf32>
    %c0_2 = arith.constant 0 : index
    %c0_3 = arith.constant 0 : index
    %2 = vector.load %arg2[%c0_2, %c0_3] : memref<1x32xf32, #tpu.memory_space<vmem>>, vector<1x32xf32>
    %c0_4 = arith.constant 0 : index
    %c0_5 = arith.constant 0 : index
    %3 = vector.load %arg3[%c0_4, %c0_5] : memref<1x32xf32, #tpu.memory_space<vmem>>, vector<1x32xf32>
    %cst = arith.constant dense<0.000000e+00> : vector<16xf32>
    %4 = vector.multi_reduction <add>, %1, %cst [1] : vector<16x32xf32> to vector<16xf32>
    %5 = vector.shape_cast %4 : vector<16xf32> to vector<16x1xf32>
    %cst_6 = arith.constant 3.200000e+01 : f32
    %6 = vector.broadcast %cst_6 : f32 to vector<16x1xf32>
    %7 = arith.divf %5, %6 : vector<16x1xf32>
    %8 = vector.broadcast %7 : vector<16x1xf32> to vector<16x32xf32>
    %9 = arith.subf %1, %8 : vector<16x32xf32>
    %10 = arith.mulf %9, %9 : vector<16x32xf32>
    %cst_7 = arith.constant dense<0.000000e+00> : vector<16xf32>
    %11 = vector.multi_reduction <add>, %10, %cst_7 [1] : vector<16x32xf32> to vector<16xf32>
    %12 = vector.shape_cast %11 : vector<16xf32> to vector<16x1xf32>
    %cst_8 = arith.constant 3.200000e+01 : f32
    %13 = vector.broadcast %cst_8 : f32 to vector<16x1xf32>
    %14 = arith.divf %12, %13 : vector<16x1xf32>
    %15 = vector.broadcast %7 : vector<16x1xf32> to vector<16x32xf32>
    %16 = arith.subf %1, %15 : vector<16x32xf32>
    %cst_9 = arith.constant 9.99999974E-6 : f32
    %17 = vector.broadcast %cst_9 : f32 to vector<16x1xf32>
    %18 = arith.addf %14, %17 : vector<16x1xf32>
    %19 = math.rsqrt %18 : vector<16x1xf32>
    %20 = vector.broadcast %19 : vector<16x1xf32> to vector<16x32xf32>
    %21 = arith.mulf %16, %20 : vector<16x32xf32>
    %22 = vector.broadcast %2 : vector<1x32xf32> to vector<16x32xf32>
    %23 = arith.mulf %21, %22 : vector<16x32xf32>
    %24 = vector.broadcast %3 : vector<1x32xf32> to vector<16x32xf32>
    %25 = arith.addf %23, %24 : vector<16x32xf32>
    %26 = arith.truncf %25 : vector<16x32xf32> to vector<16x32xbf16>
    %c0_10 = arith.constant 0 : index
    %c0_11 = arith.constant 0 : index
    %27 = vector.load %arg4[%c0_10, %c0_11] : memref<32x128xbf16, #tpu.memory_space<vmem>>, vector<32x128xbf16>
    %cst_12 = arith.constant dense<0.000000e+00> : vector<16x128xf32>
    %28 = tpu.matmul %26, %27, %cst_12 {dimension_numbers = #tpu.dot_dimension_numbers<[1], [0], [0], [1], [0, 0, 1, 1], [], []>} : vector<16x32xbf16>, vector<32x128xbf16>, vector<16x128xf32> -> vector<16x128xf32>
    %c0_13 = arith.constant 0 : index
    %c0_14 = arith.constant 0 : index
    %29 = vector.load %arg5[%c0_13, %c0_14] : memref<1x128xf32, #tpu.memory_space<vmem>>, vector<1x128xf32>
    %30 = vector.broadcast %29 : vector<1x128xf32> to vector<16x128xf32>
    %31 = arith.addf %28, %30 : vector<16x128xf32>
    %c0_15 = arith.constant 0 : index
    %c0_16 = arith.constant 0 : index
    %c0_17 = arith.constant 0 : index
    %32 = vector.load %arg14[%c0_15, %c0_16, %c0_17] : memref<1x16x128xf32, #tpu.memory_space<vmem>>, vector<1x16x128xf32>
    %33 = vector.shape_cast %32 : vector<1x16x128xf32> to vector<16x128xf32>
    %34 = vector.shape_cast %31 : vector<16x128xf32> to vector<1x16x128xf32>
    tpu.vector_store %arg14[%c0_15, %c0_16, %c0_17], %34 {strides = array<i32>} : memref<1x16x128xf32, #tpu.memory_space<vmem>>, vector<1x16x128xf32>,
    %c0_18 = arith.constant 0 : index
    %c0_19 = arith.constant 0 : index
    %35 = vector.load %arg6[%c0_18, %c0_19] : memref<32x32xbf16, #tpu.memory_space<vmem>>, vector<32x32xbf16>
    %cst_20 = arith.constant dense<0.000000e+00> : vector<16x32xf32>
    %36 = tpu.matmul %26, %35, %cst_20 {dimension_numbers = #tpu.dot_dimension_numbers<[1], [0], [0], [1], [0, 0, 1, 1], [], []>} : vector<16x32xbf16>, vector<32x32xbf16>, vector<16x32xf32> -> vector<16x32xf32>
    %c0_21 = arith.constant 0 : index
    %c0_22 = arith.constant 0 : index
    %37 = vector.load %arg7[%c0_21, %c0_22] : memref<1x32xf32, #tpu.memory_space<vmem>>, vector<1x32xf32>
    %38 = vector.broadcast %37 : vector<1x32xf32> to vector<16x32xf32>
    %39 = arith.addf %36, %38 : vector<16x32xf32>
    %cst_23 = arith.constant 0.000000e+00 : f32
    %40 = vector.broadcast %cst_23 : f32 to vector<16x32xf32>
    %41 = arith.maximumf %39, %40 : vector<16x32xf32>
    %42 = arith.truncf %41 : vector<16x32xf32> to vector<16x32xbf16>
    %c0_24 = arith.constant 0 : index
    %c0_25 = arith.constant 0 : index
    %43 = vector.load %arg8[%c0_24, %c0_25] : memref<32x32xbf16, #tpu.memory_space<vmem>>, vector<32x32xbf16>
    %cst_26 = arith.constant dense<0.000000e+00> : vector<16x32xf32>
    %44 = tpu.matmul %42, %43, %cst_26 {dimension_numbers = #tpu.dot_dimension_numbers<[1], [0], [0], [1], [0, 0, 1, 1], [], []>} : vector<16x32xbf16>, vector<32x32xbf16>, vector<16x32xf32> -> vector<16x32xf32>
    %c0_27 = arith.constant 0 : index
    %c0_28 = arith.constant 0 : index
    %45 = vector.load %arg9[%c0_27, %c0_28] : memref<1x32xf32, #tpu.memory_space<vmem>>, vector<1x32xf32>
    %46 = vector.broadcast %45 : vector<1x32xf32> to vector<16x32xf32>
    %47 = arith.addf %44, %46 : vector<16x32xf32>
    %cst_29 = arith.constant 0.000000e+00 : f32
    %48 = vector.broadcast %cst_29 : f32 to vector<16x32xf32>
    %49 = arith.maximumf %47, %48 : vector<16x32xf32>
    %50 = arith.truncf %49 : vector<16x32xf32> to vector<16x32xbf16>
    %c0_30 = arith.constant 0 : index
    %c0_31 = arith.constant 0 : index
    %51 = vector.load %arg10[%c0_30, %c0_31] : memref<32x32xbf16, #tpu.memory_space<vmem>>, vector<32x32xbf16>
    %cst_32 = arith.constant dense<0.000000e+00> : vector<16x32xf32>
    %52 = tpu.matmul %50, %51, %cst_32 {dimension_numbers = #tpu.dot_dimension_numbers<[1], [0], [0], [1], [0, 0, 1, 1], [], []>} : vector<16x32xbf16>, vector<32x32xbf16>, vector<16x32xf32> -> vector<16x32xf32>
    %c0_33 = arith.constant 0 : index
    %c0_34 = arith.constant 0 : index
    %53 = vector.load %arg11[%c0_33, %c0_34] : memref<1x32xf32, #tpu.memory_space<vmem>>, vector<1x32xf32>
    %54 = vector.broadcast %53 : vector<1x32xf32> to vector<16x32xf32>
    %55 = arith.addf %52, %54 : vector<16x32xf32>
    %c0_35 = arith.constant 0 : index
    %c0_36 = arith.constant 0 : index
    %c0_37 = arith.constant 0 : index
    %56 = vector.load %arg15[%c0_35, %c0_36, %c0_37] : memref<1x16x32xf32, #tpu.memory_space<vmem>>, vector<1x16x32xf32>
    %57 = vector.shape_cast %56 : vector<1x16x32xf32> to vector<16x32xf32>
    %58 = vector.shape_cast %55 : vector<16x32xf32> to vector<1x16x32xf32>
    tpu.vector_store %arg15[%c0_35, %c0_36, %c0_37], %58 {strides = array<i32>} : memref<1x16x32xf32, #tpu.memory_space<vmem>>, vector<1x16x32xf32>,
    %c0_38 = arith.constant 0 : index
    %c0_39 = arith.constant 0 : index
    %59 = vector.load %arg12[%c0_38, %c0_39] : memref<1x32xf32, #tpu.memory_space<vmem>>, vector<1x32xf32>
    %60 = vector.broadcast %59 : vector<1x32xf32> to vector<16x32xf32>
    %61 = arith.mulf %49, %60 : vector<16x32xf32>
    %cst_40 = arith.constant dense<0.000000e+00> : vector<16xf32>
    %62 = vector.multi_reduction <add>, %61, %cst_40 [1] : vector<16x32xf32> to vector<16xf32>
    %63 = vector.shape_cast %62 : vector<16xf32> to vector<16x1xf32>
    %c0_41 = arith.constant 0 : index
    %c0_42 = arith.constant 0 : index
    %64 = vector.load %arg13[%c0_41, %c0_42] : memref<1x1xf32, #tpu.memory_space<vmem>>, vector<1x1xf32>
    %65 = vector.broadcast %64 : vector<1x1xf32> to vector<16x1xf32>
    %66 = arith.addf %63, %65 : vector<16x1xf32>
    %c0_43 = arith.constant 0 : index
    %c0_44 = arith.constant 0 : index
    %c0_45 = arith.constant 0 : index
    %67 = vector.load %arg16[%c0_43, %c0_44, %c0_45] : memref<1x16x1xf32, #tpu.memory_space<vmem>>, vector<1x16x1xf32>
    %68 = vector.shape_cast %67 : vector<1x16x1xf32> to vector<16x1xf32>
    %69 = vector.shape_cast %66 : vector<16x1xf32> to vector<1x16x1xf32>
    tpu.vector_store %arg16[%c0_43, %c0_44, %c0_45], %69 {strides = array<i32>} : memref<1x16x1xf32, #tpu.memory_space<vmem>>, vector<1x16x1xf32>,
    return
  }
  func.func @transform_0(%arg0: i32) -> (i32, i32, i32) {
    %c0_i32 = arith.constant 0 : i32
    %c0_i32_0 = arith.constant 0 : i32
    %c0_i32_1 = arith.constant 0 : i32
    return %arg0, %c0_i32, %c0_i32_0 : i32, i32, i32
  }
  func.func @transform_1(%arg0: i32) -> (i32, i32) {
    %c0_i32 = arith.constant 0 : i32
    %c0_i32_0 = arith.constant 0 : i32
    %c0_i32_1 = arith.constant 0 : i32
    return %c0_i32, %c0_i32_0 : i32, i32
  }
  func.func @transform_2(%arg0: i32) -> (i32, i32) {
    %c0_i32 = arith.constant 0 : i32
    %c0_i32_0 = arith.constant 0 : i32
    %c0_i32_1 = arith.constant 0 : i32
    return %c0_i32, %c0_i32_0 : i32, i32
  }
  func.func @transform_3(%arg0: i32) -> (i32, i32) {
    %c0_i32 = arith.constant 0 : i32
    %c0_i32_0 = arith.constant 0 : i32
    %c0_i32_1 = arith.constant 0 : i32
    return %c0_i32, %c0_i32_0 : i32, i32
  }
  func.func @transform_4(%arg0: i32) -> (i32, i32) {
    %c0_i32 = arith.constant 0 : i32
    %c0_i32_0 = arith.constant 0 : i32
    %c0_i32_1 = arith.constant 0 : i32
    return %c0_i32, %c0_i32_0 : i32, i32
  }
  func.func @transform_5(%arg0: i32) -> (i32, i32) {
    %c0_i32 = arith.constant 0 : i32
    %c0_i32_0 = arith.constant 0 : i32
    %c0_i32_1 = arith.constant 0 : i32
    return %c0_i32, %c0_i32_0 : i32, i32
  }
  func.func @transform_6(%arg0: i32) -> (i32, i32) {
    %c0_i32 = arith.constant 0 : i32
    %c0_i32_0 = arith.constant 0 : i32
    %c0_i32_1 = arith.constant 0 : i32
    return %c0_i32, %c0_i32_0 : i32, i32
  }
  func.func @transform_7(%arg0: i32) -> (i32, i32) {
    %c0_i32 = arith.constant 0 : i32
    %c0_i32_0 = arith.constant 0 : i32
    %c0_i32_1 = arith.constant 0 : i32
    return %c0_i32, %c0_i32_0 : i32, i32
  }
  func.func @transform_8(%arg0: i32) -> (i32, i32) {
    %c0_i32 = arith.constant 0 : i32
    %c0_i32_0 = arith.constant 0 : i32
    %c0_i32_1 = arith.constant 0 : i32
    return %c0_i32, %c0_i32_0 : i32, i32
  }
  func.func @transform_9(%arg0: i32) -> (i32, i32) {
    %c0_i32 = arith.constant 0 : i32
    %c0_i32_0 = arith.constant 0 : i32
    %c0_i32_1 = arith.constant 0 : i32
    return %c0_i32, %c0_i32_0 : i32, i32
  }
  func.func @transform_10(%arg0: i32) -> (i32, i32) {
    %c0_i32 = arith.constant 0 : i32
    %c0_i32_0 = arith.constant 0 : i32
    %c0_i32_1 = arith.constant 0 : i32
    return %c0_i32, %c0_i32_0 : i32, i32
  }
  func.func @transform_11(%arg0: i32) -> (i32, i32) {
    %c0_i32 = arith.constant 0 : i32
    %c0_i32_0 = arith.constant 0 : i32
    %c0_i32_1 = arith.constant 0 : i32
    return %c0_i32, %c0_i32_0 : i32, i32
  }
  func.func @transform_12(%arg0: i32) -> (i32, i32) {
    %c0_i32 = arith.constant 0 : i32
    %c0_i32_0 = arith.constant 0 : i32
    %c0_i32_1 = arith.constant 0 : i32
    return %c0_i32, %c0_i32_0 : i32, i32
  }
  func.func @transform_13(%arg0: i32) -> (i32, i32, i32) {
    %c0_i32 = arith.constant 0 : i32
    %c0_i32_0 = arith.constant 0 : i32
    %c0_i32_1 = arith.constant 0 : i32
    return %arg0, %c0_i32, %c0_i32_0 : i32, i32, i32
  }
  func.func @transform_14(%arg0: i32) -> (i32, i32, i32) {
    %c0_i32 = arith.constant 0 : i32
    %c0_i32_0 = arith.constant 0 : i32
    %c0_i32_1 = arith.constant 0 : i32
    return %arg0, %c0_i32, %c0_i32_0 : i32, i32, i32
  }
  func.func @transform_15(%arg0: i32) -> (i32, i32, i32) {
    %c0_i32 = arith.constant 0 : i32
    %c0_i32_0 = arith.constant 0 : i32
    %c0_i32_1 = arith.constant 0 : i32
    return %arg0, %c0_i32, %c0_i32_0 : i32, i32, i32
  }
}

</mosaic_0001>

<bundles_post_ra>
// kernel: query_tracker_forward.5
= control target key start
LH: loop header
LB: loop body
LE: loop exit
PB: predicated region body
PF: predicated region fallthrough
CT: control target
= control target key end

     0   :  { %s683_s12 = smov 0   ;;  %s685_s13 = smov 0   ;;  %s784_s0 = inlined_call_operand.vmem [shape: f32[2,2,16,32], index: 0, kind: input, shape index: {}]   ;;  %s785_s1 = inlined_call_operand.vmem [shape: f32[2,2,16,1], index: 1, kind: input, shape index: {}]   ;;  %s786_s2 = inlined_call_operand.vmem [shape: f32[2,2,32,256], index: 2, kind: input, shape index: {}]   ;;  %s787_s3 = inlined_call_operand.vmem [shape: f32[2,2,8,512], index: 3, kind: output, shape index: {}]  }
   0x1   :  { %s687_s14 = smov 0   ;;  %s689_s15 = smov 0  }
   0x2   :  { %s691_s16 = smov 0   ;;  %s693_s17 = smov 0  }
   0x3   :  { %s695_s18 = smov 0  }
   0x4 LB: > { %s28_s19 = sadd.s32 1, %s652_s16  ;;  %s32_s20 = sadd.s32 1, %s656_s17  ;;  %s660_s18 = sphi %s695_s18, %s13_s18   ;;  %s656_s17 = sphi %s693_s17, %s794_s17   ;;  %s652_s16 = sphi %s691_s16, %s793_s16   ;;  %s648_s15 = sphi %s689_s15, %s792_s15   ;;  %s644_s14 = sphi %s687_s14, %s791_s14   ;;  %s640_s13 = sphi %s685_s13, %s790_s13   ;;  %s636_s12 = sphi %s683_s12, %s789_s12  }
   0x5   : > { %p30_p0 = scmp.ge.s32.totalorder %s28_s19, 2  ;;  %s526_s21 = sadd.s32 4294967295, %s660_s18  }
   0x6   : > { %p139_p1 = scmp.ne.s32.totalorder %s640_s13, %s636_s12  ;;  %p140_p2 = scmp.eq.s32.totalorder %s526_s21, 3 }
   0x7   : > { %s796_s19 = smov (%p30_p0, %s28_s19), 0  ;;  %s798_s20 = smov (!%p30_p0, %s32_s20), %s656_s17 }
   0x8   : > { %s125_s22 = ssub.s32 %s652_s16, %s796_s19  ;;  %p34_p3 = scmp.ge.s32.totalorder %s798_s20, 2 }
   0x9   : > { %p530_p4 = scmp.ge.s32.totalorder %s660_s18, 1  ;;  %p729_p5 = por %p140_p2, %p139_p1 }
   0xa   : > { %p205_p6 = scmp.lt.s32.totalorder %s660_s18, 5  ;;  %s800_s20 = smov (%p34_p3, %s798_s20), 0 }
   0xb   : > { %s124_s24 = ssub.s32 %s656_s17, %s800_s20  ;;  %s129_s26 = sadd.s32 1, %s640_s13 }
   0xc   : > { %p206_p7 = pnand %p530_p4, %p205_p6  ;;  %s126_s25 = sor.u32 %s125_s22, %s124_s24 }
   0xd   : > { %p127_p8 = scmp.eq.s32.totalorder %s126_s25, 0  ;;  %p254_p9 = scmp.lt.s32.totalorder (!%p206_p7), %s648_s15, 1  ;;  %v662_v0 = vmov (!%p206_p7), 0   ;;  %vm316_vm0 = vcmask (!%p206_p7), 261120  }
   0xe   : > { %209 = sbr.rel (%p206_p7) target bundleno = 265 (0x109), region = 32  ;;  %p256_p10 = scmp.lt.s32.totalorder (!%p206_p7), %s644_s14, 1  ;;  %352 = vmatprep.mubr.bf16.mxu0 (!%p206_p7), %v662_v0  ;;  %605 = vset.pattern.permute.xlu0 (!%p206_p7), %v662_v0 }
   0xf   : > { %s740_s27 = scalar_select %p127_p8, %s640_s13, %s129_s26  }
  0x15   : > { %s255_s28 = scalar_select %p254_p9, %s648_s15, 1 }
  0x16   : > { %s257_s29 = scalar_select %p256_p10, %s644_s14, 1 }
  0x17   : > { %s539_s30 = sshll.u32 %s255_s28, 4  ;;  %s533_s4 = sshll.u32 %s255_s28, 2 }
  0x18   : > { %s538_s5 = sshll.u32 %s257_s29, 3  ;;  %s532_s6 = sshll.u32 %s257_s29, 1 }
  0x19   : > { %s282_s7 = sadd.s32 %s539_s30, %s538_s5  ;;  %s260_s8 = sadd.s32 %s533_s4, %s532_s6 }
  0x1a   : > { %s540_s9 = sshll.u32 %s282_s7, 3  ;;  %s534_s10 = sshll.u32 %s260_s8, 3 }
  0x1b   : > { %s284_s22 = scalar_lea.vmem %s786_s2, %s540_s9  ;;  %s271_s26 = scalar_lea.vmem %s785_s1, %s534_s10 }
  0x1c   : > { %v293_v1 = vld [vmem:[%s284_s22 + $0x8] sm:$0xff]  ;;  %v295_v2 = vld [vmem:[%s284_s22 + $0x18] sm:$0xff]  ;;  %v292_v3 = vld [vmem:[%s284_s22] sm:$0xff]  ;;  %s262_s30 = scalar_lea.vmem %s784_s0, %s534_s10  ;;  %s251_s4 = sand.u32 1, %s636_s12  }
  0x1d   : > { %v301_v4 = vpack.c.bf16 %v295_v2, %v293_v1  ;;  %v294_v5 = vld [vmem:[%s284_s22 + $0x10] sm:$0xff]  ;;  %v297_v6 = vld [vmem:[%s284_s22 + $0x28] sm:$0xff]  ;;  %v299_v7 = vld [vmem:[%s284_s22 + $0x38] sm:$0xff]  ;;  %s531_s5 = sshll.u32 %s251_s4, 5  ;;  %s543_s12 = sshll.u32 (%p729_p5), %s644_s14, 1 }
  0x1e   : > { %v300_v8 = vpack.c.bf16 %v294_v5, %v292_v3  ;;  %v303_v9 = vpack.c.bf16 %v299_v7, %v297_v6  ;;  %v296_v10 = vld [vmem:[%s284_s22 + $0x20] sm:$0xff]  ;;  %v298_v11 = vld [vmem:[%s284_s22 + $0x30] sm:$0xff]  ;;  %v290_v15 = vld [vmem:[%s262_s30 + $0x8] sm:$0xff]  ;;  %s253_s6 = scalar_lea.vmem [#allocation2], %s531_s5  ;;  %s544_s7 = sshll.u32 (%p729_p5), %s648_s15, 2 }
  0x1f   : > { %320 = vmatprep.subr.bf16.mxu0 %v301_v4  ;;  %v304_v12 = vld [vmem:[%s271_s26] sm:$0xff]  ;;  %v302_v13 = vpack.c.bf16 %v298_v11, %v296_v10  ;;  %v305_v16 = vld [vmem:[%s271_s26 + $0x8] sm:$0xff]  ;;  %s377_s8 = sadd.s32 (%p729_p5), %s544_s7, %s543_s12 }
  0x20   : > { %321 = vmatpush1.bf16.msra.mxu0 %v300_v8  ;;  %v289_v14 = vld [vmem:[%s262_s30] sm:$0xff]  ;;  %308 = vperm.xlu0 %605, %v304_v12   ;;  %s545_s9 = sshll.u32 (%p729_p5), %s377_s8, 3 }
  0x21   : > { %322 = vmatprep.subr.bf16.mxu0 %v303_v9  ;;  %v291_v17 = vpack.c.bf16 %v290_v15, %v289_v14  ;;  %s379_s21 = scalar_lea.vmem (%p729_p5), %s787_s3, %s545_s9 }
  0x24   : > { %323 = vmatpush1.bf16.msra.mxu0 %v302_v13  ;;  %313 = vperm.xlu0 %605, %v305_v16  }
  0x27   : > { %541 = vmatmul.mubr.msk.bf16.vlgmr.msra.gmra.mrb[0].mxu0 %vm316_vm0, %v291_v17 }
  0x9f   : > { %v309_v18 = vpop.permute.xlu0 %308 }
  0xa3   : > { %v314_v22 = vpop.permute.xlu0 %313 }
  0xfa   : > { %v354_v19 = vpop.f32.mrb[0].mxu0  ;;  %373 = sbr.rel (!%p729_p5) target bundleno = 265 (0x109), region = 36 }
  0xfb   : > { %v355_v20 = vadd.f32 %v354_v19, %v309_v18  ;;  %v356_v21 = vpop.f32.mrb[1].mxu0 }
  0xfc   : > { %v357_v23 = vadd.f32 %v356_v21, %v309_v18  ;;  %v358_v24 = vpop.f32.mrb[2].mxu0 }
  0xfd   : > { %363 = vst [vmem:[%s253_s6] sm:$0xff] %v355_v20  ;;  %v359_v25 = vadd.f32 %v358_v24, %v314_v22  ;;  %v360_v26 = vpop.f32.mrb[3].mxu0 }
  0xfe   : > { %364 = vst [vmem:[%s253_s6 + $0x8] sm:$0xff] %v357_v23  ;;  %v361_v27 = vadd.f32 %v360_v26, %v314_v22 }
  0xff   : > { %365 = vst [vmem:[%s253_s6 + $0x10] sm:$0xff] %v359_v25 }
 0x100   : > { %366 = vst [vmem:[%s253_s6 + $0x18] sm:$0xff] %v361_v27 }
 0x104   : > { %v392_v28 = vld [vmem:[%s253_s6] sm:$0xff] }
 0x105   : > { %v394_v29 = vld [vmem:[%s253_s6 + $0x8] sm:$0xff]  ;;  %393 = vst [vmem:[%s379_s21] sm:$0xff] %v392_v28 }
 0x106   : > { %v396_v30 = vld [vmem:[%s253_s6 + $0x10] sm:$0xff]  ;;  %395 = vst [vmem:[%s379_s21 + $0x8] sm:$0xff] %v394_v29 }
 0x107   : > { %v398_v31 = vld [vmem:[%s253_s6 + $0x18] sm:$0xff]  ;;  %397 = vst [vmem:[%s379_s21 + $0x40] sm:$0xff] %v396_v30 }
 0x108   : > { %399 = vst [vmem:[%s379_s21 + $0x48] sm:$0xff] %v398_v31 }
 0x109 PF: > { %s13_s18 = sadd.s32 1, %s660_s18   ;;  %s789_s12 = smov %s640_s13 }
 0x10a   : > { %p10_p11 = scmp.ge.s32.totalorder %s13_s18, 6   ;;  %s790_s13 = smov %s740_s27 }
 0x10b   : > { %s791_s14 = smov %s652_s16  ;;  %s792_s15 = smov %s656_s17 }
 0x10c   : > { %s793_s16 = smov %s796_s19  ;;  %s794_s17 = smov %s800_s20 }
 0x10d   :  { %12 = sbr.rel (!%p10_p11) target bundleno = 4 (0x4), region = 91 }

// kernel: query_tracker_forward.4
= control target key start
LH: loop header
LB: loop body
LE: loop exit
PB: predicated region body
PF: predicated region fallthrough
CT: control target
= control target key end

     0   :  { %s1505_s0 = inlined_call_operand.vmem [shape: f32[4,16,32], index: 0, kind: input, shape index: {}]   ;;  %s1506_s1 = inlined_call_operand.vmem [shape: f32[1,32], index: 1, kind: input, shape index: {}]   ;;  %s1507_s2 = inlined_call_operand.vmem [shape: f32[1,32], index: 2, kind: input, shape index: {}]   ;;  %s1508_s3 = inlined_call_operand.vmem [shape: bf16[32,128], index: 3, kind: input, shape index: {}]   ;;  %s1509_s4 = inlined_call_operand.vmem [shape: f32[1,128], index: 4, kind: input, shape index: {}]   ;;  %s1510_s5 = inlined_call_operand.vmem [shape: bf16[32,32], index: 5, kind: input, shape index: {}]   ;;  %s1511_s6 = inlined_call_operand.vmem [shape: f32[1,32], index: 6, kind: input, shape index: {}]   ;;  %s1512_s7 = inlined_call_operand.vmem [shape: bf16[32,32], index: 7, kind: input, shape index: {}]   ;;  %s1513_s8 = inlined_call_operand.vmem [shape: f32[1,32], index: 8, kind: input, shape index: {}]   ;;  %s1514_s9 = inlined_call_operand.vmem [shape: bf16[32,32], index: 9, kind: input, shape index: {}]   ;;  %s1515_s10 = inlined_call_operand.hbm [shape: f32[1,32], index: 10, kind: input, shape index: {}]   ;;  %s1516_s11 = inlined_call_operand.hbm [shape: f32[1,32], index: 11, kind: input, shape index: {}]   ;;  %s1517_s12 = inlined_call_operand.<no memory space> [shape: f32[1,1], index: 12, kind: input, shape index: {}]   ;;  %s1518_s13 = inlined_call_operand.vmem [shape: f32[4,16,128], index: 13, kind: output, shape index: {0}]   ;;  %s1519_s14 = inlined_call_operand.vmem [shape: f32[4,16,32], index: 14, kind: output, shape index: {1}]   ;;  %s1520_s15 = inlined_call_operand.vmem [shape: f32[4,16,1], index: 15, kind: output, shape index: {2}]  }
   0x1   :  { %v21_v0 = vstv %s1517_s12 }
   0x2   :  { %22 = vst [vmem:[#allocation2] sm:$0x1] %v21_v0 }
   0x3   :  { %23 = vsyncpa [#allocation4], 0 }
   0x4   :  { %24 = vsyncpa [#allocation6], 0  ;;  %s1332_s20 = smov 0  }
   0x5 LB: > { %s1338_s21 = sadd.s32 4294967295, %s1243_s20   ;;  %p1045_p0 = scmp.ge.s32.totalorder %s1243_s20, 1  ;;  %s1243_s20 = sphi %s1332_s20, %s30_s20  }
   0x6   : > { %p391_p1 = scmp.lt.s32.totalorder %s1243_s20, 5  ;;  %p1521_p2 = scmp.eq.s32.totalorder %s1338_s21, 0 }
   0x7   : > { %s1245_s22 = smov [#allocation3]   ;;  %s1246_s24 = smov [#allocation5]  }
   0x8   : > { %p1343_p3 = pnand %p1045_p0, %p391_p1  ;;  %s431_s23 = sshll.u32 %s1245_s22, 4  ;;  %s432_s23 = int_to_ptr.vmem [resolvable:$true] %s431_s23 }
   0x9   : > { %s442_s25 = sshll.u32 %s1246_s24, 4  ;;  %s1173_s29 = scalar_lea.hbm %s1515_s10, 16  ;;  %s1355_s25 = int_to_ptr.vmem [resolvable:$true] %s442_s25 }
   0xa   : > { %s1523_s12 = scalar_select %p1343_p3, 1, 0 }
   0xb   : > { %p1138_p4 = pneg %p1343_p3  ;;  %p1174_p6 = scmp.ne.s32.totalorder %s1515_s10, %s1173_s29 }
   0xc   : > { %p1180_p10 = scmp.lt.u32.totalorder %s1173_s29, %s1515_s10 }
   0xd   : > { %p1351_p5 = pnand %p1521_p2, %p1138_p4 }
   0xf   : > { %p1175_p7 = pneg %p1351_p5 }
  0x11   : > { %p1176_p8 = pnand %p1175_p7, %p1174_p6 }
  0x13   : > { %p1177_p9 = pneg %p1176_p8 }
  0x15   : > { %p1182_p11 = pnand %p1180_p10, %p1177_p9 }
  0x17   : > { %1185 = shalt.err (!%p1182_p11)
}
  0x18   : > { %s1186_s19 = scalar_lea.vmem %s432_s23, 16  ;;  %s1193_s22 = scalar_lea.vmem %s432_s23, 32 }
  0x19   : > { %p1187_p12 = scmp.ne.s32.totalorder %s432_s23, %s1186_s19  ;;  %p1194_p1 = scmp.lt.s32.totalorder %s432_s23, %s432_s23 }
  0x1a   : > { %p1195_p4 = scmp.lt.s32.totalorder %s1193_s22, %s1186_s19 }
  0x1b   : > { %p1189_p13 = pnand %p1187_p12, %p1175_p7 }
  0x1c   : > { %p1196_p2 = por %p1195_p4, %p1194_p1 }
  0x1d   : > { %p1190_p0 = pneg %p1189_p13 }
  0x1f   : > { %p1197_p3 = pnand %p1196_p2, %p1190_p0 }
  0x21   : > { %1200 = shalt.err (!%p1197_p3)
}
  0x22   : > { %1141 = dma.hbm_to_vmem [thread:$0]  (!%p1351_p5), %s1515_s10, 16, %s432_s23, [#allocation4]  }
  0x23   : > { %s1201_s30 = scalar_lea.hbm %s1516_s11, 16 }
  0x24   : > { %p1202_p6 = scmp.ne.s32.totalorder %s1516_s11, %s1201_s30  ;;  %p1208_p3 = scmp.lt.u32.totalorder %s1201_s30, %s1516_s11 }
  0x26   : > { %p1204_p8 = pnand %p1202_p6, %p1175_p7 }
  0x28   : > { %p1205_p2 = pneg %p1204_p8 }
  0x2a   : > { %p1210_p9 = pnand %p1208_p3, %p1205_p2 }
  0x2c   : > { %1213 = shalt.err (!%p1210_p9)
}
  0x2d   : > { %s1214_s23 = scalar_lea.vmem %s1355_s25, 16  ;;  %s1221_s22 = scalar_lea.vmem %s1355_s25, 32 }
  0x2e   : > { %p1215_p10 = scmp.ne.s32.totalorder %s1355_s25, %s1214_s23  ;;  %p1222_p13 = scmp.lt.s32.totalorder %s1355_s25, %s1355_s25 }
  0x2f   : > { %p1223_p0 = scmp.lt.s32.totalorder %s1221_s22, %s1214_s23 }
  0x30   : > { %p1217_p11 = pnand %p1215_p10, %p1175_p7 }
  0x31   : > { %p1224_p1 = por %p1223_p0, %p1222_p13 }
  0x32   : > { %p1218_p12 = pneg %p1217_p11 }
  0x34   : > { %p1225_p4 = pnand %p1224_p1, %p1218_p12 }
  0x36   : > { %1228 = shalt.err (!%p1225_p4)
}
  0x37   : > { %1144 = dma.hbm_to_vmem [thread:$0]  (!%p1351_p5), %s1516_s11, 16, %s1355_s25, [#allocation6]  }
  0x38   : > { %p1525_p6 = scmp.ne.s32.totalorder %s1523_s12, 0 }
  0x39   : > { %p1526_p7 = scmp.eq.s32.totalorder (!%p1525_p6), %s1338_s21, 0 }
  0x3a   : > { %466 = sbr.rel (%p1525_p6) target bundleno = 1051 (0x41b), region = 72 }
  0x41   : > { %1234 = dma.done.wait (%p1526_p7), [#allocation4], 16   ;;  %p1527_p8 = pmov %p1526_p7 }
  0x42   : > { %p1528_p2 = pmov %p1526_p7 }
  0x43   : > { %1236 = vsyncadd (%p1527_p8), [#allocation4], 4294967280 }
  0x44   : > { %1238 = dma.done.wait (%p1528_p2), [#allocation6], 16   ;;  %p1529_p3 = pmov %p1528_p2 }
  0x45   : > { %p528_p9 = scmp.lt.s32.totalorder %s1338_s21, 3  ;;  %vm553_vm0 = vcmask 261120   ;;  %v1161_v15 = vld [vmem:[%s1508_s3] sm:$0xff]   ;;  %v1247_v17 = vmov 0.0   ;;  %v1163_v18 = vld [vmem:[%s1508_s3 + $0x8] sm:$0xff]   ;;  %vm1248_vm1 = vmmov 0  }
  0x46   : > { %1240 = vsyncadd (%p1529_p3), [#allocation6], 4294967280  ;;  %v1162_v16 = vld [vmem:[%s1510_s5] sm:$0xff]   ;;  %1098 = vmatprep.subr.bf16.mxu0 %v1247_v17  ;;  %1106 = vmatprep.subr.bf16.mxu1 %v1247_v17  ;;  %v1164_v19 = vld [vmem:[%s1510_s5 + $0x8] sm:$0xff]   ;;  %vm897_vm2 = vcmask 7168  }
  0x47   : > { %s1531_s21 = smov (!%p528_p9, %s1338_s21), 3  ;;  %1099 = vmatpush3.bf16.msra.mxu0 %v1161_v15  ;;  %1107 = vmatpush3.bf16.msra.mxu1 %v1162_v16  ;;  %v1060_v28 = vld [vmem:[%s1506_s1] ss:$0 sm:$0xff]  ;;  %v1166_v38 = vld [vmem:[%s1512_s7 + $0x8] sm:$0xff]   ;;  %v1078_v63 = vld [vmem:[#allocation5] ss:$0 sm:$0xff] }
  0x48   : > { %s1417_s25 = sshll.u32 %s1531_s21, 4  ;;  %1100 = vmatprep.subr.bf16.mxu0 %v1247_v17  ;;  %1108 = vmatprep.subr.bf16.mxu1 %v1247_v17  ;;  %v1061_v32 = vld [vmem:[%s1507_s2] ss:$0 sm:$0xff]  ;;  %v1168_v57 = vld [vmem:[%s1514_s9 + $0x8] sm:$0xff]  }
  0x49   : > { %s532_s28 = scalar_lea.vmem %s1505_s0, %s1417_s25  ;;  %1102 = vmatprep.mubr.msk.bf16.mxu0 %vm1248_vm1, %v1247_v17  ;;  %1110 = vmatprep.mubr.msk.bf16.mxu1 %vm1248_vm1, %v1247_v17  ;;  %v1165_v37 = vld [vmem:[%s1512_s7] sm:$0xff]   ;;  %s537_s22 = scalar_lea.vmem %s1518_s13, %s1417_s25 }
  0x4a   : > { %v549_v1 = vld [vmem:[%s532_s28] sm:$0xff]  ;;  %v550_v2 = vld [vmem:[%s532_s28 + $0x8] sm:$0xff]  ;;  %s547_s16 = scalar_lea.vmem %s1520_s15, %s1417_s25  ;;  %s542_s19 = scalar_lea.vmem %s1519_s14, %s1417_s25 }
  0x4b   : > { %v554_v3 = vsel %vm553_vm0, %v549_v1, 0.0  ;;  %v557_v4 = vsel %vm553_vm0, %v550_v2, 0.0  ;;  %1101 = vmatpush3.bf16.msra.mxu0 %v1163_v18  ;;  %1109 = vmatpush3.bf16.msra.mxu1 %v1164_v19  ;;  %v1062_v39 = vld [vmem:[%s1509_s4] ss:$0 sm:$0xff] }
  0x4c   : > { %555 = vadd.xlane.f32.xlu0 %v554_v3  ;;  %1114 = vmatprep.subr.bf16.mxu0 %v1247_v17  ;;  %v1066_v40 = vld [vmem:[%s1511_s6] ss:$0 sm:$0xff] }
  0x4d   : > { %1122 = vmatprep.subr.bf16.mxu1 %v1247_v17  ;;  %v1167_v56 = vld [vmem:[%s1514_s9] sm:$0xff]  }
  0x4e   : > { %v1070_v58 = vld [vmem:[%s1513_s8] ss:$0 sm:$0xff] }
  0x50   : > { %558 = vadd.xlane.f32.xlu0 %v557_v4 }
  0xd9   : > { %v556_v5 = vpop.xlane.xlu0 %555 }
  0xda   : > { %v561_v6 = vmul.f32 0.03125, %v556_v5 }
  0xdc   : > { %v563_v7 = vsub.f32 %v549_v1, %v561_v6 }
  0xdd   : > { %v559_v8 = vpop.xlane.xlu0 %558 }
  0xde   : > { %v562_v9 = vmul.f32 0.03125, %v559_v8  ;;  %v565_v10 = vmul.f32 %v563_v7, %v563_v7 }
  0xe0   : > { %v564_v11 = vsub.f32 %v550_v2, %v562_v9  ;;  %v567_v12 = vsel %vm553_vm0, %v565_v10, 0.0  ;;  %v1079_v9 = vld [vmem:[#allocation2] ss:$0 sm:$0xff] }
  0xe1   : > { %568 = vadd.xlane.f32.xlu1 %v567_v12 }
  0xe2   : > { %v566_v13 = vmul.f32 %v564_v11, %v564_v11 }
  0xe4   : > { %v570_v14 = vsel %vm553_vm0, %v566_v13, 0.0 }
  0xe5   : > { %571 = vadd.xlane.f32.xlu1 %v570_v14  ;;  %v1074_v14 = vld [vmem:[#allocation3] ss:$0 sm:$0xff] }
 0x16e   : > { %v569_v20 = vpop.xlane.xlu1 %568 }
 0x16f   : > { %v573_v21 = vmul.f32 0.03125, %v569_v20 }
 0x171   : > { %v575_v22 = vadd.f32 1e-05, %v573_v21 }
 0x172   : > { %v572_v23 = vpop.xlane.xlu1 %571 }
 0x173   : > { %1169 = vrsqrt.f32 %v575_v22  ;;  %v574_v24 = vmul.f32 0.03125, %v572_v23 }
 0x175   : > { %v576_v25 = vadd.f32 1e-05, %v574_v24 }
 0x177   : > { %1171 = vrsqrt.f32 %v576_v25 }
 0x17d   : > { %v1170_v26 = vpop.eup %1169 }
 0x17e   : > { %v579_v27 = vmul.f32 %v1170_v26, %v563_v7 }
 0x180   : > { %v587_v31 = vmul.f32 %v1060_v28, %v579_v27 }
 0x181   : > { %v1172_v29 = vpop.eup %1171 }
 0x182   : > { %v580_v30 = vmul.f32 %v1172_v29, %v564_v11  ;;  %v595_v34 = vadd.f32 %v1061_v32, %v587_v31 }
 0x184   : > { %v588_v33 = vmul.f32 %v1060_v28, %v580_v30 }
 0x186   : > { %v596_v35 = vadd.f32 %v1061_v32, %v588_v33 }
 0x188   : > { %v597_v36 = vpack.c.bf16 %v596_v35, %v595_v34 }
 0x18a   : > { %1103 = vmatmul.mubr.msk.bf16.vlgmr.msra.gmra.mrb[0].mxu0 %vm553_vm0, %v597_v36  ;;  %1111 = vmatmul.mubr.msk.bf16.vlgmr.msra.gmra.mrb[0].mxu1 %vm553_vm0, %v597_v36 }
 0x18b   : > { %1118 = vmatprep.mubr.msk.bf16.mxu0 %vm1248_vm1, %v1247_v17  ;;  %1126 = vmatprep.mubr.msk.bf16.mxu1 %vm1248_vm1, %v1247_v17 }
 0x18c   : > { %1115 = vmatpush3.bf16.msra.mxu0 %v1165_v37  ;;  %1123 = vmatpush3.bf16.msra.mxu1 %v1167_v56 }
 0x18d   : > { %1116 = vmatprep.subr.bf16.mxu0 %v1247_v17  ;;  %1124 = vmatprep.subr.bf16.mxu1 %v1247_v17 }
 0x190   : > { %1117 = vmatpush3.bf16.msra.mxu0 %v1166_v38  ;;  %1125 = vmatpush3.bf16.msra.mxu1 %v1168_v57 }
 0x25d   : > { %v658_v41 = vpop.f32.mrb[0].mxu0  ;;  %v724_v42 = vpop.f32.mrb[0].mxu1 }
 0x25e   : > { %v659_v43 = vadd.f32 %v1062_v39, %v658_v41  ;;  %v725_v44 = vadd.f32 %v1066_v40, %v724_v42  ;;  %v1104_v45 = vpop.f32.mrb[1].mxu0  ;;  %v1112_v46 = vpop.f32.mrb[1].mxu1 }
 0x25f   : > { %v661_v47 = vpop.f32.mrb[2].mxu0  ;;  %v727_v48 = vpop.f32.mrb[2].mxu1 }
 0x260   : > { %665 = vst [vmem:[%s537_s22] sm:$0xff] %v659_v43  ;;  %v662_v49 = vadd.f32 %v1062_v39, %v661_v47  ;;  %v728_v50 = vadd.f32 %v1066_v40, %v727_v48  ;;  %v1105_v51 = vpop.f32.mrb[3].mxu0  ;;  %v1113_v52 = vpop.f32.mrb[3].mxu1  ;;  %v731_v53 = vmax.f32 %v725_v44, 0.0 }
 0x262   : > { %666 = vst [vmem:[%s537_s22 + $0x8] sm:$0xff] %v662_v49  ;;  %v732_v54 = vmax.f32 %v728_v50, 0.0 }
 0x264   : > { %v733_v55 = vpack.c.bf16 %v732_v54, %v731_v53 }
 0x266   : > { %1119 = vmatmul.mubr.msk.bf16.vlgmr.msra.gmra.mrb[4].mxu0 %vm553_vm0, %v733_v55 }
 0x339   : > { %v794_v59 = vpop.f32.mrb[4].mxu0 }
 0x33a   : > { %v795_v60 = vadd.f32 %v1070_v58, %v794_v59  ;;  %v1120_v61 = vpop.f32.mrb[5].mxu0 }
 0x33b   : > { %v797_v62 = vpop.f32.mrb[6].mxu0 }
 0x33c   : > { %v801_v0 = vmax.f32 %v795_v60, 0.0  ;;  %v798_v1 = vadd.f32 %v1070_v58, %v797_v62  ;;  %v1121_v2 = vpop.f32.mrb[7].mxu0 }
 0x33e   : > { %v802_v3 = vmax.f32 %v798_v1, 0.0  ;;  %v880_v4 = vmul.f32 %v1078_v63, %v801_v0 }
 0x340   : > { %v803_v5 = vpack.c.bf16 %v802_v3, %v801_v0  ;;  %v882_v6 = vsel %vm553_vm0, %v880_v4, 0.0  ;;  %v881_v7 = vmul.f32 %v1078_v63, %v802_v3 }
 0x341   : > { %883 = vadd.xlane.f32.xlu0 %v882_v6 }
 0x342   : > { %1127 = vmatmul.mubr.msk.bf16.vlgmr.msra.gmra.mrb[4].mxu1 %vm553_vm0, %v803_v5  ;;  %v885_v8 = vsel %vm553_vm0, %v881_v7, 0.0 }
 0x343   : > { %886 = vadd.xlane.f32.xlu1 %v885_v8 }
 0x3ce   : > { %v884_v10 = vpop.xlane.xlu0 %883 }
 0x3cf   : > { %v895_v11 = vadd.f32 %v1079_v9, %v884_v10 }
 0x3d0   : > { %v887_v12 = vpop.xlane.xlu1 %886 }
 0x3d1   : > { %898 = vst.msk [vmem:[%s547_s16] sm:$0xff] %vm897_vm2, %v895_v11  ;;  %v896_v13 = vadd.f32 %v1079_v9, %v887_v12 }
 0x3d3   : > { %899 = vst.msk [vmem:[%s547_s16 + $0x8] sm:$0xff] %vm897_vm2, %v896_v13 }
 0x415   : > { %v864_v15 = vpop.f32.mrb[4].mxu1 }
 0x416   : > { %v865_v16 = vadd.f32 %v1074_v14, %v864_v15  ;;  %v1128_v17 = vpop.f32.mrb[5].mxu1 }
 0x417   : > { %v867_v18 = vpop.f32.mrb[6].mxu1 }
 0x418   : > { %871 = vst.msk [vmem:[%s542_s19] sm:$0xff] %vm553_vm0, %v865_v16  ;;  %v868_v19 = vadd.f32 %v1074_v14, %v867_v18  ;;  %v1129_v20 = vpop.f32.mrb[7].mxu1 }
 0x41a   : > { %872 = vst.msk [vmem:[%s542_s19 + $0x8] sm:$0xff] %vm553_vm0, %v868_v19 }
 0x41b PF: > { %s30_s20 = sadd.s32 1, %s1243_s20  }
 0x41c   : > { %p27_p5 = scmp.ge.s32.totalorder %s30_s20, 6  }
 0x41e   :  { %29 = sbr.rel (!%p27_p5) target bundleno = 5 (0x5), region = 135 }
 0x425   :  { %953 = vsyncpa [#allocation4], 1 }
 0x426   :  { %955 = vsyncpa [#allocation4 + $0x1], 1 }
 0x427   :  { %956 = vsyncpa [#allocation6], 1 }

// kernel: squeeze.9
= control target key start
LH: loop header
LB: loop body
LE: loop exit
PB: predicated region body
PF: predicated region fallthrough
CT: control target
= control target key end

     0   :  { %vm156_vm0 = vcmask 1047556   ;;  %s1028_s16 = smov 112   ;;  %s1029_s26 = smov 96   ;;  %s1664_s0 = inlined_call_operand.vmem [shape: f32[1,2,8,512], index: 0, kind: input, shape index: {}]   ;;  %s1665_s1 = inlined_call_operand.hbm [shape: f32[2,8,2,16,16], index: 1, kind: output, shape index: {}]  }
   0x1   :  { %v894_v0 = vld [vmem:[%s1664_s0 + $0x4] ss:$8 sm:$0xf]   ;;  %v895_v1 = vld [vmem:[%s1664_s0 - $0x1b] ss:$8 sm:$0xf0]  }
   0x2   :  { %v153_v2 = vld [vmem:[%s1664_s0] ss:$8 sm:$0xf]   ;;  %v183_v3 = vsel %vm156_vm0, %v895_v1, %v894_v0  ;;  %v891_v4 = vld [vmem:[%s1664_s0 - $0x1f] ss:$8 sm:$0xf0]  }
   0x3   :  { %v896_v5 = vld [vmem:[%s1664_s0 + $0x6] ss:$8 sm:$0xf]   ;;  %184 = vrot.lane.b32.xlu1 %v183_v3, %s1028_s16  ;;  %v157_v6 = vsel %vm156_vm0, %v891_v4, %v153_v2  ;;  %v897_v7 = vld [vmem:[%s1664_s0 - $0x19] ss:$8 sm:$0xf0]  }
   0x4   :  { %v892_v8 = vld [vmem:[%s1664_s0 + $0x2] ss:$8 sm:$0xf]   ;;  %158 = vrot.lane.b32.xlu0 %v157_v6, %s1028_s16  ;;  %v196_v9 = vsel %vm156_vm0, %v897_v7, %v896_v5  ;;  %v893_v10 = vld [vmem:[%s1664_s0 - $0x1d] ss:$8 sm:$0xf0]  }
   0x5   :  { %v170_v11 = vsel %vm156_vm0, %v893_v10, %v892_v8  ;;  %v900_v12 = vld [vmem:[%s1664_s0 + $0x22] ss:$8 sm:$0xf]   ;;  %v901_v13 = vld [vmem:[%s1664_s0 + $0x3] ss:$8 sm:$0xf0]  }
   0x6   :  { %v898_v14 = vld [vmem:[%s1664_s0 + $0x20] ss:$8 sm:$0xf]   ;;  %v899_v15 = vld [vmem:[%s1664_s0 + $0x1] ss:$8 sm:$0xf0]   ;;  %v222_v16 = vsel %vm156_vm0, %v901_v13, %v900_v12 }
   0x7   :  { %197 = vrot.lane.b32.xlu1 %v196_v9, %s1028_s16  ;;  %v209_v17 = vsel %vm156_vm0, %v899_v15, %v898_v14  ;;  %v904_v18 = vld [vmem:[%s1664_s0 + $0x26] ss:$8 sm:$0xf]   ;;  %v905_v19 = vld [vmem:[%s1664_s0 + $0x7] ss:$8 sm:$0xf0]  }
   0x8   :  { %171 = vrot.lane.b32.xlu0 %v170_v11, %s1028_s16  ;;  %v902_v20 = vld [vmem:[%s1664_s0 + $0x24] ss:$8 sm:$0xf]   ;;  %v903_v21 = vld [vmem:[%s1664_s0 + $0x5] ss:$8 sm:$0xf0]   ;;  %v248_v22 = vsel %vm156_vm0, %v905_v19, %v904_v18 }
   0x9   :  { %v235_v23 = vsel %vm156_vm0, %v903_v21, %v902_v20  ;;  %v907_v24 = vld [vmem:[%s1664_s0 + $0x2] ss:$8 sm:$0xf]   ;;  %v908_v25 = vld [vmem:[%s1664_s0 - $0x1d] ss:$8 sm:$0xf0]  }
   0xa   :  { %v256_v26 = vld [vmem:[%s1664_s0] ss:$8 sm:$0xf]   ;;  %v906_v27 = vld [vmem:[%s1664_s0 - $0x1f] ss:$8 sm:$0xf0]   ;;  %v273_v28 = vsel %vm156_vm0, %v908_v25, %v907_v24 }
   0xb   :  { %223 = vrot.lane.b32.xlu1 %v222_v16, %s1028_s16  ;;  %v260_v29 = vsel %vm156_vm0, %v906_v27, %v256_v26  ;;  %v911_v30 = vld [vmem:[%s1664_s0 + $0x6] ss:$8 sm:$0xf]   ;;  %v912_v31 = vld [vmem:[%s1664_s0 - $0x19] ss:$8 sm:$0xf0]  }
   0xc   :  { %210 = vrot.lane.b32.xlu0 %v209_v17, %s1028_s16  ;;  %v909_v32 = vld [vmem:[%s1664_s0 + $0x4] ss:$8 sm:$0xf]   ;;  %v910_v33 = vld [vmem:[%s1664_s0 - $0x1b] ss:$8 sm:$0xf0]   ;;  %v299_v34 = vsel %vm156_vm0, %v912_v31, %v911_v30 }
   0xd   :  { %v286_v35 = vsel %vm156_vm0, %v910_v33, %v909_v32  ;;  %v915_v36 = vld [vmem:[%s1664_s0 + $0x22] ss:$8 sm:$0xf]   ;;  %v916_v37 = vld [vmem:[%s1664_s0 + $0x3] ss:$8 sm:$0xf0]  }
   0xe   :  { %v913_v38 = vld [vmem:[%s1664_s0 + $0x20] ss:$8 sm:$0xf]   ;;  %v914_v39 = vld [vmem:[%s1664_s0 + $0x1] ss:$8 sm:$0xf0]   ;;  %v325_v40 = vsel %vm156_vm0, %v916_v37, %v915_v36 }
   0xf   :  { %249 = vrot.lane.b32.xlu1 %v248_v22, %s1028_s16  ;;  %v312_v41 = vsel %vm156_vm0, %v914_v39, %v913_v38  ;;  %v919_v42 = vld [vmem:[%s1664_s0 + $0x26] ss:$8 sm:$0xf]   ;;  %v920_v43 = vld [vmem:[%s1664_s0 + $0x7] ss:$8 sm:$0xf0]  }
  0x10   :  { %236 = vrot.lane.b32.xlu0 %v235_v23, %s1028_s16  ;;  %v917_v44 = vld [vmem:[%s1664_s0 + $0x24] ss:$8 sm:$0xf]   ;;  %v918_v45 = vld [vmem:[%s1664_s0 + $0x5] ss:$8 sm:$0xf0]   ;;  %v351_v46 = vsel %vm156_vm0, %v920_v43, %v919_v42 }
  0x11   :  { %v338_v47 = vsel %vm156_vm0, %v918_v45, %v917_v44  ;;  %v922_v48 = vld [vmem:[%s1664_s0 + $0x2] ss:$8 sm:$0xf]   ;;  %v923_v49 = vld [vmem:[%s1664_s0 - $0x1d] ss:$8 sm:$0xf0]  }
  0x12   :  { %v359_v50 = vld [vmem:[%s1664_s0] ss:$8 sm:$0xf]   ;;  %v921_v51 = vld [vmem:[%s1664_s0 - $0x1f] ss:$8 sm:$0xf0]   ;;  %v376_v52 = vsel %vm156_vm0, %v923_v49, %v922_v48 }
  0x13   :  { %274 = vrot.lane.b32.xlu1 %v273_v28, %s1029_s26  ;;  %v363_v53 = vsel %vm156_vm0, %v921_v51, %v359_v50  ;;  %v926_v54 = vld [vmem:[%s1664_s0 + $0x6] ss:$8 sm:$0xf]   ;;  %v927_v55 = vld [vmem:[%s1664_s0 - $0x19] ss:$8 sm:$0xf0]  }
  0x14   :  { %261 = vrot.lane.b32.xlu0 %v260_v29, %s1029_s26  ;;  %v924_v56 = vld [vmem:[%s1664_s0 + $0x4] ss:$8 sm:$0xf]   ;;  %v925_v57 = vld [vmem:[%s1664_s0 - $0x1b] ss:$8 sm:$0xf0]   ;;  %v402_v58 = vsel %vm156_vm0, %v927_v55, %v926_v54 }
  0x15   :  { %s1030_s30 = smov 80   ;;  %v389_v59 = vsel %vm156_vm0, %v925_v57, %v924_v56  ;;  %v930_v60 = vld [vmem:[%s1664_s0 + $0x22] ss:$8 sm:$0xf]  }
  0x16   :  { %v931_v61 = vld [vmem:[%s1664_s0 + $0x3] ss:$8 sm:$0xf0]   ;;  %v928_v62 = vld [vmem:[%s1664_s0 + $0x20] ss:$8 sm:$0xf]  }
  0x17   :  { %300 = vrot.lane.b32.xlu1 %v299_v34, %s1029_s26  ;;  %v929_v63 = vld [vmem:[%s1664_s0 + $0x1] ss:$8 sm:$0xf0]   ;;  %v428_v0 = vsel %vm156_vm0, %v931_v61, %v930_v60  ;;  %v934_v2 = vld [vmem:[%s1664_s0 + $0x26] ss:$8 sm:$0xf]  }
  0x18   :  { %287 = vrot.lane.b32.xlu0 %v286_v35, %s1029_s26  ;;  %v415_v1 = vsel %vm156_vm0, %v929_v63, %v928_v62  ;;  %v935_v3 = vld [vmem:[%s1664_s0 + $0x7] ss:$8 sm:$0xf0]   ;;  %v932_v4 = vld [vmem:[%s1664_s0 + $0x24] ss:$8 sm:$0xf]  }
  0x19   :  { %v933_v5 = vld [vmem:[%s1664_s0 + $0x5] ss:$8 sm:$0xf0]   ;;  %v454_v6 = vsel %vm156_vm0, %v935_v3, %v934_v2  ;;  %v937_v8 = vld [vmem:[%s1664_s0 + $0x2] ss:$8 sm:$0xf]  }
  0x1a   :  { %v441_v7 = vsel %vm156_vm0, %v933_v5, %v932_v4  ;;  %v938_v9 = vld [vmem:[%s1664_s0 - $0x1d] ss:$8 sm:$0xf0]   ;;  %v462_v10 = vld [vmem:[%s1664_s0] ss:$8 sm:$0xf]  }
  0x1b   :  { %326 = vrot.lane.b32.xlu1 %v325_v40, %s1029_s26  ;;  %v936_v11 = vld [vmem:[%s1664_s0 - $0x1f] ss:$8 sm:$0xf0]   ;;  %v479_v12 = vsel %vm156_vm0, %v938_v9, %v937_v8  ;;  %v941_v13 = vld [vmem:[%s1664_s0 + $0x6] ss:$8 sm:$0xf]  }
  0x1c   :  { %313 = vrot.lane.b32.xlu0 %v312_v41, %s1029_s26  ;;  %v466_v14 = vsel %vm156_vm0, %v936_v11, %v462_v10  ;;  %v942_v15 = vld [vmem:[%s1664_s0 - $0x19] ss:$8 sm:$0xf0]  }
  0x1f   :  { %352 = vrot.lane.b32.xlu1 %v351_v46, %s1029_s26 }
  0x20   :  { %339 = vrot.lane.b32.xlu0 %v338_v47, %s1029_s26 }
  0x23   :  { %377 = vrot.lane.b32.xlu1 %v376_v52, %s1030_s30 }
  0x24   :  { %364 = vrot.lane.b32.xlu0 %v363_v53, %s1030_s30 }
  0x27   :  { %403 = vrot.lane.b32.xlu1 %v402_v58, %s1030_s30 }
  0x28   :  { %390 = vrot.lane.b32.xlu0 %v389_v59, %s1030_s30 }
  0x2b   :  { %429 = vrot.lane.b32.xlu1 %v428_v0, %s1030_s30 }
  0x2c   :  { %416 = vrot.lane.b32.xlu0 %v415_v1, %s1030_s30 }
  0x2f   :  { %455 = vrot.lane.b32.xlu1 %v454_v6, %s1030_s30 }
  0x30   :  { %442 = vrot.lane.b32.xlu0 %v441_v7, %s1030_s30 }
  0x31   :  { %2 = vsyncpa [#allocation1], 0  ;;  %v939_v16 = vld [vmem:[%s1664_s0 + $0x4] ss:$8 sm:$0xf]   ;;  %s1031_s5 = smov 64   ;;  %v505_v18 = vsel %vm156_vm0, %v942_v15, %v941_v13 }
  0x32   :  { %v940_v17 = vld [vmem:[%s1664_s0 - $0x1b] ss:$8 sm:$0xf0]   ;;  %v945_v20 = vld [vmem:[%s1664_s0 + $0x22] ss:$8 sm:$0xf]  }
  0x33   :  { %480 = vrot.lane.b32.xlu1 %v479_v12, %s1031_s5  ;;  %v492_v19 = vsel %vm156_vm0, %v940_v17, %v939_v16  ;;  %v946_v21 = vld [vmem:[%s1664_s0 + $0x3] ss:$8 sm:$0xf0]   ;;  %v943_v22 = vld [vmem:[%s1664_s0 + $0x20] ss:$8 sm:$0xf]  }
  0x34   :  { %467 = vrot.lane.b32.xlu0 %v466_v14, %s1031_s5  ;;  %v944_v23 = vld [vmem:[%s1664_s0 + $0x1] ss:$8 sm:$0xf0]   ;;  %v531_v24 = vsel %vm156_vm0, %v946_v21, %v945_v20  ;;  %v949_v26 = vld [vmem:[%s1664_s0 + $0x26] ss:$8 sm:$0xf]  }
  0x35   :  { %v518_v25 = vsel %vm156_vm0, %v944_v23, %v943_v22  ;;  %v950_v27 = vld [vmem:[%s1664_s0 + $0x7] ss:$8 sm:$0xf0]   ;;  %v947_v28 = vld [vmem:[%s1664_s0 + $0x24] ss:$8 sm:$0xf]  }
  0x36   :  { %v948_v29 = vld [vmem:[%s1664_s0 + $0x5] ss:$8 sm:$0xf0]   ;;  %v557_v30 = vsel %vm156_vm0, %v950_v27, %v949_v26  ;;  %v952_v32 = vld [vmem:[%s1664_s0 + $0x2] ss:$8 sm:$0xf]  }
  0x37   :  { %506 = vrot.lane.b32.xlu1 %v505_v18, %s1031_s5  ;;  %v544_v31 = vsel %vm156_vm0, %v948_v29, %v947_v28  ;;  %v953_v33 = vld [vmem:[%s1664_s0 - $0x1d] ss:$8 sm:$0xf0]   ;;  %v565_v34 = vld [vmem:[%s1664_s0] ss:$8 sm:$0xf]  }
  0x38   :  { %493 = vrot.lane.b32.xlu0 %v492_v19, %s1031_s5  ;;  %v951_v35 = vld [vmem:[%s1664_s0 - $0x1f] ss:$8 sm:$0xf0]   ;;  %v582_v36 = vsel %vm156_vm0, %v953_v33, %v952_v32  ;;  %v956_v38 = vld [vmem:[%s1664_s0 + $0x6] ss:$8 sm:$0xf]  }
  0x39   :  { %v569_v37 = vsel %vm156_vm0, %v951_v35, %v565_v34  ;;  %v957_v39 = vld [vmem:[%s1664_s0 - $0x19] ss:$8 sm:$0xf0]   ;;  %v954_v40 = vld [vmem:[%s1664_s0 + $0x4] ss:$8 sm:$0xf]  }
  0x3a   :  { %v955_v41 = vld [vmem:[%s1664_s0 - $0x1b] ss:$8 sm:$0xf0]   ;;  %s1032_s9 = smov 48   ;;  %v608_v42 = vsel %vm156_vm0, %v957_v39, %v956_v38  ;;  %s1033_s13 = smov 32   ;;  %vm4_vm1 = vcmask 130048  }
  0x3b   :  { %532 = vrot.lane.b32.xlu1 %v531_v24, %s1031_s5  ;;  %v595_v43 = vsel %vm156_vm0, %v955_v41, %v954_v40  ;;  %v960_v44 = vld [vmem:[%s1664_s0 + $0x22] ss:$8 sm:$0xf]   ;;  %v961_v45 = vld [vmem:[%s1664_s0 + $0x3] ss:$8 sm:$0xf0]  }
  0x3c   :  { %519 = vrot.lane.b32.xlu0 %v518_v25, %s1031_s5  ;;  %v958_v46 = vld [vmem:[%s1664_s0 + $0x20] ss:$8 sm:$0xf]   ;;  %v959_v47 = vld [vmem:[%s1664_s0 + $0x1] ss:$8 sm:$0xf0]   ;;  %v634_v48 = vsel %vm156_vm0, %v961_v45, %v960_v44 }
  0x3d   :  { %v621_v49 = vsel %vm156_vm0, %v959_v47, %v958_v46  ;;  %v964_v50 = vld [vmem:[%s1664_s0 + $0x26] ss:$8 sm:$0xf]   ;;  %v965_v51 = vld [vmem:[%s1664_s0 + $0x7] ss:$8 sm:$0xf0]  }
  0x3e   :  { %v962_v52 = vld [vmem:[%s1664_s0 + $0x24] ss:$8 sm:$0xf]   ;;  %v963_v53 = vld [vmem:[%s1664_s0 + $0x5] ss:$8 sm:$0xf0]   ;;  %v660_v54 = vsel %vm156_vm0, %v965_v51, %v964_v50 }
  0x3f   :  { %558 = vrot.lane.b32.xlu1 %v557_v30, %s1031_s5  ;;  %v647_v55 = vsel %vm156_vm0, %v963_v53, %v962_v52  ;;  %v967_v56 = vld [vmem:[%s1664_s0 + $0x2] ss:$8 sm:$0xf]   ;;  %v968_v57 = vld [vmem:[%s1664_s0 - $0x1d] ss:$8 sm:$0xf0]  }
  0x40   :  { %545 = vrot.lane.b32.xlu0 %v544_v31, %s1031_s5  ;;  %v668_v58 = vld [vmem:[%s1664_s0] ss:$8 sm:$0xf]   ;;  %v966_v59 = vld [vmem:[%s1664_s0 - $0x1f] ss:$8 sm:$0xf0]   ;;  %v685_v60 = vsel %vm156_vm0, %v968_v57, %v967_v56 }
  0x41   :  { %v672_v61 = vsel %vm156_vm0, %v966_v59, %v668_v58  ;;  %v971_v62 = vld [vmem:[%s1664_s0 + $0x6] ss:$8 sm:$0xf]   ;;  %v972_v63 = vld [vmem:[%s1664_s0 - $0x19] ss:$8 sm:$0xf0]  }
  0x42   :  { %v969_v0 = vld [vmem:[%s1664_s0 + $0x4] ss:$8 sm:$0xf]   ;;  %v970_v1 = vld [vmem:[%s1664_s0 - $0x1b] ss:$8 sm:$0xf0]   ;;  %v711_v2 = vsel %vm156_vm0, %v972_v63, %v971_v62 }
  0x43   :  { %583 = vrot.lane.b32.xlu1 %v582_v36, %s1032_s9  ;;  %v698_v3 = vsel %vm156_vm0, %v970_v1, %v969_v0  ;;  %v975_v4 = vld [vmem:[%s1664_s0 + $0x22] ss:$8 sm:$0xf]   ;;  %v976_v5 = vld [vmem:[%s1664_s0 + $0x3] ss:$8 sm:$0xf0]  }
  0x44   :  { %570 = vrot.lane.b32.xlu0 %v569_v37, %s1032_s9  ;;  %v973_v6 = vld [vmem:[%s1664_s0 + $0x20] ss:$8 sm:$0xf]   ;;  %v974_v7 = vld [vmem:[%s1664_s0 + $0x1] ss:$8 sm:$0xf0]   ;;  %v737_v8 = vsel %vm156_vm0, %v976_v5, %v975_v4 }
  0x45   :  { %v724_v9 = vsel %vm156_vm0, %v974_v7, %v973_v6  ;;  %v979_v10 = vld [vmem:[%s1664_s0 + $0x26] ss:$8 sm:$0xf]   ;;  %v980_v11 = vld [vmem:[%s1664_s0 + $0x7] ss:$8 sm:$0xf0]  }
  0x46   :  { %v977_v12 = vld [vmem:[%s1664_s0 + $0x24] ss:$8 sm:$0xf]   ;;  %v978_v13 = vld [vmem:[%s1664_s0 + $0x5] ss:$8 sm:$0xf0]   ;;  %v763_v14 = vsel %vm156_vm0, %v980_v11, %v979_v10 }
  0x47   :  { %609 = vrot.lane.b32.xlu1 %v608_v42, %s1032_s9  ;;  %v750_v15 = vsel %vm156_vm0, %v978_v13, %v977_v12  ;;  %v982_v16 = vld [vmem:[%s1664_s0 + $0x2] ss:$8 sm:$0xf]   ;;  %v983_v17 = vld [vmem:[%s1664_s0 - $0x1d] ss:$8 sm:$0xf0]  }
  0x48   :  { %596 = vrot.lane.b32.xlu0 %v595_v43, %s1032_s9  ;;  %v771_v18 = vld [vmem:[%s1664_s0] ss:$8 sm:$0xf]   ;;  %v981_v19 = vld [vmem:[%s1664_s0 - $0x1f] ss:$8 sm:$0xf0]   ;;  %v788_v20 = vsel %vm156_vm0, %v983_v17, %v982_v16 }
  0x49   :  { %v986_v21 = vld [vmem:[%s1664_s0 + $0x6] ss:$8 sm:$0xf]   ;;  %v987_v22 = vld [vmem:[%s1664_s0 - $0x19] ss:$8 sm:$0xf0]   ;;  %v775_v23 = vsel %vm156_vm0, %v981_v19, %v771_v18 }
  0x4a   :  { %v1405_v24 = vld [vmem:[%s1664_s0 + $0x4] ss:$8 sm:$0xf]   ;;  %v1410_v25 = vld [vmem:[%s1664_s0 - $0x1b] ss:$8 sm:$0xf0]   ;;  %v814_v32 = vsel %vm156_vm0, %v987_v22, %v986_v21 }
  0x4b   :  { %635 = vrot.lane.b32.xlu1 %v634_v48, %s1032_s9  ;;  %v3_v26 = vld [vmem:[%s1664_s0] sm:$0xff]   ;;  %v884_v27 = vld [vmem:[%s1664_s0 + $0x8] sm:$0xff]   ;;  %v885_v28 = vld [vmem:[%s1664_s0 + $0x10] sm:$0xff]   ;;  %s1034_s23 = smov 16   ;;  %v801_v35 = vsel %vm156_vm0, %v1410_v25, %v1405_v24 }
  0x4c   :  { %622 = vrot.lane.b32.xlu0 %v621_v49, %s1032_s9  ;;  %5 = vst.msk [vmem:[#allocation0] sm:$0x1] %vm4_vm1, %v3_v26   ;;  %7 = vst.msk [vmem:[#allocation0 + $0x1f] sm:$0x2] %vm4_vm1, %v3_v26   ;;  %v886_v29 = vld [vmem:[%s1664_s0 + $0x18] sm:$0xff]   ;;  %v887_v30 = vld [vmem:[%s1664_s0 + $0x20] sm:$0xff]  }
  0x4d   :  { %9 = vst.msk [vmem:[#allocation0 + $0x3e] sm:$0x4] %vm4_vm1, %v3_v26   ;;  %11 = vst.msk [vmem:[#allocation0 + $0x5d] sm:$0x8] %vm4_vm1, %v3_v26   ;;  %v888_v31 = vld [vmem:[%s1664_s0 + $0x28] sm:$0xff]   ;;  %v889_v33 = vld [vmem:[%s1664_s0 + $0x30] sm:$0xff]  }
  0x4e   :  { %13 = vst.msk [vmem:[#allocation0 + $0x7c] sm:$0x10] %vm4_vm1, %v3_v26   ;;  %15 = vst.msk [vmem:[#allocation0 + $0x9b] sm:$0x20] %vm4_vm1, %v3_v26   ;;  %v890_v34 = vld [vmem:[%s1664_s0 + $0x38] sm:$0xff]  }
  0x4f   :  { %661 = vrot.lane.b32.xlu1 %v660_v54, %s1032_s9  ;;  %17 = vst.msk [vmem:[#allocation0 + $0xba] sm:$0x40] %vm4_vm1, %v3_v26   ;;  %19 = vst.msk [vmem:[#allocation0 + $0xd9] sm:$0x80] %vm4_vm1, %v3_v26  }
  0x50   :  { %648 = vrot.lane.b32.xlu0 %v647_v55, %s1032_s9  ;;  %24 = vst.msk [vmem:[#allocation0 + $0x8] sm:$0x1] %vm4_vm1, %v884_v27   ;;  %26 = vst.msk [vmem:[#allocation0 + $0x27] sm:$0x2] %vm4_vm1, %v884_v27  }
  0x51   :  { %28 = vst.msk [vmem:[#allocation0 + $0x46] sm:$0x4] %vm4_vm1, %v884_v27   ;;  %30 = vst.msk [vmem:[#allocation0 + $0x65] sm:$0x8] %vm4_vm1, %v884_v27  }
  0x52   :  { %32 = vst.msk [vmem:[#allocation0 + $0x84] sm:$0x10] %vm4_vm1, %v884_v27   ;;  %34 = vst.msk [vmem:[#allocation0 + $0xa3] sm:$0x20] %vm4_vm1, %v884_v27  }
  0x53   :  { %686 = vrot.lane.b32.xlu1 %v685_v60, %s1033_s13  ;;  %36 = vst.msk [vmem:[#allocation0 + $0xc2] sm:$0x40] %vm4_vm1, %v884_v27   ;;  %38 = vst.msk [vmem:[#allocation0 + $0xe1] sm:$0x80] %vm4_vm1, %v884_v27  }
  0x54   :  { %673 = vrot.lane.b32.xlu0 %v672_v61, %s1033_s13  ;;  %43 = vst.msk [vmem:[#allocation0 + $0x10] sm:$0x1] %vm4_vm1, %v885_v28   ;;  %45 = vst.msk [vmem:[#allocation0 + $0x2f] sm:$0x2] %vm4_vm1, %v885_v28  }
  0x55   :  { %47 = vst.msk [vmem:[#allocation0 + $0x4e] sm:$0x4] %vm4_vm1, %v885_v28   ;;  %49 = vst.msk [vmem:[#allocation0 + $0x6d] sm:$0x8] %vm4_vm1, %v885_v28  }
  0x56   :  { %51 = vst.msk [vmem:[#allocation0 + $0x8c] sm:$0x10] %vm4_vm1, %v885_v28   ;;  %53 = vst.msk [vmem:[#allocation0 + $0xab] sm:$0x20] %vm4_vm1, %v885_v28  }
  0x57   :  { %712 = vrot.lane.b32.xlu1 %v711_v2, %s1033_s13  ;;  %55 = vst.msk [vmem:[#allocation0 + $0xca] sm:$0x40] %vm4_vm1, %v885_v28   ;;  %57 = vst.msk [vmem:[#allocation0 + $0xe9] sm:$0x80] %vm4_vm1, %v885_v28  }
  0x58   :  { %699 = vrot.lane.b32.xlu0 %v698_v3, %s1033_s13  ;;  %62 = vst.msk [vmem:[#allocation0 + $0x18] sm:$0x1] %vm4_vm1, %v886_v29   ;;  %64 = vst.msk [vmem:[#allocation0 + $0x37] sm:$0x2] %vm4_vm1, %v886_v29  }
  0x59   :  { %66 = vst.msk [vmem:[#allocation0 + $0x56] sm:$0x4] %vm4_vm1, %v886_v29   ;;  %68 = vst.msk [vmem:[#allocation0 + $0x75] sm:$0x8] %vm4_vm1, %v886_v29  }
  0x5a   :  { %70 = vst.msk [vmem:[#allocation0 + $0x94] sm:$0x10] %vm4_vm1, %v886_v29   ;;  %72 = vst.msk [vmem:[#allocation0 + $0xb3] sm:$0x20] %vm4_vm1, %v886_v29  }
  0x5b   :  { %738 = vrot.lane.b32.xlu1 %v737_v8, %s1033_s13  ;;  %74 = vst.msk [vmem:[#allocation0 + $0xd2] sm:$0x40] %vm4_vm1, %v886_v29   ;;  %76 = vst.msk [vmem:[#allocation0 + $0xf1] sm:$0x80] %vm4_vm1, %v886_v29  }
  0x5c   :  { %725 = vrot.lane.b32.xlu0 %v724_v9, %s1033_s13  ;;  %81 = vst.msk [vmem:[#allocation0 + $0x100] sm:$0x1] %vm4_vm1, %v887_v30   ;;  %83 = vst.msk [vmem:[#allocation0 + $0x11f] sm:$0x2] %vm4_vm1, %v887_v30  }
  0x5d   :  { %85 = vst.msk [vmem:[#allocation0 + $0x13e] sm:$0x4] %vm4_vm1, %v887_v30   ;;  %87 = vst.msk [vmem:[#allocation0 + $0x15d] sm:$0x8] %vm4_vm1, %v887_v30  }
  0x5e   :  { %89 = vst.msk [vmem:[#allocation0 + $0x17c] sm:$0x10] %vm4_vm1, %v887_v30   ;;  %91 = vst.msk [vmem:[#allocation0 + $0x19b] sm:$0x20] %vm4_vm1, %v887_v30  }
  0x5f   :  { %764 = vrot.lane.b32.xlu1 %v763_v14, %s1033_s13  ;;  %93 = vst.msk [vmem:[#allocation0 + $0x1ba] sm:$0x40] %vm4_vm1, %v887_v30   ;;  %95 = vst.msk [vmem:[#allocation0 + $0x1d9] sm:$0x80] %vm4_vm1, %v887_v30  }
  0x60   :  { %751 = vrot.lane.b32.xlu0 %v750_v15, %s1033_s13  ;;  %100 = vst.msk [vmem:[#allocation0 + $0x108] sm:$0x1] %vm4_vm1, %v888_v31   ;;  %102 = vst.msk [vmem:[#allocation0 + $0x127] sm:$0x2] %vm4_vm1, %v888_v31  }
  0x61   :  { %104 = vst.msk [vmem:[#allocation0 + $0x146] sm:$0x4] %vm4_vm1, %v888_v31   ;;  %106 = vst.msk [vmem:[#allocation0 + $0x165] sm:$0x8] %vm4_vm1, %v888_v31  }
  0x62   :  { %108 = vst.msk [vmem:[#allocation0 + $0x184] sm:$0x10] %vm4_vm1, %v888_v31   ;;  %110 = vst.msk [vmem:[#allocation0 + $0x1a3] sm:$0x20] %vm4_vm1, %v888_v31  }
  0x63   :  { %789 = vrot.lane.b32.xlu1 %v788_v20, %s1034_s23  ;;  %112 = vst.msk [vmem:[#allocation0 + $0x1c2] sm:$0x40] %vm4_vm1, %v888_v31   ;;  %114 = vst.msk [vmem:[#allocation0 + $0x1e1] sm:$0x80] %vm4_vm1, %v888_v31  }
  0x64   :  { %776 = vrot.lane.b32.xlu0 %v775_v23, %s1034_s23  ;;  %v990_v36 = vld [vmem:[%s1664_s0 + $0x22] ss:$8 sm:$0xf]   ;;  %v991_v37 = vld [vmem:[%s1664_s0 + $0x3] ss:$8 sm:$0xf0]  }
  0x65   :  { %119 = vst.msk [vmem:[#allocation0 + $0x110] sm:$0x1] %vm4_vm1, %v889_v33   ;;  %121 = vst.msk [vmem:[#allocation0 + $0x12f] sm:$0x2] %vm4_vm1, %v889_v33   ;;  %v840_v40 = vsel %vm156_vm0, %v991_v37, %v990_v36 }
  0x66   :  { %123 = vst.msk [vmem:[#allocation0 + $0x14e] sm:$0x4] %vm4_vm1, %v889_v33   ;;  %125 = vst.msk [vmem:[#allocation0 + $0x16d] sm:$0x8] %vm4_vm1, %v889_v33  }
  0x67   :  { %127 = vst.msk [vmem:[#allocation0 + $0x18c] sm:$0x10] %vm4_vm1, %v889_v33   ;;  %129 = vst.msk [vmem:[#allocation0 + $0x1ab] sm:$0x20] %vm4_vm1, %v889_v33   ;;  %815 = vrot.lane.b32.xlu1 %v814_v32, %s1034_s23 }
  0x68   :  { %131 = vst.msk [vmem:[#allocation0 + $0x1ca] sm:$0x40] %vm4_vm1, %v889_v33   ;;  %133 = vst.msk [vmem:[#allocation0 + $0x1e9] sm:$0x80] %vm4_vm1, %v889_v33   ;;  %802 = vrot.lane.b32.xlu0 %v801_v35, %s1034_s23 }
  0x69   :  { %138 = vst.msk [vmem:[#allocation0 + $0x118] sm:$0x1] %vm4_vm1, %v890_v34   ;;  %140 = vst.msk [vmem:[#allocation0 + $0x137] sm:$0x2] %vm4_vm1, %v890_v34  }
  0x6a   :  { %142 = vst.msk [vmem:[#allocation0 + $0x156] sm:$0x4] %vm4_vm1, %v890_v34   ;;  %144 = vst.msk [vmem:[#allocation0 + $0x175] sm:$0x8] %vm4_vm1, %v890_v34  }
  0x6b   :  { %146 = vst.msk [vmem:[#allocation0 + $0x194] sm:$0x10] %vm4_vm1, %v890_v34   ;;  %148 = vst.msk [vmem:[#allocation0 + $0x1b3] sm:$0x20] %vm4_vm1, %v890_v34   ;;  %841 = vrot.lane.b32.xlu1 %v840_v40, %s1034_s23 }
  0x6c   :  { %150 = vst.msk [vmem:[#allocation0 + $0x1d2] sm:$0x40] %vm4_vm1, %v890_v34   ;;  %152 = vst.msk [vmem:[#allocation0 + $0x1f1] sm:$0x80] %vm4_vm1, %v890_v34  }
  0x6d   :  { %v988_v38 = vld [vmem:[%s1664_s0 + $0x20] ss:$8 sm:$0xf]   ;;  %v989_v39 = vld [vmem:[%s1664_s0 + $0x1] ss:$8 sm:$0xf0]  }
  0x6e   :  { %v827_v41 = vsel %vm156_vm0, %v989_v39, %v988_v38  ;;  %v994_v42 = vld [vmem:[%s1664_s0 + $0x26] ss:$8 sm:$0xf]   ;;  %v995_v43 = vld [vmem:[%s1664_s0 + $0x7] ss:$8 sm:$0xf0]  }
  0x6f   :  { %v992_v44 = vld [vmem:[%s1664_s0 + $0x24] ss:$8 sm:$0xf]   ;;  %v993_v45 = vld [vmem:[%s1664_s0 + $0x5] ss:$8 sm:$0xf0]   ;;  %828 = vrot.lane.b32.xlu0 %v827_v41, %s1034_s23  ;;  %v866_v46 = vsel %vm156_vm0, %v995_v43, %v994_v42 }
  0x70   :  { %v853_v47 = vsel %vm156_vm0, %v993_v45, %v992_v44  ;;  %867 = vrot.lane.b32.xlu1 %v866_v46, %s1034_s23  ;;  %s1035_s0 = smov [#allocation0]  }
  0x71   :  { %s878_s21 = sshll.u32 %s1035_s0, 4  ;;  %s879_s21 = int_to_ptr.vmem [resolvable:$true] %s878_s21 }
  0x72   :  { %s1004_s22 = scalar_lea.vmem %s879_s21, 8192  ;;  %p1009_p1 = scmp.lt.s32.totalorder %s879_s21, %s879_s21 }
  0x73   :  { %854 = vrot.lane.b32.xlu0 %v853_v47, %s1034_s23  ;;  %p1005_p0 = scmp.ne.s32.totalorder %s879_s21, %s1004_s22  ;;  %p1010_p2 = scmp.lt.s32.totalorder %s1004_s22, %s1004_s22 }
  0x75   :  { %v185_v48 = vpop.permute.xlu1 %184   ;;  %p1011_p3 = por %p1010_p2, %p1009_p1 }
  0x76   :  { %188 = vst.msk [vmem:[#allocation0 + $0x81] ss:$8 sm:$0xf] %vm4_vm1, %v185_v48   ;;  %190 = vst.msk [vmem:[#allocation0 + $0x81] ss:$8 sm:$0xf0] %vm4_vm1, %v185_v48   ;;  %v159_v49 = vpop.permute.xlu0 %158  }
  0x77   :  { %162 = vst.msk [vmem:[#allocation0 + $0x1] ss:$8 sm:$0xf] %vm4_vm1, %v159_v49   ;;  %164 = vst.msk [vmem:[#allocation0 + $0x1] ss:$8 sm:$0xf0] %vm4_vm1, %v159_v49   ;;  %p1012_p4 = pnand %p1011_p3, %p1005_p0 }
  0x79   :  { %v198_v50 = vpop.permute.xlu1 %197  }
  0x7a   :  { %201 = vst.msk [vmem:[#allocation0 + $0xc1] ss:$8 sm:$0xf] %vm4_vm1, %v198_v50   ;;  %203 = vst.msk [vmem:[#allocation0 + $0xc1] ss:$8 sm:$0xf0] %vm4_vm1, %v198_v50   ;;  %v172_v51 = vpop.permute.xlu0 %171  }
  0x7b   :  { %175 = vst.msk [vmem:[#allocation0 + $0x41] ss:$8 sm:$0xf] %vm4_vm1, %v172_v51   ;;  %177 = vst.msk [vmem:[#allocation0 + $0x41] ss:$8 sm:$0xf0] %vm4_vm1, %v172_v51  }
  0x7d   :  { %v224_v52 = vpop.permute.xlu1 %223  }
  0x7e   :  { %227 = vst.msk [vmem:[#allocation0 + $0x141] ss:$8 sm:$0xf] %vm4_vm1, %v224_v52   ;;  %229 = vst.msk [vmem:[#allocation0 + $0x141] ss:$8 sm:$0xf0] %vm4_vm1, %v224_v52   ;;  %v211_v53 = vpop.permute.xlu0 %210  }
  0x7f   :  { %214 = vst.msk [vmem:[#allocation0 + $0x101] ss:$8 sm:$0xf] %vm4_vm1, %v211_v53   ;;  %216 = vst.msk [vmem:[#allocation0 + $0x101] ss:$8 sm:$0xf0] %vm4_vm1, %v211_v53  }
  0x81   :  { %v250_v54 = vpop.permute.xlu1 %249  }
  0x82   :  { %253 = vst.msk [vmem:[#allocation0 + $0x1c1] ss:$8 sm:$0xf] %vm4_vm1, %v250_v54   ;;  %255 = vst.msk [vmem:[#allocation0 + $0x1c1] ss:$8 sm:$0xf0] %vm4_vm1, %v250_v54   ;;  %v237_v55 = vpop.permute.xlu0 %236  }
  0x83   :  { %240 = vst.msk [vmem:[#allocation0 + $0x181] ss:$8 sm:$0xf] %vm4_vm1, %v237_v55   ;;  %242 = vst.msk [vmem:[#allocation0 + $0x181] ss:$8 sm:$0xf0] %vm4_vm1, %v237_v55  }
  0x85   :  { %v275_v56 = vpop.permute.xlu1 %274  }
  0x86   :  { %278 = vst.msk [vmem:[#allocation0 + $0x42] ss:$8 sm:$0xf] %vm4_vm1, %v275_v56   ;;  %280 = vst.msk [vmem:[#allocation0 + $0x42] ss:$8 sm:$0xf0] %vm4_vm1, %v275_v56   ;;  %v262_v57 = vpop.permute.xlu0 %261  }
  0x87   :  { %265 = vst.msk [vmem:[#allocation0 + $0x2] ss:$8 sm:$0xf] %vm4_vm1, %v262_v57   ;;  %267 = vst.msk [vmem:[#allocation0 + $0x2] ss:$8 sm:$0xf0] %vm4_vm1, %v262_v57  }
  0x89   :  { %v301_v58 = vpop.permute.xlu1 %300  }
  0x8a   :  { %304 = vst.msk [vmem:[#allocation0 + $0xc2] ss:$8 sm:$0xf] %vm4_vm1, %v301_v58   ;;  %306 = vst.msk [vmem:[#allocation0 + $0xc2] ss:$8 sm:$0xf0] %vm4_vm1, %v301_v58   ;;  %v288_v59 = vpop.permute.xlu0 %287  }
  0x8b   :  { %291 = vst.msk [vmem:[#allocation0 + $0x82] ss:$8 sm:$0xf] %vm4_vm1, %v288_v59   ;;  %293 = vst.msk [vmem:[#allocation0 + $0x82] ss:$8 sm:$0xf0] %vm4_vm1, %v288_v59  }
  0x8d   :  { %v327_v60 = vpop.permute.xlu1 %326  }
  0x8e   :  { %330 = vst.msk [vmem:[#allocation0 + $0x142] ss:$8 sm:$0xf] %vm4_vm1, %v327_v60   ;;  %332 = vst.msk [vmem:[#allocation0 + $0x142] ss:$8 sm:$0xf0] %vm4_vm1, %v327_v60   ;;  %v314_v61 = vpop.permute.xlu0 %313  }
  0x8f   :  { %317 = vst.msk [vmem:[#allocation0 + $0x102] ss:$8 sm:$0xf] %vm4_vm1, %v314_v61   ;;  %319 = vst.msk [vmem:[#allocation0 + $0x102] ss:$8 sm:$0xf0] %vm4_vm1, %v314_v61  }
  0x91   :  { %v353_v62 = vpop.permute.xlu1 %352  }
  0x92   :  { %356 = vst.msk [vmem:[#allocation0 + $0x1c2] ss:$8 sm:$0xf] %vm4_vm1, %v353_v62   ;;  %358 = vst.msk [vmem:[#allocation0 + $0x1c2] ss:$8 sm:$0xf0] %vm4_vm1, %v353_v62   ;;  %v340_v63 = vpop.permute.xlu0 %339  }
  0x93   :  { %343 = vst.msk [vmem:[#allocation0 + $0x182] ss:$8 sm:$0xf] %vm4_vm1, %v340_v63   ;;  %345 = vst.msk [vmem:[#allocation0 + $0x182] ss:$8 sm:$0xf0] %vm4_vm1, %v340_v63  }
  0x95   :  { %v378_v0 = vpop.permute.xlu1 %377  }
  0x96   :  { %381 = vst.msk [vmem:[#allocation0 + $0x43] ss:$8 sm:$0xf] %vm4_vm1, %v378_v0   ;;  %383 = vst.msk [vmem:[#allocation0 + $0x43] ss:$8 sm:$0xf0] %vm4_vm1, %v378_v0   ;;  %v365_v1 = vpop.permute.xlu0 %364  }
  0x97   :  { %368 = vst.msk [vmem:[#allocation0 + $0x3] ss:$8 sm:$0xf] %vm4_vm1, %v365_v1   ;;  %370 = vst.msk [vmem:[#allocation0 + $0x3] ss:$8 sm:$0xf0] %vm4_vm1, %v365_v1  }
  0x99   :  { %v404_v2 = vpop.permute.xlu1 %403  }
  0x9a   :  { %407 = vst.msk [vmem:[#allocation0 + $0xc3] ss:$8 sm:$0xf] %vm4_vm1, %v404_v2   ;;  %409 = vst.msk [vmem:[#allocation0 + $0xc3] ss:$8 sm:$0xf0] %vm4_vm1, %v404_v2   ;;  %v391_v3 = vpop.permute.xlu0 %390  }
  0x9b   :  { %394 = vst.msk [vmem:[#allocation0 + $0x83] ss:$8 sm:$0xf] %vm4_vm1, %v391_v3   ;;  %396 = vst.msk [vmem:[#allocation0 + $0x83] ss:$8 sm:$0xf0] %vm4_vm1, %v391_v3  }
  0x9d   :  { %v430_v4 = vpop.permute.xlu1 %429  }
  0x9e   :  { %433 = vst.msk [vmem:[#allocation0 + $0x143] ss:$8 sm:$0xf] %vm4_vm1, %v430_v4   ;;  %435 = vst.msk [vmem:[#allocation0 + $0x143] ss:$8 sm:$0xf0] %vm4_vm1, %v430_v4   ;;  %v417_v5 = vpop.permute.xlu0 %416  }
  0x9f   :  { %420 = vst.msk [vmem:[#allocation0 + $0x103] ss:$8 sm:$0xf] %vm4_vm1, %v417_v5   ;;  %422 = vst.msk [vmem:[#allocation0 + $0x103] ss:$8 sm:$0xf0] %vm4_vm1, %v417_v5  }
  0xa1   :  { %v456_v6 = vpop.permute.xlu1 %455  }
  0xa2   :  { %459 = vst.msk [vmem:[#allocation0 + $0x1c3] ss:$8 sm:$0xf] %vm4_vm1, %v456_v6   ;;  %461 = vst.msk [vmem:[#allocation0 + $0x1c3] ss:$8 sm:$0xf0] %vm4_vm1, %v456_v6   ;;  %v443_v7 = vpop.permute.xlu0 %442  }
  0xa3   :  { %446 = vst.msk [vmem:[#allocation0 + $0x183] ss:$8 sm:$0xf] %vm4_vm1, %v443_v7   ;;  %448 = vst.msk [vmem:[#allocation0 + $0x183] ss:$8 sm:$0xf0] %vm4_vm1, %v443_v7  }
  0xa5   :  { %v481_v8 = vpop.permute.xlu1 %480  }
  0xa6   :  { %484 = vst.msk [vmem:[#allocation0 + $0x44] ss:$8 sm:$0xf] %vm4_vm1, %v481_v8   ;;  %486 = vst.msk [vmem:[#allocation0 + $0x44] ss:$8 sm:$0xf0] %vm4_vm1, %v481_v8   ;;  %v468_v9 = vpop.permute.xlu0 %467  }
  0xa7   :  { %471 = vst.msk [vmem:[#allocation0 + $0x4] ss:$8 sm:$0xf] %vm4_vm1, %v468_v9   ;;  %473 = vst.msk [vmem:[#allocation0 + $0x4] ss:$8 sm:$0xf0] %vm4_vm1, %v468_v9  }
  0xa9   :  { %v507_v10 = vpop.permute.xlu1 %506  }
  0xaa   :  { %510 = vst.msk [vmem:[#allocation0 + $0xc4] ss:$8 sm:$0xf] %vm4_vm1, %v507_v10   ;;  %512 = vst.msk [vmem:[#allocation0 + $0xc4] ss:$8 sm:$0xf0] %vm4_vm1, %v507_v10   ;;  %v494_v11 = vpop.permute.xlu0 %493  }
  0xab   :  { %497 = vst.msk [vmem:[#allocation0 + $0x84] ss:$8 sm:$0xf] %vm4_vm1, %v494_v11   ;;  %499 = vst.msk [vmem:[#allocation0 + $0x84] ss:$8 sm:$0xf0] %vm4_vm1, %v494_v11  }
  0xad   :  { %v533_v12 = vpop.permute.xlu1 %532  }
  0xae   :  { %536 = vst.msk [vmem:[#allocation0 + $0x144] ss:$8 sm:$0xf] %vm4_vm1, %v533_v12   ;;  %538 = vst.msk [vmem:[#allocation0 + $0x144] ss:$8 sm:$0xf0] %vm4_vm1, %v533_v12   ;;  %v520_v13 = vpop.permute.xlu0 %519  }
  0xaf   :  { %523 = vst.msk [vmem:[#allocation0 + $0x104] ss:$8 sm:$0xf] %vm4_vm1, %v520_v13   ;;  %525 = vst.msk [vmem:[#allocation0 + $0x104] ss:$8 sm:$0xf0] %vm4_vm1, %v520_v13  }
  0xb1   :  { %v559_v14 = vpop.permute.xlu1 %558  }
  0xb2   :  { %562 = vst.msk [vmem:[#allocation0 + $0x1c4] ss:$8 sm:$0xf] %vm4_vm1, %v559_v14   ;;  %564 = vst.msk [vmem:[#allocation0 + $0x1c4] ss:$8 sm:$0xf0] %vm4_vm1, %v559_v14   ;;  %v546_v15 = vpop.permute.xlu0 %545  }
  0xb3   :  { %549 = vst.msk [vmem:[#allocation0 + $0x184] ss:$8 sm:$0xf] %vm4_vm1, %v546_v15   ;;  %551 = vst.msk [vmem:[#allocation0 + $0x184] ss:$8 sm:$0xf0] %vm4_vm1, %v546_v15  }
  0xb5   :  { %v584_v16 = vpop.permute.xlu1 %583  }
  0xb6   :  { %587 = vst.msk [vmem:[#allocation0 + $0x45] ss:$8 sm:$0xf] %vm4_vm1, %v584_v16   ;;  %589 = vst.msk [vmem:[#allocation0 + $0x45] ss:$8 sm:$0xf0] %vm4_vm1, %v584_v16   ;;  %v571_v17 = vpop.permute.xlu0 %570  }
  0xb7   :  { %574 = vst.msk [vmem:[#allocation0 + $0x5] ss:$8 sm:$0xf] %vm4_vm1, %v571_v17   ;;  %576 = vst.msk [vmem:[#allocation0 + $0x5] ss:$8 sm:$0xf0] %vm4_vm1, %v571_v17  }
  0xb9   :  { %v610_v18 = vpop.permute.xlu1 %609  }
  0xba   :  { %613 = vst.msk [vmem:[#allocation0 + $0xc5] ss:$8 sm:$0xf] %vm4_vm1, %v610_v18   ;;  %615 = vst.msk [vmem:[#allocation0 + $0xc5] ss:$8 sm:$0xf0] %vm4_vm1, %v610_v18   ;;  %v597_v19 = vpop.permute.xlu0 %596  }
  0xbb   :  { %600 = vst.msk [vmem:[#allocation0 + $0x85] ss:$8 sm:$0xf] %vm4_vm1, %v597_v19   ;;  %602 = vst.msk [vmem:[#allocation0 + $0x85] ss:$8 sm:$0xf0] %vm4_vm1, %v597_v19  }
  0xbd   :  { %v636_v20 = vpop.permute.xlu1 %635  }
  0xbe   :  { %639 = vst.msk [vmem:[#allocation0 + $0x145] ss:$8 sm:$0xf] %vm4_vm1, %v636_v20   ;;  %641 = vst.msk [vmem:[#allocation0 + $0x145] ss:$8 sm:$0xf0] %vm4_vm1, %v636_v20   ;;  %v623_v21 = vpop.permute.xlu0 %622  }
  0xbf   :  { %626 = vst.msk [vmem:[#allocation0 + $0x105] ss:$8 sm:$0xf] %vm4_vm1, %v623_v21   ;;  %628 = vst.msk [vmem:[#allocation0 + $0x105] ss:$8 sm:$0xf0] %vm4_vm1, %v623_v21  }
  0xc1   :  { %v662_v22 = vpop.permute.xlu1 %661  }
  0xc2   :  { %665 = vst.msk [vmem:[#allocation0 + $0x1c5] ss:$8 sm:$0xf] %vm4_vm1, %v662_v22   ;;  %667 = vst.msk [vmem:[#allocation0 + $0x1c5] ss:$8 sm:$0xf0] %vm4_vm1, %v662_v22   ;;  %v649_v23 = vpop.permute.xlu0 %648  }
  0xc3   :  { %652 = vst.msk [vmem:[#allocation0 + $0x185] ss:$8 sm:$0xf] %vm4_vm1, %v649_v23   ;;  %654 = vst.msk [vmem:[#allocation0 + $0x185] ss:$8 sm:$0xf0] %vm4_vm1, %v649_v23  }
  0xc5   :  { %v687_v24 = vpop.permute.xlu1 %686  }
  0xc6   :  { %690 = vst.msk [vmem:[#allocation0 + $0x46] ss:$8 sm:$0xf] %vm4_vm1, %v687_v24   ;;  %692 = vst.msk [vmem:[#allocation0 + $0x46] ss:$8 sm:$0xf0] %vm4_vm1, %v687_v24   ;;  %v674_v25 = vpop.permute.xlu0 %673  }
  0xc7   :  { %677 = vst.msk [vmem:[#allocation0 + $0x6] ss:$8 sm:$0xf] %vm4_vm1, %v674_v25   ;;  %679 = vst.msk [vmem:[#allocation0 + $0x6] ss:$8 sm:$0xf0] %vm4_vm1, %v674_v25  }
  0xc9   :  { %v713_v26 = vpop.permute.xlu1 %712  }
  0xca   :  { %716 = vst.msk [vmem:[#allocation0 + $0xc6] ss:$8 sm:$0xf] %vm4_vm1, %v713_v26   ;;  %718 = vst.msk [vmem:[#allocation0 + $0xc6] ss:$8 sm:$0xf0] %vm4_vm1, %v713_v26   ;;  %v700_v27 = vpop.permute.xlu0 %699  }
  0xcb   :  { %703 = vst.msk [vmem:[#allocation0 + $0x86] ss:$8 sm:$0xf] %vm4_vm1, %v700_v27   ;;  %705 = vst.msk [vmem:[#allocation0 + $0x86] ss:$8 sm:$0xf0] %vm4_vm1, %v700_v27  }
  0xcd   :  { %v739_v28 = vpop.permute.xlu1 %738  }
  0xce   :  { %742 = vst.msk [vmem:[#allocation0 + $0x146] ss:$8 sm:$0xf] %vm4_vm1, %v739_v28   ;;  %744 = vst.msk [vmem:[#allocation0 + $0x146] ss:$8 sm:$0xf0] %vm4_vm1, %v739_v28   ;;  %v726_v29 = vpop.permute.xlu0 %725  }
  0xcf   :  { %729 = vst.msk [vmem:[#allocation0 + $0x106] ss:$8 sm:$0xf] %vm4_vm1, %v726_v29   ;;  %731 = vst.msk [vmem:[#allocation0 + $0x106] ss:$8 sm:$0xf0] %vm4_vm1, %v726_v29  }
  0xd1   :  { %v765_v30 = vpop.permute.xlu1 %764  }
  0xd2   :  { %768 = vst.msk [vmem:[#allocation0 + $0x1c6] ss:$8 sm:$0xf] %vm4_vm1, %v765_v30   ;;  %770 = vst.msk [vmem:[#allocation0 + $0x1c6] ss:$8 sm:$0xf0] %vm4_vm1, %v765_v30   ;;  %v752_v31 = vpop.permute.xlu0 %751  }
  0xd3   :  { %755 = vst.msk [vmem:[#allocation0 + $0x186] ss:$8 sm:$0xf] %vm4_vm1, %v752_v31   ;;  %757 = vst.msk [vmem:[#allocation0 + $0x186] ss:$8 sm:$0xf0] %vm4_vm1, %v752_v31  }
  0xd5   :  { %v790_v32 = vpop.permute.xlu1 %789  }
  0xd6   :  { %793 = vst.msk [vmem:[#allocation0 + $0x47] ss:$8 sm:$0xf] %vm4_vm1, %v790_v32   ;;  %795 = vst.msk [vmem:[#allocation0 + $0x47] ss:$8 sm:$0xf0] %vm4_vm1, %v790_v32   ;;  %v777_v33 = vpop.permute.xlu0 %776  }
  0xd7   :  { %780 = vst.msk [vmem:[#allocation0 + $0x7] ss:$8 sm:$0xf] %vm4_vm1, %v777_v33   ;;  %782 = vst.msk [vmem:[#allocation0 + $0x7] ss:$8 sm:$0xf0] %vm4_vm1, %v777_v33  }
  0xd9   :  { %v816_v34 = vpop.permute.xlu1 %815  }
  0xda   :  { %819 = vst.msk [vmem:[#allocation0 + $0xc7] ss:$8 sm:$0xf] %vm4_vm1, %v816_v34   ;;  %821 = vst.msk [vmem:[#allocation0 + $0xc7] ss:$8 sm:$0xf0] %vm4_vm1, %v816_v34   ;;  %v803_v35 = vpop.permute.xlu0 %802  }
  0xdb   :  { %806 = vst.msk [vmem:[#allocation0 + $0x87] ss:$8 sm:$0xf] %vm4_vm1, %v803_v35   ;;  %808 = vst.msk [vmem:[#allocation0 + $0x87] ss:$8 sm:$0xf0] %vm4_vm1, %v803_v35  }
  0xdd   :  { %v842_v36 = vpop.permute.xlu1 %841  }
  0xde   :  { %845 = vst.msk [vmem:[#allocation0 + $0x147] ss:$8 sm:$0xf] %vm4_vm1, %v842_v36   ;;  %847 = vst.msk [vmem:[#allocation0 + $0x147] ss:$8 sm:$0xf0] %vm4_vm1, %v842_v36  }
  0xe1   :  { %v829_v37 = vpop.permute.xlu0 %828  }
  0xe2   :  { %832 = vst.msk [vmem:[#allocation0 + $0x107] ss:$8 sm:$0xf] %vm4_vm1, %v829_v37   ;;  %834 = vst.msk [vmem:[#allocation0 + $0x107] ss:$8 sm:$0xf0] %vm4_vm1, %v829_v37   ;;  %v868_v38 = vpop.permute.xlu1 %867  }
  0xe3   :  { %871 = vst.msk [vmem:[#allocation0 + $0x1c7] ss:$8 sm:$0xf] %vm4_vm1, %v868_v38   ;;  %873 = vst.msk [vmem:[#allocation0 + $0x1c7] ss:$8 sm:$0xf0] %vm4_vm1, %v868_v38  }
  0xe5   :  { %v855_v39 = vpop.permute.xlu0 %854  }
  0xe6   :  { %858 = vst.msk [vmem:[#allocation0 + $0x187] ss:$8 sm:$0xf] %vm4_vm1, %v855_v39   ;;  %860 = vst.msk [vmem:[#allocation0 + $0x187] ss:$8 sm:$0xf0] %vm4_vm1, %v855_v39  }
  0xe7   :  { %1015 = shalt.err (!%p1012_p4)
}
  0xe8   :  { %s1016_s25 = scalar_lea.hbm %s1665_s1, 8192 }
  0xe9   :  { %p1017_p5 = scmp.ne.s32.totalorder %s1665_s1, %s1016_s25  ;;  %p1020_p6 = scmp.lt.u32.totalorder %s1016_s25, %s1665_s1 }
  0xeb   :  { %p1022_p7 = pnand %p1020_p6, %p1017_p5 }
  0xed   :  { %1025 = shalt.err (!%p1022_p7)
}
  0xee   :  { %881 = dma.vmem_to_hbm [thread:$0]  %s879_s21, 8192, %s1665_s1, [#allocation1]  }
  0xef   :  { %1026 = dma.done.wait [#allocation1], 8192  }
  0xf0   :  { %1027 = vsyncadd [#allocation1], 4294959104 }
  0xf1   :  { %883 = vsyncpa [#allocation1], 1 }

// kernel: query_tracker_forward.3
= control target key start
LH: loop header
LB: loop body
LE: loop exit
PB: predicated region body
PF: predicated region fallthrough
CT: control target
= control target key end

     0   :  { %s4826_s6 = smov 1   ;;  %s4827_s10 = smov 2   ;;  %s5819_s0 = inlined_call_operand.smem [shape: u32[33], index: -1, kind: input, shape index: {}] }
   0x1   :  { %s4876_s5 = sld [smem:[%s5819_s0]]   ;;  %s4828_s14 = smov 3  }
   0x2   :  { %s4881_s9 = sld [smem:[%s5819_s0 + %s4826_s6]]   ;;  %s4829_s18 = smov 4  }
   0x3   :  { %s4886_s13 = sld [smem:[%s5819_s0 + %s4827_s10]]   ;;  %s4830_s22 = smov 5  }
   0x4   :  { %s4891_s17 = sld [smem:[%s5819_s0 + %s4828_s14]]   ;;  %s4831_s26 = smov 6  }
   0x5   :  { %s4896_s21 = sld [smem:[%s5819_s0 + %s4829_s18]]   ;;  %s4832_s30 = smov 7  }
   0x6   :  { %s4901_s25 = sld [smem:[%s5819_s0 + %s4830_s22]]   ;;  %s4833_s4 = smov 8  }
   0x7   :  { %5840 = sst [smem:[#allocation3_spill]] %s4876_s5  ;;  %s4834_s10 = smov 9  }
   0x8   :  { %5841 = sst [smem:[#allocation4_spill]] %s4881_s9  ;;  %s4835_s15 = smov 10  }
   0x9   :  { %5842 = sst [smem:[#allocation5_spill]] %s4886_s13  ;;  %s4836_s20 = smov 11  }
   0xa   :  { %5843 = sst [smem:[#allocation6_spill]] %s4891_s17  ;;  %s4838_s1 = smov 13  }
   0xb   :  { %5844 = sst [smem:[#allocation7_spill]] %s4896_s21  ;;  %s4839_s7 = smov 14  }
   0xc   :  { %5845 = sst [smem:[#allocation8_spill]] %s4901_s25  ;;  %s4841_s22 = smov 16  }
   0xd   :  { %s4906_s29 = sld [smem:[%s5819_s0 + %s4831_s26]]   ;;  %s4837_s26 = smov 12  }
   0xe   :  { %s4911_s3 = sld [smem:[%s5819_s0 + %s4832_s30]]   ;;  %s4842_s28 = smov 17  }
   0xf   :  { %s4916_s8 = sld [smem:[%s5819_s0 + %s4833_s4]]   ;;  %s5042_s2 = smov 0  }
  0x10   :  { %s4921_s14 = sld [smem:[%s5819_s0 + %s4834_s10]]   ;;  %s5046_s10 = smov 0  }
  0x11   :  { %s4926_s19 = sld [smem:[%s5819_s0 + %s4835_s15]]   ;;  %s4840_s15 = smov 15  }
  0x12   :  { %s4931_s24 = sld [smem:[%s5819_s0 + %s4836_s20]]   ;;  %s5048_s11 = smov 0  }
  0x13   :  { %5846 = sst [smem:[#allocation9_spill]] %s4906_s29 }
  0x14   :  { %5847 = sst [smem:[#allocation10_spill]] %s4911_s3 }
  0x15   :  { %5848 = sst [smem:[#allocation11_spill]] %s4916_s8 }
  0x16   :  { %5849 = sst [smem:[#allocation12_spill]] %s4921_s14 }
  0x17   :  { %5850 = sst [smem:[#allocation13_spill]] %s4926_s19 }
  0x18   :  { %5851 = sst [smem:[#allocation14_spill]] %s4931_s24 }
  0x19   :  { %s4936_s30 = sld [smem:[%s5819_s0 + %s4837_s26]]  }
  0x1a   :  { %s4941_s6 = sld [smem:[%s5819_s0 + %s4838_s1]]   ;;  %s5040_s1 = smov 0  }
  0x1b   :  { %s4946_s12 = sld [smem:[%s5819_s0 + %s4839_s7]]   ;;  %s4843_s7 = smov 18  }
  0x1c   :  { %s4951_s20 = sld [smem:[%s5819_s0 + %s4840_s15]]   ;;  %s4844_s15 = smov 19  }
  0x1d   :  { %s4956_s27 = sld [smem:[%s5819_s0 + %s4841_s22]]   ;;  %s4845_s22 = smov 20  }
  0x1e   :  { %s4961_s4 = sld [smem:[%s5819_s0 + %s4842_s28]]   ;;  %s4846_s28 = smov 21  }
  0x1f   :  { %5852 = sst [smem:[#allocation15_spill]] %s4936_s30 }
  0x20   :  { %5853 = sst [smem:[#allocation16_spill]] %s4941_s6 }
  0x21   :  { %5854 = sst [smem:[#allocation17_spill]] %s4946_s12 }
  0x22   :  { %5855 = sst [smem:[#allocation18_spill]] %s4951_s20 }
  0x23   :  { %5856 = sst [smem:[#allocation19_spill]] %s4956_s27 }
  0x24   :  { %5857 = sst [smem:[#allocation20_spill]] %s4961_s4 }
  0x25   :  { %s4966_s17 = sld [smem:[%s5819_s0 + %s4843_s7]]   ;;  %s4847_s7 = smov 22  }
  0x26   :  { %s4971_s13 = sld [smem:[%s5819_s0 + %s4844_s15]]   ;;  %s4848_s15 = smov 23  }
  0x27   :  { %s4976_s9 = sld [smem:[%s5819_s0 + %s4845_s22]]   ;;  %s4849_s22 = smov 24  }
  0x28   :  { %s4981_s4 = sld [smem:[%s5819_s0 + %s4846_s28]]   ;;  %s4850_s28 = smov 25  }
  0x2b   :  { %5858 = sst [smem:[#allocation21_spill]] %s4966_s17 }
  0x2c   :  { %5859 = sst [smem:[#allocation22_spill]] %s4971_s13 }
  0x2d   :  { %5860 = sst [smem:[#allocation23_spill]] %s4976_s9 }
  0x2e   :  { %5861 = sst [smem:[#allocation24_spill]] %s4981_s4 }
  0x2f   :  { %s4986_s17 = sld [smem:[%s5819_s0 + %s4847_s7]]   ;;  %s4851_s7 = smov 26  }
  0x30   :  { %s4991_s13 = sld [smem:[%s5819_s0 + %s4848_s15]]   ;;  %s4852_s15 = smov 27  }
  0x31   :  { %s4996_s9 = sld [smem:[%s5819_s0 + %s4849_s22]]   ;;  %s4853_s22 = smov 28  }
  0x32   :  { %s5001_s4 = sld [smem:[%s5819_s0 + %s4850_s28]]   ;;  %s4854_s28 = smov 29  }
  0x35   :  { %5862 = sst [smem:[#allocation25_spill]] %s4986_s17 }
  0x36   :  { %5863 = sst [smem:[#allocation26_spill]] %s4991_s13 }
  0x37   :  { %5864 = sst [smem:[#allocation27_spill]] %s4996_s9 }
  0x38   :  { %5865 = sst [smem:[#allocation28_spill]] %s5001_s4 }
  0x39   :  { %s5006_s17 = sld [smem:[%s5819_s0 + %s4851_s7]]   ;;  %s4855_s7 = smov 30  }
  0x3a   :  { %s5011_s13 = sld [smem:[%s5819_s0 + %s4852_s15]]   ;;  %s4856_s15 = smov 31  }
  0x3b   :  { %s5016_s9 = sld [smem:[%s5819_s0 + %s4853_s22]]   ;;  %s4857_s22 = smov 32  }
  0x3c   :  { %s5021_s4 = sld [smem:[%s5819_s0 + %s4854_s28]]   ;;  %s5038_s28 = smov 0  }
  0x3f   :  { %5866 = sst [smem:[#allocation29_spill]] %s5006_s17 }
  0x40   :  { %5867 = sst [smem:[#allocation30_spill]] %s5011_s13 }
  0x41   :  { %5868 = sst [smem:[#allocation31_spill]] %s5016_s9 }
  0x42   :  { %5869 = sst [smem:[#allocation32_spill]] %s5021_s4 }
  0x43   :  { %s5026_s17 = sld [smem:[%s5819_s0 + %s4855_s7]]   ;;  %s5044_s7 = smov 0  }
  0x44   :  { %s5031_s13 = sld [smem:[%s5819_s0 + %s4856_s15]]   ;;  %s5050_s15 = smov 0  }
  0x45   :  { %s5036_s9 = sld [smem:[%s5819_s0 + %s4857_s22]]  }
  0x49   :  { %5870 = sst [smem:[#allocation33_spill]] %s5026_s17 }
  0x4a   :  { %5871 = sst [smem:[#allocation34_spill]] %s5031_s13 }
  0x4b   :  { %5872 = sst [smem:[#allocation35_spill]] %s5036_s9 }
  0x4c LB: > { %5873 = sst [smem:[#allocation36_spill]] %s4800_s28  ;;  %s87_s0 = sadd.s32 1, %s4812_s7  ;;  %s4824_s15 = sphi %s5050_s15, %s75_s15   ;;  %s4820_s11 = sphi %s5048_s11, %s5974_s11   ;;  %s4816_s10 = sphi %s5046_s10, %s5973_s10   ;;  %s4812_s7 = sphi %s5044_s7, %s5972_s7   ;;  %s4808_s2 = sphi %s5042_s2, %s5971_s2   ;;  %s4804_s1 = sphi %s5040_s1, %s5970_s1   ;;  %s4800_s28 = sphi %s5038_s28, %s5969_s28  }
  0x4d   : > { %5874 = sst [smem:[#allocation37_spill]] %s4804_s1  ;;  %p88_p0 = scmp.ge.s32.totalorder %s87_s0, 2 }
  0x4e   : > { %5875 = sst [smem:[#allocation38_spill]] %s4812_s7  ;;  %s90_s16 = sadd.s32 1, %s4816_s10 }
  0x4f   : > { %5876 = sst [smem:[#allocation39_spill]] %s4816_s10  ;;  %p4028_p1 = scmp.ge.s32.totalorder %s4824_s15, 1 }
  0x50   : > { %5877 = sst [smem:[#allocation40_spill]] %s4820_s11  ;;  %p1152_p2 = scmp.lt.s32.totalorder %s4824_s15, 9 }
  0x51   : > { %5878 = sst [smem:[#allocation41_spill]] %s4824_s15  ;;  %s5976_s0 = smov (%p88_p0, %s87_s0), 0 }
  0x52   : > { %5879 = sst [smem:[#allocation42_spill]] %s5976_s0  ;;  %s5978_s16 = smov (!%p88_p0, %s90_s16), %s4816_s10 }
  0x53   : > { %p1153_p3 = pnand %p4028_p1, %p1152_p2  ;;  %p92_p4 = scmp.ge.s32.totalorder %s5978_s16, 2 }
  0x54   : > { %s94_s18 = sadd.s32 1, %s4820_s11 }
  0x55   : > { %s5980_s16 = smov (%p92_p4, %s5978_s16), 0  ;;  %s5982_s18 = smov (!%p92_p4, %s94_s18), %s4820_s11 }
  0x56   : > { %5880 = sst [smem:[#allocation43_spill]] %s5980_s16  ;;  %p96_p5 = scmp.ge.s32.totalorder %s5982_s18, 2 }
  0x57   : > { %1156 = sbr.rel (%p1153_p3) target bundleno = 5840 (0x16d0), region = 148 }
  0x58   : > { %s5984_s18 = smov (%p96_p5, %s5982_s18), 0 }
  0x59   : > { %5881 = sst [smem:[#allocation44_spill]] %s5984_s18 }
  0x5e   : > { %p1343_p6 = scmp.lt.s32.totalorder %s4808_s2, 1  ;;  %s5882_s5 = sld [smem:[#allocation3_spill]] }
  0x5f   : > { %s5883_s21 = sld [smem:[#allocation7_spill]]  ;;  %p1345_p7 = scmp.lt.s32.totalorder %s4804_s1, 1 }
  0x60   : > { %s5884_s25 = sld [smem:[#allocation8_spill]]  ;;  %p1352_p8 = scmp.lt.s32.totalorder %s4800_s28, 1 }
  0x61   : > { %s5885_s29 = sld [smem:[#allocation9_spill]]  ;;  %p1463_p9 = scmp.eq.s32.totalorder %s4804_s1, 0 }
  0x62   : > { %s5986_s2 = smov (!%p1343_p6, %s4808_s2), 1  ;;  %s5891_s19 = sld [smem:[#allocation13_spill]] }
  0x63   : > { %5887 = sst [smem:[#allocation45_spill]] %s5986_s2  ;;  %s4607_s23 = smul.u32 26, %s5986_s2 }
  0x64   : > { %s5090_s22 = scalar_select %p1345_p7, %s4804_s1, 1 }
  0x65   : > { %s5097_s0 = scalar_select %p1352_p8, %s4800_s28, 1 }
  0x66   : > { %5889 = sst [smem:[#allocation46_spill]] %s5090_s22  ;;  %s4606_s18 = smul.u32 13, %s5090_s22 }
  0x67   : > { %s5895_s12 = sld [smem:[#allocation17_spill]]  ;;  %s5896_s20 = sld [smem:[#allocation18_spill]] }
  0x68   : > { %s1349_s11 = sadd.s32 %s4607_s23, %s4606_s18  ;;  %p1464_p10 = scmp.eq.s32.totalorder %s4800_s28, 0 }
  0x69   : > { %s5897_s27 = sld [smem:[#allocation19_spill]]  ;;  %s4029_s26 = sshll.u32 %s1349_s11, 3 }
  0x6a   : > { %s4137_s7 = sshll.u32 %s5097_s0, 4  ;;  %s5102_s15 = scalar_lea.vmem %s5882_s5, %s4029_s26 }
  0x6b   : > { %5900 = sst [smem:[#allocation47_spill]] %s5102_s15  ;;  %s5105_s17 = scalar_lea.vmem %s5883_s21, %s4137_s7 }
  0x6c   : > { %5902 = sst [smem:[#allocation48_spill]] %s5105_s17  ;;  %s5903_s9 = sld [smem:[#allocation23_spill]] }
  0x6d   : > { %s5108_s2 = scalar_lea.vmem %s5884_s25, %s4137_s7  ;;  %s5905_s18 = sld [smem:[#allocation24_spill]] }
  0x6e   : > { %5904 = sst [smem:[#allocation49_spill]] %s5108_s2  ;;  %s5111_s23 = scalar_lea.vmem %s5885_s29, %s4137_s7 }
  0x6f   : > { %5906 = sst [smem:[#allocation50_spill]] %s5111_s23  ;;  %s5907_s11 = sld [smem:[#allocation25_spill]] }
  0x70   : > { %s5908_s1 = sld [smem:[#allocation26_spill]]  ;;  %s5909_s4 = sld [smem:[#allocation27_spill]] }
  0x71   : > { %s5910_s5 = sld [smem:[#allocation28_spill]]  ;;  %s5120_s15 = scalar_lea.vmem %s5891_s19, %s4137_s7 }
  0x72   : > { %5911 = sst [smem:[#allocation51_spill]] %s5120_s15  ;;  %s5912_s25 = sld [smem:[#allocation29_spill]] }
  0x73   : > { %s5913_s17 = sld [smem:[#allocation30_spill]]  ;;  %s5914_s23 = sld [smem:[#allocation31_spill]] }
  0x74   : > { %s5129_s3 = scalar_lea.vmem %s5895_s12, %s4137_s7  ;;  %s5916_s28 = sld [smem:[#allocation32_spill]] }
  0x75   : > { %5915 = sst [smem:[#allocation52_spill]] %s5129_s3  ;;  %s5132_s22 = scalar_lea.vmem %s5896_s20, %s4137_s7 }
  0x76   : > { %5917 = sst [smem:[#allocation53_spill]] %s5132_s22  ;;  %s5918_s26 = sld [smem:[#allocation46_spill]] }
  0x77   : > { %s5135_s14 = scalar_lea.vmem %s5897_s27, %s4137_s7  ;;  %s5922_s24 = sld [smem:[#allocation45_spill]] }
  0x78   : > { %5919 = sst [smem:[#allocation46_spill]] %s5135_s14  ;;  %s5923_s8 = sld [smem:[#allocation35_spill]] }
  0x79   : > { %s5144_s29 = scalar_lea.vmem %s5903_s9, %s4137_s7  ;;  %s1421_s6 = scalar_lea.vmem %s5905_s18, %s5097_s0 }
  0x7a   : > { %5924 = sst [smem:[#allocation45_spill]] %s5144_s29  ;;  %s1424_s12 = scalar_lea.vmem %s5907_s11, %s5097_s0 }
  0x7b   : > { %s1427_s3 = scalar_lea.vmem %s5908_s1, %s5097_s0  ;;  %s5153_s20 = scalar_lea.vmem %s5909_s4, %s4137_s7 }
  0x7c   : > { %s1435_s22 = scalar_lea.vmem %s5910_s5, %s5097_s0  ;;  %s4146_s27 = sshll.u32 %s5097_s0, 5 }
  0x7d   : > { %s5159_s14 = scalar_lea.vmem %s5912_s25, %s4146_s27  ;;  %s1443_s10 = scalar_lea.vmem %s5913_s17, %s5097_s0 }
  0x7e   : > { %s1446_s21 = scalar_lea.vmem %s5914_s23, %s5097_s0  ;;  %s1449_s2 = scalar_lea.vmem %s5916_s28, %s5097_s0 }
  0x7f   : > { %s5925_s16 = sshll.u32 %s5918_s26, 1  ;;  %p1465_p11 = pnand %p1464_p10, %p1463_p9 }
  0x80   : > { %s1457_s13 = sadd.s32 %s5925_s16, %s5097_s0  ;;  %s5926_s30 = sshll.u32 %s5922_s24, 2  ;;  %vm1470_vm0 = vcmask (!%p1465_p11), 261120  }
  0x81   : > { %s1459_s9 = sadd.s32 %s5926_s30, %s1457_s13  ;;  %1468 = sbr.rel (%p1465_p11) target bundleno = 138 (0x8a), region = 152 }
  0x82   : > { %s4052_s29 = sshll.u32 %s1459_s9, 3  ;;  %s5927_s4 = sld [smem:[#allocation4_spill]] (!%p1465_p11) }
  0x83   : > { %s5177_s18 = scalar_lea.vmem %s5923_s8, %s4052_s29 }
  0x88   : > { %v1469_v0 = vld [vmem:[%s5927_s4] sm:$0xff] }
  0x89   : > { %1471 = vst.msk [vmem:[#allocation2] sm:$0xff] %vm1470_vm0, %v1469_v0 }
  0x8a PF: > { %s5928_s5 = sld [smem:[#allocation48_spill]]  ;;  %s5929_s17 = sld [smem:[#allocation5_spill]]  ;;  %v4858_v2 = vmov 0.0   ;;  %vm4859_vm1 = vmmov 0   ;;  %vm1569_vm2 = vcmask 261120   ;;  %vm1883_vm3 = vcmask 64512  }
  0x8b   : > { %s5930_s25 = sld [smem:[#allocation49_spill]]  ;;  %s5931_s27 = sld [smem:[#allocation47_spill]]  ;;  %4274 = vmatprep.subr.bf16.mxu1 %v4858_v2  ;;  %4314 = vmatprep.subr.bf16.mxu0 %v4858_v2  ;;  %vm1948_vm4 = vcmask 818176   ;;  %vm1964_vm5 = vcmask 1041408   ;;  %vm2510_vm6 = vcmask 130048   ;;  %vm2512_vm7 = vcmask 195584  }
  0x8c   : > { %s5932_s29 = sld [smem:[#allocation6_spill]]  ;;  %4278 = vmatprep.mubr.msk.bf16.mxu1 %vm4859_vm1, %v4858_v2  ;;  %4318 = vmatprep.mubr.msk.bf16.mxu0 %vm4859_vm1, %v4858_v2  ;;  %s5933_s8 = sld [smem:[#allocation11_spill]]  ;;  %vm2875_vm8 = vcmask 1043456   ;;  %vm3467_vm9 = vcmask 523264  }
  0x8d   : > { %s4860_s24 = smov 120   ;;  %s5935_s30 = sld [smem:[#allocation10_spill]] }
  0x8e   : > { %s5937_s1 = sld [smem:[#allocation50_spill]]  ;;  %s5938_s7 = sld [smem:[#allocation12_spill]] }
  0x8f   : > { %s4861_s23 = smov 112   ;;  %s4862_s11 = smov 104  }
  0x90   : > { %v4706_v1 = vld [vmem:[%s5928_s5] sm:$0xff]   ;;  %v4707_v3 = vld [vmem:[%s5928_s5 + $0x8] sm:$0xff]   ;;  %s4863_s26 = smov 16   ;;  %s4864_s16 = smov 8  }
  0x91   : > { %4275 = vmatpush3.bf16.msra.mxu1 %v4706_v1  ;;  %v1472_v4 = vld [vmem:[#allocation2] sm:$0xff]  ;;  %v5195_v10 = vld [vmem:[%s5931_s27 + $0x8] sm:$0xff]  ;;  %v5208_v16 = vld [vmem:[%s5931_s27 + $0x10] sm:$0xff]  ;;  %s5940_s13 = sld [smem:[#allocation51_spill]]  ;;  %s4865_s9 = smov 24  }
  0x92   : > { %v1486_v5 = vld [vmem:[%s5929_s17] sm:$0xff]  ;;  %4276 = vmatprep.subr.bf16.mxu1 %v4858_v2  ;;  %v1488_v12 = vld [vmem:[%s5932_s29 + $0x8] sm:$0xff]  ;;  %v5211_v17 = vld [vmem:[%s5931_s27 + $0x18] sm:$0xff]  ;;  %s5934_s19 = scalar_lea.vmem %s5933_s8, %s5097_s0  ;;  %s5941_s4 = sld [smem:[#allocation14_spill]] }
  0x93   : > { %v1522_v6 = vadd.f32 %v1486_v5, %v1472_v4  ;;  %v4708_v8 = vld [vmem:[%s5930_s25] sm:$0xff]   ;;  %v1525_v14 = vadd.f32 %v1488_v12, %v5195_v10  ;;  %v4709_v15 = vld [vmem:[%s5930_s25 + $0x8] sm:$0xff]   ;;  %v1489_v19 = vld [vmem:[%s5932_s29 + $0x10] sm:$0xff]  ;;  %s5936_s28 = scalar_lea.vmem %s5935_s30, %s5097_s0  ;;  %s5943_s25 = sld [smem:[#allocation46_spill]] }
  0x94   : > { %v5192_v9 = vld [vmem:[%s5931_s27] sm:$0xff]  ;;  %v1490_v20 = vld [vmem:[%s5932_s29 + $0x18] sm:$0xff]  ;;  %v1526_v21 = vadd.f32 %v1489_v19, %v5208_v16  ;;  %v5225_v24 = vld [vmem:[%s5931_s27 + $0x28] sm:$0xff]  ;;  %s5939_s15 = scalar_lea.vmem %s5938_s7, %s5097_s0  ;;  %s5945_s8 = sld [smem:[#allocation15_spill]] }
  0x95   : > { %v1523_v7 = vpack.c.bf16 %v1522_v6, %v1522_v6  ;;  %4277 = vmatpush3.bf16.msra.mxu1 %v4707_v3  ;;  %v1487_v11 = vld [vmem:[%s5932_s29] sm:$0xff]  ;;  %v1527_v22 = vadd.f32 %v1490_v20, %v5211_v17  ;;  %v1492_v26 = vld [vmem:[%s5932_s29 + $0x28] sm:$0xff]  ;;  %v5235_v31 = vld [vmem:[%s5931_s27 + $0x30] sm:$0xff]  ;;  %s5947_s30 = sld [smem:[#allocation53_spill]]  ;;  %s5950_s7 = sld [smem:[#allocation22_spill]] }
  0x96   : > { %4282 = vmatprep.subr.bf16.mxu1 %v4858_v2  ;;  %v1524_v13 = vadd.f32 %v1487_v11, %v5192_v9  ;;  %v5222_v23 = vld [vmem:[%s5931_s27 + $0x20] sm:$0xff]  ;;  %v1529_v29 = vadd.f32 %v1492_v26, %v5225_v24  ;;  %v5238_v32 = vld [vmem:[%s5931_s27 + $0x38] sm:$0xff]  ;;  %v1493_v33 = vld [vmem:[%s5932_s29 + $0x30] sm:$0xff] }
  0x97   : > { %v1491_v25 = vld [vmem:[%s5932_s29 + $0x20] sm:$0xff]  ;;  %v1538_v27 = vpack.c.bf16 %v1527_v22, %v1526_v21  ;;  %v1494_v34 = vld [vmem:[%s5932_s29 + $0x38] sm:$0xff]  ;;  %v1530_v35 = vadd.f32 %v1493_v33, %v5235_v31  ;;  %v5251_v39 = vld [vmem:[%s5931_s27 + $0x48] sm:$0xff] }
  0x98   : > { %4279 = vmatmul.mubr.msk.bf16.vlgmr.msra.gmra.mrb[0].mxu1 %vm1569_vm2, %v1523_v7  ;;  %v1537_v18 = vpack.c.bf16 %v1525_v14, %v1524_v13  ;;  %v1528_v28 = vadd.f32 %v1491_v25, %v5222_v23  ;;  %v1531_v36 = vadd.f32 %v1494_v34, %v5238_v32  ;;  %v5248_v38 = vld [vmem:[%s5931_s27 + $0x40] sm:$0xff]  ;;  %v1496_v41 = vld [vmem:[%s5932_s29 + $0x48] sm:$0xff]  ;;  %v5261_v45 = vld [vmem:[%s5931_s27 + $0x50] sm:$0xff]  ;;  %s5942_s5 = scalar_lea.vmem %s5941_s4, %s5097_s0 }
  0x99   : > { %4283 = vmatpush3.bf16.msra.mxu1 %v4708_v8  ;;  %4286 = vmatprep.mubr.msk.bf16.mxu1 %vm4859_vm1, %v4858_v2  ;;  %v1495_v40 = vld [vmem:[%s5932_s29 + $0x40] sm:$0xff]  ;;  %v1533_v43 = vadd.f32 %v1496_v41, %v5251_v39  ;;  %v5264_v46 = vld [vmem:[%s5931_s27 + $0x58] sm:$0xff]  ;;  %v1497_v47 = vld [vmem:[%s5932_s29 + $0x50] sm:$0xff] }
  0x9a   : > { %4284 = vmatprep.subr.bf16.mxu1 %v4858_v2  ;;  %v1539_v30 = vpack.c.bf16 %v1529_v29, %v1528_v28  ;;  %v1540_v37 = vpack.c.bf16 %v1531_v36, %v1530_v35  ;;  %v1532_v42 = vadd.f32 %v1495_v40, %v5248_v38  ;;  %v1498_v48 = vld [vmem:[%s5932_s29 + $0x58] sm:$0xff]  ;;  %v1534_v49 = vadd.f32 %v1497_v47, %v5261_v45  ;;  %v5274_v52 = vld [vmem:[%s5931_s27 + $0x60] sm:$0xf]  ;;  %s5944_s27 = sld [smem:[#allocation52_spill]] }
  0x9b   : > { %v1535_v50 = vadd.f32 %v1498_v48, %v5264_v46  ;;  %v1499_v53 = vld [vmem:[%s5932_s29 + $0x60] sm:$0xf] }
  0x9c   : > { %v1541_v44 = vpack.c.bf16 %v1533_v43, %v1532_v42  ;;  %v1536_v54 = vadd.f32 %v1499_v53, %v5274_v52  ;;  %v5289_v60 = vld [vmem:[%s5934_s19] ss:$0 sm:$0xff]  ;;  %s5946_s19 = sld [smem:[#allocation16_spill]] }
  0x9d   : > { %4285 = vmatpush3.bf16.msra.mxu1 %v4709_v15  ;;  %v1542_v51 = vpack.c.bf16 %v1535_v50, %v1534_v49  ;;  %v4053_v49 = vld [vmem:[%s5936_s28] ss:$0 sm:$0xff]  ;;  %s5948_s28 = scalar_lea.vmem %s5945_s8, %s5097_s0 }
  0x9e   : > { %4346 = vmatprep.subr.bf16.mxu1 %v4858_v2  ;;  %v1543_v55 = vpack.c.bf16 %v1536_v54, %v1536_v54 }
  0xa0   : > { %4287 = vmatmul.mubr.msk.bf16.vlgmr.msra.gmra.mrb[4].mxu1 %vm1569_vm2, %v1537_v18 }
  0xa1   : > { %4290 = vmatprep.mubr.msk.bf16.mxu1 %vm4859_vm1, %v4858_v2 }
  0xa8   : > { %4291 = vmatmul.mubr.msk.bf16.gmra.mrb[8].mxu1 %vm1569_vm2, %v1538_v27 }
  0xa9   : > { %4294 = vmatprep.mubr.msk.bf16.mxu1 %vm4859_vm1, %v4858_v2 }
  0xb0   : > { %4295 = vmatmul.mubr.msk.bf16.gmra.mrb[12].mxu1 %vm1569_vm2, %v1539_v30 }
  0xb1   : > { %4298 = vmatprep.mubr.msk.bf16.mxu1 %vm4859_vm1, %v4858_v2 }
  0xb8   : > { %4299 = vmatmul.mubr.msk.bf16.gmra.mrb[16].mxu1 %vm1569_vm2, %v1540_v37 }
  0xb9   : > { %4302 = vmatprep.mubr.msk.bf16.mxu1 %vm4859_vm1, %v4858_v2 }
  0xc0   : > { %4303 = vmatmul.mubr.msk.bf16.gmra.mrb[20].mxu1 %vm1569_vm2, %v1541_v44 }
  0xc1   : > { %4306 = vmatprep.mubr.msk.bf16.mxu1 %vm4859_vm1, %v4858_v2 }
  0xc8   : > { %4307 = vmatmul.mubr.msk.bf16.gmra.mrb[24].mxu1 %vm1569_vm2, %v1542_v51 }
  0xc9   : > { %4310 = vmatprep.mubr.msk.bf16.mxu1 %vm4859_vm1, %v4858_v2 }
  0xd0   : > { %4311 = vmatmul.mubr.msk.bf16.gmra.mrb[28].mxu1 %vm1569_vm2, %v1543_v55 }
  0xd1   : > { %4360 = vmatprep.mubr.msk.bf16.mxu1 %vm4859_vm1, %v4858_v2 }
 0x16b   : > { %v5284_v56 = vpop.f32.mrb[0].mxu1 }
 0x16c   : > { %v4280_v57 = vpop.f32.mrb[1].mxu1  ;;  %v1608_v53 = vadd.f32 %v4053_v49, %v5284_v56 }
 0x16d   : > { %v1610_v58 = vpop.f32.mrb[2].mxu1 }
 0x16e   : > { %v4281_v59 = vpop.f32.mrb[3].mxu1 }
 0x173   : > { %v1688_v61 = vpop.f32.mrb[4].mxu1 }
 0x174   : > { %v4288_v62 = vpop.f32.mrb[5].mxu1  ;;  %v1689_v0 = vadd.f32 %v5289_v60, %v1688_v61  ;;  %v1613_v61 = vmul.f32 0.35355338, %v1608_v53 }
 0x175   : > { %v1691_v63 = vpop.f32.mrb[6].mxu1 }
 0x176   : > { %v1692_v1 = vadd.f32 %v5289_v60, %v1691_v63  ;;  %v4289_v3 = vpop.f32.mrb[7].mxu1 }
 0x178   : > { %v5293_v4 = vpack.c.bf16 %v1692_v1, %v1689_v0  ;;  %v5348_v0 = vpack.c.bf16 %v1613_v61, %v1613_v61 }
 0x17a   : > { %2018 = vrot.lane.b32.xlu0 %v5293_v4, %s4860_s24  ;;  %v1888_v5 = vsel %vm1883_vm3, %v5293_v4, 0 }
 0x17b   : > { %v1696_v6 = vpop.f32.mrb[8].mxu1  ;;  %4347 = vmatpush3.bf16.xpose.msra.mxu1 %v1888_v5 }
 0x17c   : > { %v4292_v7 = vpop.f32.mrb[9].mxu1  ;;  %4348 = vmatprep.subr.bf16.mxu1 %v4858_v2  ;;  %v1697_v11 = vadd.f32 %v5289_v60, %v1696_v6  ;;  %v4710_v6 = vld [vmem:[%s5937_s1] sm:$0xff]  }
 0x17d   : > { %v1699_v8 = vpop.f32.mrb[10].mxu1  ;;  %4315 = vmatpush3.bf16.msra.mxu0 %v4710_v6 }
 0x17e   : > { %v1700_v12 = vadd.f32 %v5289_v60, %v1699_v8  ;;  %v4293_v13 = vpop.f32.mrb[11].mxu1  ;;  %4316 = vmatprep.subr.bf16.mxu0 %v4858_v2 }
 0x17f   : > { %v1545_v13 = vpack.c.bf16 %v5211_v17, %v5208_v16  ;;  %v1548_v16 = vpack.c.bf16 %v5251_v39, %v5248_v38  ;;  %v1549_v17 = vpack.c.bf16 %v5264_v46, %v5261_v45 }
 0x180   : > { %v5302_v14 = vpack.c.bf16 %v1700_v12, %v1697_v11  ;;  %v4711_v11 = vld [vmem:[%s5937_s1 + $0x8] sm:$0xff]   ;;  %s5949_s1 = scalar_lea.vmem %s5946_s19, %s5097_s0 }
 0x181   : > { %4317 = vmatpush3.bf16.msra.mxu0 %v4711_v11 }
 0x182   : > { %2020 = vrot.lane.b32.xlu0 %v5302_v14, %s4860_s24  ;;  %v1891_v15 = vsel %vm1883_vm3, %v5302_v14, 0  ;;  %4364 = vmatprep.subr.bf16.mxu0 %v4858_v2 }
 0x183   : > { %v1704_v18 = vpop.f32.mrb[12].mxu1  ;;  %4349 = vmatpush3.bf16.xpose.msra.mxu1 %v1891_v15 }
 0x184   : > { %v4296_v19 = vpop.f32.mrb[13].mxu1  ;;  %4350 = vmatprep.subr.bf16.mxu1 %v4858_v2  ;;  %v1705_v21 = vadd.f32 %v5289_v60, %v1704_v18 }
 0x185   : > { %v1707_v20 = vpop.f32.mrb[14].mxu1 }
 0x186   : > { %v1708_v22 = vadd.f32 %v5289_v60, %v1707_v20  ;;  %v4297_v25 = vpop.f32.mrb[15].mxu1 }
 0x188   : > { %v5311_v26 = vpack.c.bf16 %v1708_v22, %v1705_v21 }
 0x18a   : > { %2022 = vrot.lane.b32.xlu1 %v5311_v26, %s4860_s24  ;;  %v1894_v27 = vsel %vm1883_vm3, %v5311_v26, 0 }
 0x18b   : > { %v1712_v28 = vpop.f32.mrb[16].mxu1  ;;  %4351 = vmatpush3.bf16.xpose.msra.mxu1 %v1894_v27 }
 0x18c   : > { %v4300_v29 = vpop.f32.mrb[17].mxu1  ;;  %4352 = vmatprep.subr.bf16.mxu1 %v4858_v2  ;;  %v1713_v33 = vadd.f32 %v5289_v60, %v1712_v28 }
 0x18d   : > { %v1715_v30 = vpop.f32.mrb[18].mxu1 }
 0x18e   : > { %v1716_v34 = vadd.f32 %v5289_v60, %v1715_v30  ;;  %v4301_v35 = vpop.f32.mrb[19].mxu1 }
 0x190   : > { %v5320_v36 = vpack.c.bf16 %v1716_v34, %v1713_v33  ;;  %v4067_v34 = vld [vmem:[%s5939_s15] ss:$0 sm:$0xff]  ;;  %s5951_s15 = sld [smem:[#allocation20_spill]] }
 0x192   : > { %2024 = vrot.lane.b32.xlu1 %v5320_v36, %s4860_s24  ;;  %v1897_v37 = vsel %vm1883_vm3, %v5320_v36, 0 }
 0x193   : > { %v1720_v40 = vpop.f32.mrb[20].mxu1  ;;  %4353 = vmatpush3.bf16.xpose.msra.mxu1 %v1897_v37 }
 0x194   : > { %v4304_v41 = vpop.f32.mrb[21].mxu1  ;;  %4354 = vmatprep.subr.bf16.mxu1 %v4858_v2  ;;  %v1721_v43 = vadd.f32 %v5289_v60, %v1720_v40 }
 0x195   : > { %v1723_v42 = vpop.f32.mrb[22].mxu1 }
 0x196   : > { %v1724_v44 = vadd.f32 %v5289_v60, %v1723_v42  ;;  %v4305_v47 = vpop.f32.mrb[23].mxu1  ;;  %s5953_s4 = scalar_lea.vmem %s5951_s15, %s5097_s0 }
 0x198   : > { %v5329_v48 = vpack.c.bf16 %v1724_v44, %v1721_v43 }
 0x19a   : > { %2026 = vrot.lane.b32.xlu0 %v5329_v48, %s4860_s24  ;;  %v1900_v50 = vsel %vm1883_vm3, %v5329_v48, 0 }
 0x19b   : > { %v1728_v51 = vpop.f32.mrb[24].mxu1  ;;  %4355 = vmatpush3.bf16.xpose.msra.mxu1 %v1900_v50 }
 0x19c   : > { %v4308_v54 = vpop.f32.mrb[25].mxu1  ;;  %4356 = vmatprep.subr.bf16.mxu1 %v4858_v2  ;;  %v1729_v57 = vadd.f32 %v5289_v60, %v1728_v51 }
 0x19d   : > { %v1731_v55 = vpop.f32.mrb[26].mxu1 }
 0x19e   : > { %v1732_v58 = vadd.f32 %v5289_v60, %v1731_v55  ;;  %v4309_v59 = vpop.f32.mrb[27].mxu1 }
 0x1a0   : > { %v5342_v62 = vpack.c.bf16 %v1732_v58, %v1729_v57 }
 0x1a2   : > { %2028 = vrot.lane.b32.xlu1 %v5342_v62, %s4860_s24  ;;  %v1903_v56 = vsel %vm1883_vm3, %v5342_v62, 0 }
 0x1a3   : > { %v1736_v63 = vpop.f32.mrb[28].mxu1  ;;  %4357 = vmatpush3.bf16.xpose.msra.mxu1 %v1903_v56 }
 0x1a4   : > { %v1737_v1 = vadd.f32 %v5289_v60, %v1736_v63  ;;  %v4312_v3 = vpop.f32.mrb[29].mxu1  ;;  %4358 = vmatprep.subr.bf16.mxu1 %v4858_v2  ;;  %v1544_v60 = vpack.c.bf16 %v5195_v10, %v5192_v9  ;;  %v1546_v9 = vpack.c.bf16 %v5225_v24, %v5222_v23  ;;  %v1547_v10 = vpack.c.bf16 %v5238_v32, %v5235_v31 }
 0x1a5   : > { %v1739_v5 = vpop.f32.mrb[30].mxu1  ;;  %v1550_v23 = vpack.c.bf16 %v5274_v52, %v5274_v52 }
 0x1a6   : > { %v5353_v7 = vpack.c.bf16 %v1737_v1, %v1737_v1  ;;  %2009 = vrot.lane.b32.xlu1 %v5348_v0, %s4860_s24  ;;  %v4313_v8 = vpop.f32.mrb[31].mxu1  ;;  %4319 = vmatmul.mubr.msk.bf16.vlgmr.msra.gmra.mrb[0].mxu0 %vm1569_vm2, %v1544_v60 }
 0x1a7   : > { %4322 = vmatprep.mubr.msk.bf16.mxu0 %vm4859_vm1, %v4858_v2 }
 0x1a8   : > { %2030 = vrot.lane.b32.xlu0 %v5353_v7, %s4860_s24  ;;  %v1906_v12 = vsel %vm1883_vm3, %v5353_v7, 0 }
 0x1ab   : > { %4359 = vmatpush3.bf16.xpose.msra.mxu1 %v1906_v12 }
 0x1ac   : > { %4382 = vmatprep.subr.bf16.mxu1 %v4858_v2 }
 0x1ae   : > { %4323 = vmatmul.mubr.msk.bf16.gmra.mrb[4].mxu0 %vm1569_vm2, %v1545_v13 }
 0x1af   : > { %4326 = vmatprep.mubr.msk.bf16.mxu0 %vm4859_vm1, %v4858_v2 }
 0x1b2   : > { %4361 = vmatmul.mubr.msk.bf16.vlgmr.msra.gmra.mrb[32].mxu1 %vm1883_vm3, %v5348_v0 }
 0x1b3   : > { %4396 = vmatprep.mubr.msk.bf16.mxu1 %vm4859_vm1, %v4858_v2 }
 0x1b6   : > { %4327 = vmatmul.mubr.msk.bf16.gmra.mrb[8].mxu0 %vm1569_vm2, %v1546_v9 }
 0x1b7   : > { %4330 = vmatprep.mubr.msk.bf16.mxu0 %vm4859_vm1, %v4858_v2 }
 0x1be   : > { %4331 = vmatmul.mubr.msk.bf16.gmra.mrb[12].mxu0 %vm1569_vm2, %v1547_v10 }
 0x1bf   : > { %4334 = vmatprep.mubr.msk.bf16.mxu0 %vm4859_vm1, %v4858_v2 }
 0x1c6   : > { %4335 = vmatmul.mubr.msk.bf16.gmra.mrb[16].mxu0 %vm1569_vm2, %v1548_v16 }
 0x1c7   : > { %4338 = vmatprep.mubr.msk.bf16.mxu0 %vm4859_vm1, %v4858_v2 }
 0x1ce   : > { %4339 = vmatmul.mubr.msk.bf16.gmra.mrb[20].mxu0 %vm1569_vm2, %v1549_v17 }
 0x1cf   : > { %4342 = vmatprep.mubr.msk.bf16.mxu0 %vm4859_vm1, %v4858_v2 }
 0x1d6   : > { %4343 = vmatmul.mubr.msk.bf16.gmra.mrb[24].mxu0 %vm1569_vm2, %v1550_v23 }
 0x1d7   : > { %4378 = vmatprep.mubr.msk.bf16.mxu0 %vm4859_vm1, %v4858_v2 }
 0x1ec   : > { %v2019_v24 = vpop.permute.xlu0 %2018 }
 0x1ed   : > { %v2036_v31 = vsel %vm1883_vm3, %v2019_v24, 0 }
 0x1ee   : > { %4383 = vmatpush3.bf16.xpose.msra.mxu1 %v2036_v31 }
 0x1ef   : > { %4384 = vmatprep.subr.bf16.mxu1 %v4858_v2 }
 0x1f4   : > { %v2021_v32 = vpop.permute.xlu0 %2020 }
 0x1f5   : > { %v2039_v38 = vsel %vm1883_vm3, %v2021_v32, 0 }
 0x1f6   : > { %4385 = vmatpush3.bf16.xpose.msra.mxu1 %v2039_v38 }
 0x1f7   : > { %4386 = vmatprep.subr.bf16.mxu1 %v4858_v2 }
 0x1fc   : > { %v2023_v39 = vpop.permute.xlu1 %2022 }
 0x1fd   : > { %v2042_v45 = vsel %vm1883_vm3, %v2023_v39, 0 }
 0x1fe   : > { %4387 = vmatpush3.bf16.xpose.msra.mxu1 %v2042_v45 }
 0x1ff   : > { %4388 = vmatprep.subr.bf16.mxu1 %v4858_v2 }
 0x204   : > { %v2025_v46 = vpop.permute.xlu1 %2024 }
 0x205   : > { %v2045_v52 = vsel %vm1883_vm3, %v2025_v46, 0 }
 0x206   : > { %4389 = vmatpush3.bf16.xpose.msra.mxu1 %v2045_v52 }
 0x207   : > { %4390 = vmatprep.subr.bf16.mxu1 %v4858_v2 }
 0x20c   : > { %v2027_v15 = vpop.permute.xlu0 %2026 }
 0x20d   : > { %v2048_v18 = vsel %vm1883_vm3, %v2027_v15, 0 }
 0x20e   : > { %4391 = vmatpush3.bf16.xpose.msra.mxu1 %v2048_v18 }
 0x20f   : > { %4392 = vmatprep.subr.bf16.mxu1 %v4858_v2 }
 0x214   : > { %v2029_v19 = vpop.permute.xlu1 %2028 }
 0x215   : > { %v2051_v20 = vsel %vm1883_vm3, %v2029_v19, 0 }
 0x216   : > { %4393 = vmatpush3.bf16.xpose.msra.mxu1 %v2051_v20 }
 0x217   : > { %4394 = vmatprep.subr.bf16.mxu1 %v4858_v2 }
 0x218   : > { %v2010_v25 = vpop.permute.xlu1 %2009 }
 0x21a   : > { %v2031_v21 = vpop.permute.xlu0 %2030 }
 0x21b   : > { %v2054_v22 = vsel %vm1883_vm3, %v2031_v21, 0 }
 0x21e   : > { %4395 = vmatpush3.bf16.xpose.msra.mxu1 %v2054_v22 }
 0x21f   : > { %4436 = vmatprep.subr.bf16.mxu1 %v4858_v2 }
 0x225   : > { %4397 = vmatmul.mubr.msk.bf16.vlgmr.msra.gmra.mrb[36].mxu1 %vm1883_vm3, %v2010_v25 }
 0x226   : > { %4450 = vmatprep.mubr.msk.bf16.mxu1 %vm4859_vm1, %v4858_v2 }
 0x279   : > { %v1822_v35 = vpop.f32.mrb[0].mxu0 }
 0x27a   : > { %v1823_v37 = vadd.f32 %v4067_v34, %v1822_v35  ;;  %v4320_v40 = vpop.f32.mrb[1].mxu0 }
 0x27b   : > { %v1825_v41 = vpop.f32.mrb[2].mxu0 }
 0x27c   : > { %v1826_v42 = vadd.f32 %v4067_v34, %v1825_v41  ;;  %v4321_v43 = vpop.f32.mrb[3].mxu0 }
 0x27e   : > { %v5428_v47 = vpack.c.bf16 %v1826_v42, %v1823_v37 }
 0x280   : > { %4365 = vmatpush3.bf16.msra.mxu0 %v5428_v47 }
 0x281   : > { %v1830_v44 = vpop.f32.mrb[4].mxu0  ;;  %4366 = vmatprep.subr.bf16.mxu0 %v4858_v2 }
 0x282   : > { %v1831_v49 = vadd.f32 %v4067_v34, %v1830_v44  ;;  %v4324_v50 = vpop.f32.mrb[5].mxu0 }
 0x283   : > { %v1833_v51 = vpop.f32.mrb[6].mxu0 }
 0x284   : > { %v1834_v53 = vadd.f32 %v4067_v34, %v1833_v51  ;;  %v4325_v54 = vpop.f32.mrb[7].mxu0 }
 0x285   : > { %v5421_v27 = vpop.f32.mrb[32].mxu1 }
 0x286   : > { %v4362_v28 = vpop.f32.mrb[33].mxu1  ;;  %v1949_v29 = vsel %vm1948_vm4, %v5421_v27, -inf  ;;  %v5432_v57 = vpack.c.bf16 %v1834_v53, %v1831_v49 }
 0x287   : > { %1950 = vmax.xlane.f32.xlu0 %v1949_v29  ;;  %v1945_v30 = vpop.f32.mrb[34].mxu1 }
 0x288   : > { %v4363_v33 = vpop.f32.mrb[35].mxu1  ;;  %4367 = vmatpush3.bf16.msra.mxu0 %v5432_v57 }
 0x289   : > { %v1838_v55 = vpop.f32.mrb[8].mxu0  ;;  %4368 = vmatprep.subr.bf16.mxu0 %v4858_v2 }
 0x28a   : > { %v1839_v58 = vadd.f32 %v4067_v34, %v1838_v55  ;;  %v4328_v59 = vpop.f32.mrb[9].mxu0 }
 0x28b   : > { %v1841_v61 = vpop.f32.mrb[10].mxu0 }
 0x28c   : > { %v1842_v56 = vadd.f32 %v4067_v34, %v1841_v61  ;;  %v4329_v63 = vpop.f32.mrb[11].mxu0 }
 0x28e   : > { %v5436_v3 = vpack.c.bf16 %v1842_v56, %v1839_v58 }
 0x290   : > { %4369 = vmatpush3.bf16.msra.mxu0 %v5436_v3 }
 0x291   : > { %v1846_v1 = vpop.f32.mrb[12].mxu0  ;;  %4370 = vmatprep.subr.bf16.mxu0 %v4858_v2 }
 0x292   : > { %v1847_v5 = vadd.f32 %v4067_v34, %v1846_v1  ;;  %v4332_v6 = vpop.f32.mrb[13].mxu0 }
 0x293   : > { %v1849_v8 = vpop.f32.mrb[14].mxu0 }
 0x294   : > { %v1850_v11 = vadd.f32 %v4067_v34, %v1849_v8  ;;  %v4333_v12 = vpop.f32.mrb[15].mxu0 }
 0x296   : > { %v5440_v13 = vpack.c.bf16 %v1850_v11, %v1847_v5 }
 0x298   : > { %4371 = vmatpush3.bf16.msra.mxu0 %v5440_v13 }
 0x299   : > { %v1854_v60 = vpop.f32.mrb[16].mxu0  ;;  %4372 = vmatprep.subr.bf16.mxu0 %v4858_v2 }
 0x29a   : > { %v4336_v9 = vpop.f32.mrb[17].mxu0  ;;  %v1855_v10 = vadd.f32 %v4067_v34, %v1854_v60 }
 0x29b   : > { %v1857_v16 = vpop.f32.mrb[18].mxu0 }
 0x29c   : > { %v1858_v17 = vadd.f32 %v4067_v34, %v1857_v16  ;;  %v4337_v23 = vpop.f32.mrb[19].mxu0 }
 0x29e   : > { %v5444_v31 = vpack.c.bf16 %v1858_v17, %v1855_v10 }
 0x2a0   : > { %4373 = vmatpush3.bf16.msra.mxu0 %v5444_v31 }
 0x2a1   : > { %v1862_v24 = vpop.f32.mrb[20].mxu0  ;;  %4374 = vmatprep.subr.bf16.mxu0 %v4858_v2 }
 0x2a2   : > { %v1863_v32 = vadd.f32 %v4067_v34, %v1862_v24  ;;  %v4340_v38 = vpop.f32.mrb[21].mxu0 }
 0x2a3   : > { %v1865_v39 = vpop.f32.mrb[22].mxu0 }
 0x2a4   : > { %v1866_v45 = vadd.f32 %v4067_v34, %v1865_v39  ;;  %v4341_v46 = vpop.f32.mrb[23].mxu0 }
 0x2a6   : > { %v5448_v15 = vpack.c.bf16 %v1866_v45, %v1863_v32 }
 0x2a8   : > { %4375 = vmatpush3.bf16.msra.mxu0 %v5448_v15 }
 0x2a9   : > { %v1870_v52 = vpop.f32.mrb[24].mxu0  ;;  %4376 = vmatprep.subr.bf16.mxu0 %v4858_v2 }
 0x2aa   : > { %v1871_v18 = vadd.f32 %v4067_v34, %v1870_v52  ;;  %v4344_v19 = vpop.f32.mrb[25].mxu0 }
 0x2ab   : > { %v1873_v20 = vpop.f32.mrb[26].mxu0 }
 0x2ac   : > { %v4345_v21 = vpop.f32.mrb[27].mxu0  ;;  %v5461_v41 = vpack.c.bf16 %v1871_v18, %v1871_v18 }
 0x2ae   : > { %v1966_v42 = vsel %vm1964_vm5, %v5461_v41, 0 }
 0x2af   : > { %4377 = vmatpush3.bf16.msra.mxu0 %v1966_v42 }
 0x2b0   : > { %4400 = vmatprep.subr.bf16.mxu0 %v4858_v2 }
 0x2f8   : > { %v2090_v22 = vpop.f32.mrb[36].mxu1 }
 0x2f9   : > { %v4398_v25 = vpop.f32.mrb[37].mxu1  ;;  %v2096_v28 = vsel %vm1948_vm4, %v2090_v22, -inf }
 0x2fa   : > { %2097 = vmax.xlane.f32.xlu1 %v2096_v28  ;;  %v2093_v29 = vpop.f32.mrb[38].mxu1 }
 0x2fb   : > { %v4399_v30 = vpop.f32.mrb[39].mxu1 }
 0x30b   : > { %2117 = vrot.lane.b32.xlu1 %v5432_v57, %s4860_s24 }
 0x30f   : > { %2121 = vrot.lane.b32.xlu1 %v5440_v13, %s4860_s24 }
 0x313   : > { %2125 = vrot.lane.b32.xlu1 %v5448_v15, %s4860_s24 }
 0x314   : > { %v1951_v33 = vpop.xlane.xlu0 %1950 }
 0x315   : > { %v1952_v34 = vsub.f32 %v5421_v27, %v1951_v33 }
 0x317   : > { %v1953_v35 = vmul.f32 1.442695, %v1952_v34 }
 0x319   : > { %4728 = vpow2.f32 %v1953_v35 }
 0x323   : > { %v4729_v37 = vpop.eup %4728 }
 0x324   : > { %v1955_v40 = vsel %vm1948_vm4, %v4729_v37, 0.0 }
 0x325   : > { %1956 = vadd.xlane.f32.xlu0 %v1955_v40 }
 0x33b   : > { %2115 = vrot.lane.b32.xlu0 %v5428_v47, %s4860_s24 }
 0x33f   : > { %2119 = vrot.lane.b32.xlu0 %v5436_v3, %s4860_s24 }
 0x343   : > { %2123 = vrot.lane.b32.xlu0 %v5444_v31, %s4860_s24 }
 0x347   : > { %2127 = vrot.lane.b32.xlu0 %v5461_v41, %s4860_s24 }
 0x34b   : > { %2185 = vrot.lane.b32.xlu0 %v5302_v14, %s4861_s23 }
 0x34f   : > { %2189 = vrot.lane.b32.xlu0 %v5320_v36, %s4861_s23 }
 0x353   : > { %2193 = vrot.lane.b32.xlu0 %v5342_v62, %s4861_s23 }
 0x357   : > { %2181 = vrot.lane.b32.xlu0 %v5348_v0, %s4861_s23 }
 0x35b   : > { %2273 = vrot.lane.b32.xlu0 %v5428_v47, %s4861_s23 }
 0x35f   : > { %2277 = vrot.lane.b32.xlu0 %v5436_v3, %s4861_s23 }
 0x363   : > { %2283 = vrot.lane.b32.xlu0 %v5448_v15, %s4861_s23 }
 0x387   : > { %v2098_v27 = vpop.xlane.xlu1 %2097 }
 0x388   : > { %v2099_v43 = vsub.f32 %v2090_v22, %v2098_v27 }
 0x38a   : > { %v2100_v44 = vmul.f32 1.442695, %v2099_v43 }
 0x38b   : > { %v2118_v63 = vpop.permute.xlu1 %2117 }
 0x38c   : > { %4730 = vpow2.f32 %v2100_v44 }
 0x38f   : > { %v2122_v6 = vpop.permute.xlu1 %2121 }
 0x393   : > { %v2126_v12 = vpop.permute.xlu1 %2125 }
 0x396   : > { %v4731_v49 = vpop.eup %4730 }
 0x397   : > { %v2102_v50 = vsel %vm1948_vm4, %v4731_v49, 0.0 }
 0x398   : > { %2103 = vadd.xlane.f32.xlu1 %v2102_v50 }
 0x3a9   : > { %2183 = vrot.lane.b32.xlu1 %v5293_v4, %s4861_s23 }
 0x3ad   : > { %2187 = vrot.lane.b32.xlu1 %v5311_v26, %s4861_s23 }
 0x3b1   : > { %2191 = vrot.lane.b32.xlu1 %v5329_v48, %s4861_s23 }
 0x3b2   : > { %v1957_v51 = vpop.xlane.xlu0 %1956 }
 0x3b3   : > { %4732 = vrcp.f32 %v1957_v51 }
 0x3b5   : > { %2195 = vrot.lane.b32.xlu1 %v5353_v7, %s4861_s23 }
 0x3b6   : > { %v2116_v53 = vpop.permute.xlu0 %2115 }
 0x3ba   : > { %v2120_v54 = vpop.permute.xlu0 %2119 }
 0x3bd   : > { %v4733_v55 = vpop.eup %4732 }
 0x3be   : > { %v1959_v58 = vmul.f32 %v4733_v55, %v4729_v37  ;;  %v2124_v59 = vpop.permute.xlu0 %2123 }
 0x3c0   : > { %v1960_v61 = vpack.c.bf16 %v1959_v58, %v1959_v58 }
 0x3c2   : > { %4379 = vmatmul.mubr.msk.bf16.vlgmr.msra.gmra.mrb[28].mxu0 %vm1948_vm4, %v1960_v61  ;;  %v2128_v56 = vpop.permute.xlu0 %2127 }
 0x3c3   : > { %4401 = vmatpush3.bf16.msra.mxu0 %v2116_v53  ;;  %4414 = vmatprep.mubr.msk.bf16.mxu0 %vm4859_vm1, %v4858_v2  ;;  %v2139_v9 = vsel %vm1964_vm5, %v2128_v56, 0 }
 0x3c4   : > { %4402 = vmatprep.subr.bf16.mxu0 %v4858_v2 }
 0x3c6   : > { %v2186_v1 = vpop.permute.xlu0 %2185 }
 0x3c7   : > { %4403 = vmatpush3.bf16.msra.mxu0 %v2118_v63  ;;  %v2204_v38 = vsel %vm1883_vm3, %v2186_v1, 0 }
 0x3c8   : > { %4404 = vmatprep.subr.bf16.mxu0 %v4858_v2 }
 0x3ca   : > { %v2190_v5 = vpop.permute.xlu0 %2189 }
 0x3cb   : > { %4405 = vmatpush3.bf16.msra.mxu0 %v2120_v54  ;;  %v2210_v46 = vsel %vm1883_vm3, %v2190_v5, 0 }
 0x3cc   : > { %4406 = vmatprep.subr.bf16.mxu0 %v4858_v2 }
 0x3ce   : > { %v2194_v8 = vpop.permute.xlu0 %2193 }
 0x3cf   : > { %4407 = vmatpush3.bf16.msra.mxu0 %v2122_v6  ;;  %v2216_v19 = vsel %vm1883_vm3, %v2194_v8, 0 }
 0x3d0   : > { %4408 = vmatprep.subr.bf16.mxu0 %v4858_v2 }
 0x3d2   : > { %v2182_v11 = vpop.permute.xlu0 %2181 }
 0x3d3   : > { %4409 = vmatpush3.bf16.msra.mxu0 %v2124_v59 }
 0x3d4   : > { %4410 = vmatprep.subr.bf16.mxu0 %v4858_v2 }
 0x3d6   : > { %v2274_v60 = vpop.permute.xlu0 %2273 }
 0x3d7   : > { %4437 = vmatpush3.bf16.msra.mxu1 %v2274_v60  ;;  %4411 = vmatpush3.bf16.msra.mxu0 %v2126_v12 }
 0x3d8   : > { %4412 = vmatprep.subr.bf16.mxu0 %v4858_v2  ;;  %4438 = vmatprep.subr.bf16.mxu1 %v4858_v2 }
 0x3db   : > { %4413 = vmatpush3.bf16.msra.mxu0 %v2139_v9 }
 0x3dc   : > { %4418 = vmatprep.subr.bf16.mxu0 %v4858_v2 }
 0x425   : > { %v2104_v10 = vpop.xlane.xlu1 %2103 }
 0x426   : > { %4734 = vrcp.f32 %v2104_v10 }
 0x429   : > { %v2184_v23 = vpop.permute.xlu1 %2183 }
 0x42a   : > { %v2201_v32 = vsel %vm1883_vm3, %v2184_v23, 0 }
 0x42d   : > { %v2188_v39 = vpop.permute.xlu1 %2187 }
 0x42e   : > { %v2207_v45 = vsel %vm1883_vm3, %v2188_v39, 0 }
 0x430   : > { %v4735_v16 = vpop.eup %4734 }
 0x431   : > { %v2106_v17 = vmul.f32 %v4735_v16, %v4731_v49  ;;  %v2192_v52 = vpop.permute.xlu1 %2191 }
 0x432   : > { %v2213_v18 = vsel %vm1883_vm3, %v2192_v52, 0 }
 0x433   : > { %v2107_v24 = vpack.c.bf16 %v2106_v17, %v2106_v17 }
 0x435   : > { %4415 = vmatmul.mubr.msk.bf16.vlgmr.msra.gmra.mrb[32].mxu0 %vm1948_vm4, %v2107_v24  ;;  %v2196_v20 = vpop.permute.xlu1 %2195 }
 0x436   : > { %4419 = vmatpush3.bf16.xpose.msra.mxu0 %v2201_v32  ;;  %4432 = vmatprep.mubr.msk.bf16.mxu0 %vm4859_vm1, %v4858_v2  ;;  %v2219_v21 = vsel %vm1883_vm3, %v2196_v20, 0 }
 0x437   : > { %4420 = vmatprep.subr.bf16.mxu0 %v4858_v2 }
 0x43e   : > { %4421 = vmatpush3.bf16.xpose.msra.mxu0 %v2204_v38 }
 0x43f   : > { %4422 = vmatprep.subr.bf16.mxu0 %v4858_v2 }
 0x446   : > { %4423 = vmatpush3.bf16.xpose.msra.mxu0 %v2207_v45 }
 0x447   : > { %4424 = vmatprep.subr.bf16.mxu0 %v4858_v2 }
 0x44e   : > { %4425 = vmatpush3.bf16.xpose.msra.mxu0 %v2210_v46 }
 0x44f   : > { %4426 = vmatprep.subr.bf16.mxu0 %v4858_v2 }
 0x456   : > { %4427 = vmatpush3.bf16.xpose.msra.mxu0 %v2213_v18 }
 0x457   : > { %4428 = vmatprep.subr.bf16.mxu0 %v4858_v2 }
 0x45e   : > { %4429 = vmatpush3.bf16.xpose.msra.mxu0 %v2216_v19 }
 0x45f   : > { %4430 = vmatprep.subr.bf16.mxu0 %v4858_v2 }
 0x466   : > { %4431 = vmatpush3.bf16.xpose.msra.mxu0 %v2219_v21 }
 0x467   : > { %4472 = vmatprep.subr.bf16.mxu0 %v4858_v2 }
 0x46d   : > { %4433 = vmatmul.mubr.msk.bf16.vlgmr.msra.gmra.mrb[36].mxu0 %vm1883_vm3, %v2182_v11 }
 0x46e   : > { %4486 = vmatprep.mubr.msk.bf16.mxu0 %vm4859_vm1, %v4858_v2 }
 0x495   : > { %v5529_v22 = vpop.f32.mrb[28].mxu0 }
 0x496   : > { %v4380_v25 = vpop.f32.mrb[29].mxu0 }
 0x497   : > { %v2005_v28 = vpop.f32.mrb[30].mxu0 }
 0x498   : > { %v4381_v29 = vpop.f32.mrb[31].mxu0 }
 0x508   : > { %v5531_v30 = vpop.f32.mrb[32].mxu0 }
 0x509   : > { %v4416_v33 = vpop.f32.mrb[33].mxu0 }
 0x50a   : > { %v2178_v34 = vpop.f32.mrb[34].mxu0 }
 0x50b   : > { %v4417_v35 = vpop.f32.mrb[35].mxu0 }
 0x540   : > { %v2255_v37 = vpop.f32.mrb[36].mxu0 }
 0x541   : > { %v4434_v40 = vpop.f32.mrb[37].mxu0  ;;  %v2261_v42 = vsel %vm1948_vm4, %v2255_v37, -inf }
 0x542   : > { %2262 = vmax.xlane.f32.xlu1 %v2261_v42  ;;  %v2258_v27 = vpop.f32.mrb[38].mxu0  ;;  %v4713_v40 = vld [vmem:[%s5940_s13 + $0x8] sm:$0xff]  }
 0x543   : > { %v4435_v43 = vpop.f32.mrb[39].mxu0 }
 0x553   : > { %2275 = vrot.lane.b32.xlu1 %v5432_v57, %s4861_s23 }
 0x557   : > { %2279 = vrot.lane.b32.xlu1 %v5440_v13, %s4861_s23 }
 0x55b   : > { %2281 = vrot.lane.b32.xlu1 %v5444_v31, %s4861_s23 }
 0x55f   : > { %2285 = vrot.lane.b32.xlu1 %v5461_v41, %s4861_s23 }
 0x563   : > { %2343 = vrot.lane.b32.xlu1 %v5302_v14, %s4862_s11  ;;  %v2278_v14 = vpop.permute.xlu0 %2277 }
 0x567   : > { %2347 = vrot.lane.b32.xlu1 %v5320_v36, %s4862_s11 }
 0x56b   : > { %2351 = vrot.lane.b32.xlu1 %v5342_v62, %s4862_s11 }
 0x56f   : > { %2339 = vrot.lane.b32.xlu1 %v5348_v0, %s4862_s11 }
 0x573   : > { %2433 = vrot.lane.b32.xlu1 %v5432_v57, %s4862_s11 }
 0x577   : > { %2437 = vrot.lane.b32.xlu1 %v5440_v13, %s4862_s11  ;;  %v2284_v13 = vpop.permute.xlu0 %2283 }
 0x5cf   : > { %v2263_v44 = vpop.xlane.xlu1 %2262 }
 0x5d0   : > { %v2264_v49 = vsub.f32 %v2255_v37, %v2263_v44 }
 0x5d2   : > { %v2265_v50 = vmul.f32 1.442695, %v2264_v49 }
 0x5d3   : > { %v2276_v51 = vpop.permute.xlu1 %2275 }
 0x5d4   : > { %4736 = vpow2.f32 %v2265_v50  ;;  %4439 = vmatpush3.bf16.msra.mxu1 %v2276_v51 }
 0x5d5   : > { %4440 = vmatprep.subr.bf16.mxu1 %v4858_v2 }
 0x5d7   : > { %v2280_v36 = vpop.permute.xlu1 %2279 }
 0x5d8   : > { %4441 = vmatpush3.bf16.msra.mxu1 %v2278_v14 }
 0x5d9   : > { %4442 = vmatprep.subr.bf16.mxu1 %v4858_v2 }
 0x5db   : > { %v2282_v0 = vpop.permute.xlu1 %2281 }
 0x5dc   : > { %4443 = vmatpush3.bf16.msra.mxu1 %v2280_v36 }
 0x5dd   : > { %4444 = vmatprep.subr.bf16.mxu1 %v4858_v2 }
 0x5de   : > { %v4737_v62 = vpop.eup %4736 }
 0x5df   : > { %v2267_v57 = vsel %vm1948_vm4, %v4737_v62, 0.0  ;;  %v2286_v53 = vpop.permute.xlu1 %2285 }
 0x5e0   : > { %2268 = vadd.xlane.f32.xlu0 %v2267_v57  ;;  %4445 = vmatpush3.bf16.msra.mxu1 %v2282_v0  ;;  %v2297_v54 = vsel %vm1964_vm5, %v2286_v53, 0  ;;  %v4085_v57 = vld [vmem:[%s5942_s5] ss:$0 sm:$0xff]  ;;  %s5954_s5 = sld [smem:[#allocation21_spill]] }
 0x5e1   : > { %4446 = vmatprep.subr.bf16.mxu1 %v4858_v2 }
 0x5e4   : > { %4447 = vmatpush3.bf16.msra.mxu1 %v2284_v13 }
 0x5e5   : > { %4448 = vmatprep.subr.bf16.mxu1 %v4858_v2 }
 0x5e8   : > { %4449 = vmatpush3.bf16.msra.mxu1 %v2297_v54 }
 0x5e9   : > { %4454 = vmatprep.subr.bf16.mxu1 %v4858_v2 }
 0x5f6   : > { %2341 = vrot.lane.b32.xlu0 %v5293_v4, %s4862_s11  ;;  %v2344_v4 = vpop.permute.xlu1 %2343 }
 0x5fa   : > { %2345 = vrot.lane.b32.xlu0 %v5311_v26, %s4862_s11  ;;  %v2362_v26 = vsel %vm1883_vm3, %v2344_v4, 0  ;;  %v2348_v1 = vpop.permute.xlu1 %2347 }
 0x5fb   : > { %v2368_v5 = vsel %vm1883_vm3, %v2348_v1, 0  ;;  %v4715_v1 = vld [vmem:[%s5944_s27] sm:$0xff]  }
 0x5fe   : > { %2349 = vrot.lane.b32.xlu0 %v5329_v48, %s4862_s11  ;;  %v2352_v11 = vpop.permute.xlu1 %2351 }
 0x5ff   : > { %v2374_v12 = vsel %vm1883_vm3, %v2352_v11, 0 }
 0x602   : > { %2353 = vrot.lane.b32.xlu0 %v5353_v7, %s4862_s11  ;;  %v2340_v10 = vpop.permute.xlu1 %2339 }
 0x66d   : > { %v2269_v55 = vpop.xlane.xlu0 %2268 }
 0x66e   : > { %4738 = vrcp.f32 %v2269_v55 }
 0x671   : > { %v2342_v61 = vpop.permute.xlu0 %2341 }
 0x672   : > { %v2359_v63 = vsel %vm1883_vm3, %v2342_v61, 0 }
 0x675   : > { %v2346_v48 = vpop.permute.xlu0 %2345 }
 0x676   : > { %v2365_v7 = vsel %vm1883_vm3, %v2346_v48, 0 }
 0x678   : > { %v4739_v58 = vpop.eup %4738 }
 0x679   : > { %v2271_v59 = vmul.f32 %v4739_v58, %v4737_v62  ;;  %v2350_v6 = vpop.permute.xlu0 %2349  ;;  %v4766_v58 = vld [vmem:[#allocation2] sm:$0xff] }
 0x67a   : > { %v2371_v8 = vsel %vm1883_vm3, %v2350_v6, 0  ;;  %v4717_v6 = vld [vmem:[%s5944_s27 + $0x8] sm:$0xff]  }
 0x67b   : > { %v2272_v56 = vpack.c.bf16 %v2271_v59, %v2271_v59 }
 0x67d   : > { %4451 = vmatmul.mubr.msk.bf16.vlgmr.msra.gmra.mrb[40].mxu1 %vm1948_vm4, %v2272_v56  ;;  %v2354_v60 = vpop.permute.xlu0 %2353 }
 0x67e   : > { %4455 = vmatpush3.bf16.xpose.msra.mxu1 %v2359_v63  ;;  %4468 = vmatprep.mubr.msk.bf16.mxu1 %vm4859_vm1, %v4858_v2  ;;  %v2377_v9 = vsel %vm1883_vm3, %v2354_v60, 0 }
 0x67f   : > { %4456 = vmatprep.subr.bf16.mxu1 %v4858_v2 }
 0x686   : > { %4457 = vmatpush3.bf16.xpose.msra.mxu1 %v2362_v26 }
 0x687   : > { %4458 = vmatprep.subr.bf16.mxu1 %v4858_v2 }
 0x68e   : > { %4459 = vmatpush3.bf16.xpose.msra.mxu1 %v2365_v7  ;;  %v4714_v7 = vld [vmem:[%s5943_s25] sm:$0xff]  }
 0x68f   : > { %4460 = vmatprep.subr.bf16.mxu1 %v4858_v2 }
 0x696   : > { %4461 = vmatpush3.bf16.xpose.msra.mxu1 %v2368_v5  ;;  %v4716_v5 = vld [vmem:[%s5943_s25 + $0x8] sm:$0xff]   ;;  %s5955_s25 = scalar_lea.vmem %s5954_s5, %s5097_s0 }
 0x697   : > { %4462 = vmatprep.subr.bf16.mxu1 %v4858_v2 }
 0x69e   : > { %4463 = vmatpush3.bf16.xpose.msra.mxu1 %v2371_v8 }
 0x69f   : > { %4464 = vmatprep.subr.bf16.mxu1 %v4858_v2 }
 0x6a6   : > { %4465 = vmatpush3.bf16.xpose.msra.mxu1 %v2374_v12 }
 0x6a7   : > { %4466 = vmatprep.subr.bf16.mxu1 %v4858_v2 }
 0x6ae   : > { %4467 = vmatpush3.bf16.xpose.msra.mxu1 %v2377_v9  ;;  %v4089_v9 = vld [vmem:[%s5948_s28] ss:$0 sm:$0xff] }
 0x6af   : > { %4514 = vmatprep.subr.bf16.mxu1 %v4858_v2 }
 0x6b5   : > { %4469 = vmatmul.mubr.msk.bf16.vlgmr.msra.gmra.mrb[44].mxu1 %vm1883_vm3, %v2340_v10 }
 0x6b6   : > { %4518 = vmatprep.mubr.msk.bf16.mxu1 %vm4859_vm1, %v4858_v2  ;;  %4515 = vmatpush3.bf16.msra.mxu1 %v4714_v7 }
 0x6b7   : > { %4516 = vmatprep.subr.bf16.mxu1 %v4858_v2 }
 0x6ba   : > { %4517 = vmatpush3.bf16.msra.mxu1 %v4716_v5 }
 0x6bb   : > { %4528 = vmatprep.subr.bf16.mxu1 %v4858_v2 }
 0x750   : > { %v2333_v16 = vpop.f32.mrb[40].mxu1 }
 0x751   : > { %v4452_v17 = vpop.f32.mrb[41].mxu1 }
 0x752   : > { %v2336_v23 = vpop.f32.mrb[42].mxu1 }
 0x753   : > { %v4453_v24 = vpop.f32.mrb[43].mxu1 }
 0x788   : > { %v2413_v32 = vpop.f32.mrb[44].mxu1 }
 0x789   : > { %v4470_v38 = vpop.f32.mrb[45].mxu1  ;;  %v2419_v39 = vsel %vm1948_vm4, %v2413_v32, -inf }
 0x78a   : > { %2420 = vmax.xlane.f32.xlu0 %v2419_v39  ;;  %v2416_v45 = vpop.f32.mrb[46].mxu1  ;;  %v4718_v39 = vld [vmem:[%s5947_s30] sm:$0xff]  }
 0x78b   : > { %v4471_v46 = vpop.f32.mrb[47].mxu1 }
 0x78c   : > { %v4719_v46 = vld [vmem:[%s5947_s30 + $0x8] sm:$0xff]  }
 0x7a0   : > { %2431 = vrot.lane.b32.xlu0 %v5428_v47, %s4862_s11  ;;  %v2434_v47 = vpop.permute.xlu1 %2433 }
 0x7a4   : > { %2435 = vrot.lane.b32.xlu0 %v5436_v3, %s4862_s11 }
 0x7a8   : > { %2439 = vrot.lane.b32.xlu0 %v5444_v31, %s4862_s11 }
 0x7ac   : > { %2443 = vrot.lane.b32.xlu0 %v5461_v41, %s4862_s11  ;;  %v2438_v41 = vpop.permute.xlu1 %2437 }
 0x7b0   : > { %2502 = vrot.lane.b32.xlu0 %v2333_v16, %s4863_s26  ;;  %v4090_v16 = vld [vmem:[%s5949_s1] ss:$0 sm:$0xff] }
 0x817   : > { %v2421_v52 = vpop.xlane.xlu0 %2420 }
 0x818   : > { %v2422_v18 = vsub.f32 %v2413_v32, %v2421_v52  ;;  %v4767_v32 = vld [vmem:[%s5929_s17] sm:$0xff] }
 0x81a   : > { %v2423_v19 = vmul.f32 1.442695, %v2422_v18 }
 0x81b   : > { %v2432_v20 = vpop.permute.xlu0 %2431 }
 0x81c   : > { %4740 = vpow2.f32 %v2423_v19  ;;  %4473 = vmatpush3.bf16.msra.mxu0 %v2432_v20  ;;  %v4091_v19 = vld [vmem:[%s5953_s4] ss:$0 sm:$0xff] }
 0x81d   : > { %4474 = vmatprep.subr.bf16.mxu0 %v4858_v2 }
 0x81f   : > { %v2436_v3 = vpop.permute.xlu0 %2435 }
 0x820   : > { %4475 = vmatpush3.bf16.msra.mxu0 %v2434_v47 }
 0x821   : > { %4476 = vmatprep.subr.bf16.mxu0 %v4858_v2 }
 0x823   : > { %v2440_v25 = vpop.permute.xlu0 %2439 }
 0x824   : > { %4477 = vmatpush3.bf16.msra.mxu0 %v2436_v3 }
 0x825   : > { %4478 = vmatprep.subr.bf16.mxu0 %v4858_v2 }
 0x826   : > { %v4741_v31 = vpop.eup %4740 }
 0x827   : > { %v2425_v21 = vsel %vm1948_vm4, %v4741_v31, 0.0  ;;  %v2444_v33 = vpop.permute.xlu0 %2443 }
 0x828   : > { %2426 = vadd.xlane.f32.xlu1 %v2425_v21  ;;  %4479 = vmatpush3.bf16.msra.mxu0 %v2438_v41  ;;  %v2455_v34 = vsel %vm1964_vm5, %v2444_v33, 0 }
 0x829   : > { %4480 = vmatprep.subr.bf16.mxu0 %v4858_v2 }
 0x82b   : > { %v2503_v51 = vpop.permute.xlu0 %2502 }
 0x82c   : > { %4481 = vmatpush3.bf16.msra.mxu0 %v2440_v25 }
 0x82d   : > { %4482 = vmatprep.subr.bf16.mxu0 %v4858_v2 }
 0x839   : > { %2441 = vrot.lane.b32.xlu1 %v5448_v15, %s4862_s11 }
 0x83d   : > { %2498 = vrot.lane.b32.xlu1 %v5531_v30, %s4864_s16  ;;  %v4712_v30 = vld [vmem:[%s5940_s13] sm:$0xff]   ;;  %s5952_s13 = scalar_lea.vmem %s5950_s7, %s5097_s0 }
 0x83e   : > { %v4099_v52 = vld [vmem:[%s5952_s13] ss:$0 sm:$0xff] }
 0x8b5   : > { %v2427_v28 = vpop.xlane.xlu1 %2426 }
 0x8b6   : > { %4742 = vrcp.f32 %v2427_v28 }
 0x8b9   : > { %v2442_v29 = vpop.permute.xlu1 %2441 }
 0x8ba   : > { %4483 = vmatpush3.bf16.msra.mxu0 %v2442_v29 }
 0x8bb   : > { %4484 = vmatprep.subr.bf16.mxu0 %v4858_v2 }
 0x8bd   : > { %v2499_v49 = vpop.permute.xlu1 %2498 }
 0x8be   : > { %4485 = vmatpush3.bf16.msra.mxu0 %v2455_v34  ;;  %v2509_v50 = vsel %vm1883_vm3, %v5529_v22, %v2499_v49 }
 0x8bf   : > { %4490 = vmatprep.subr.bf16.mxu0 %v4858_v2  ;;  %v2511_v36 = vsel %vm2510_vm6, %v2509_v50, %v2503_v51 }
 0x8c0   : > { %v4743_v35 = vpop.eup %4742 }
 0x8c1   : > { %v2429_v15 = vmul.f32 %v4743_v35, %v4741_v31 }
 0x8c3   : > { %v2430_v37 = vpack.c.bf16 %v2429_v15, %v2429_v15 }
 0x8c5   : > { %4487 = vmatmul.mubr.msk.bf16.vlgmr.msra.gmra.mrb[40].mxu0 %vm1948_vm4, %v2430_v37  ;;  %v4095_v37 = vld [vmem:[%s5955_s25] ss:$0 sm:$0xff] }
 0x8c6   : > { %4494 = vmatprep.mubr.msk.bf16.mxu0 %vm4859_vm1, %v4858_v2  ;;  %4491 = vmatpush3.bf16.msra.mxu0 %v4712_v30 }
 0x8c7   : > { %4492 = vmatprep.subr.bf16.mxu0 %v4858_v2 }
 0x8ca   : > { %4493 = vmatpush3.bf16.msra.mxu0 %v4713_v40 }
 0x8cb   : > { %4498 = vmatprep.subr.bf16.mxu0 %v4858_v2 }
 0x998   : > { %v2491_v42 = vpop.f32.mrb[40].mxu0 }
 0x999   : > { %2506 = vrot.lane.b32.xlu1 %v2491_v42, %s4865_s9  ;;  %v4488_v27 = vpop.f32.mrb[41].mxu0 }
 0x99a   : > { %v2494_v43 = vpop.f32.mrb[42].mxu0 }
 0x99b   : > { %v4489_v44 = vpop.f32.mrb[43].mxu0 }
 0xa0b   : > { %v2507_v14 = vpop.permute.xlu1 %2506 }
 0xa0c   : > { %v2513_v62 = vsel %vm2512_vm7, %v2511_v36, %v2507_v14 }
 0xa0d   : > { %v2514_v0 = vpack.c.bf16 %v2513_v62, %v2513_v62 }
 0xa0f   : > { %4495 = vmatmul.mubr.msk.bf16.vlgmr.msra.gmra.mrb[44].mxu0 %vm1569_vm2, %v2514_v0 }
 0xa10   : > { %4502 = vmatprep.mubr.msk.bf16.mxu0 %vm4859_vm1, %v4858_v2  ;;  %4499 = vmatpush3.bf16.msra.mxu0 %v4715_v1 }
 0xa11   : > { %4500 = vmatprep.subr.bf16.mxu0 %v4858_v2 }
 0xa14   : > { %4501 = vmatpush3.bf16.msra.mxu0 %v4717_v6 }
 0xa15   : > { %4506 = vmatprep.subr.bf16.mxu0 %v4858_v2 }
 0xae2   : > { %v2570_v13 = vpop.f32.mrb[44].mxu0 }
 0xae3   : > { %v2571_v53 = vadd.f32 %v4085_v57, %v2570_v13  ;;  %v4496_v22 = vpop.f32.mrb[45].mxu0 }
 0xae4   : > { %v2573_v54 = vpop.f32.mrb[46].mxu0 }
 0xae5   : > { %v4497_v55 = vpop.f32.mrb[47].mxu0  ;;  %v2576_v59 = vadd.f32 %v4766_v58, %v2571_v53 }
 0xae7   : > { %v2577_v61 = vsel %vm1569_vm2, %v2576_v59, 0.0 }
 0xae8   : > { %2578 = vadd.xlane.f32.xlu0 %v2577_v61 }
 0xb75   : > { %v2579_v56 = vpop.xlane.xlu0 %2578 }
 0xb76   : > { %v2581_v63 = vmul.f32 0.03125, %v2579_v56 }
 0xb78   : > { %v2582_v4 = vsub.f32 %v2576_v59, %v2581_v63 }
 0xb7a   : > { %v2583_v26 = vmul.f32 %v2582_v4, %v2582_v4 }
 0xb7c   : > { %v2584_v48 = vsel %vm1569_vm2, %v2583_v26, 0.0 }
 0xb7d   : > { %2585 = vadd.xlane.f32.xlu1 %v2584_v48 }
 0xc0a   : > { %v2586_v8 = vpop.xlane.xlu1 %2585 }
 0xc0b   : > { %v2587_v11 = vmul.f32 0.03125, %v2586_v8 }
 0xc0d   : > { %v2588_v12 = vadd.f32 1e-05, %v2587_v11 }
 0xc0f   : > { %4744 = vrsqrt.f32 %v2588_v12 }
 0xc19   : > { %v4745_v60 = vpop.eup %4744 }
 0xc1a   : > { %v2590_v10 = vmul.f32 %v4745_v60, %v2582_v4 }
 0xc1c   : > { %v2597_v17 = vmul.f32 %v4089_v9, %v2590_v10 }
 0xc1e   : > { %v5647_v23 = vadd.f32 %v4090_v16, %v2597_v17 }
 0xc20   : > { %v2629_v24 = vpack.c.bf16 %v5647_v23, %v5647_v23  ;;  %v2627_v38 = vadd.f32 %v4767_v32, %v5647_v23 }
 0xc22   : > { %4519 = vmatmul.mubr.msk.bf16.vlgmr.msra.gmra.mrb[48].mxu1 %vm1569_vm2, %v2629_v24  ;;  %v2628_v45 = vpack.c.bf16 %v2627_v38, %v2627_v38 }
 0xc23   : > { %4530 = vmatprep.mubr.msk.bf16.mxu1 %vm4859_vm1, %v4858_v2 }
 0xc24   : > { %4503 = vmatmul.mubr.msk.bf16.vlgmr.msra.gmra.mrb[48].mxu0 %vm1569_vm2, %v2628_v45 }
 0xc25   : > { %4507 = vmatpush3.bf16.msra.mxu0 %v4718_v39  ;;  %4510 = vmatprep.mubr.msk.bf16.mxu0 %vm4859_vm1, %v4858_v2 }
 0xc26   : > { %4508 = vmatprep.subr.bf16.mxu0 %v4858_v2 }
 0xc29   : > { %4509 = vmatpush3.bf16.msra.mxu0 %v4719_v46 }
 0xc2a   : > { %4522 = vmatprep.subr.bf16.mxu0 %v4858_v2 }
 0xc2c   : > { %4511 = vmatmul.mubr.msk.bf16.vlgmr.msra.gmra.mrb[52].mxu0 %vm1569_vm2, %v2628_v45 }
 0xc2d   : > { %4524 = vmatprep.mubr.msk.bf16.mxu0 %vm4859_vm1, %v4858_v2 }
 0xcf5   : > { %v2807_v18 = vpop.f32.mrb[48].mxu1 }
 0xcf6   : > { %v2808_v20 = vadd.f32 %v4099_v52, %v2807_v18  ;;  %v4520_v47 = vpop.f32.mrb[49].mxu1 }
 0xcf7   : > { %v2685_v3 = vpop.f32.mrb[48].mxu0  ;;  %v2810_v31 = vpop.f32.mrb[50].mxu1 }
 0xcf8   : > { %v5672_v41 = vpack.c.bf16 %v2808_v20, %v2808_v20  ;;  %v2686_v21 = vadd.f32 %v4091_v19, %v2685_v3  ;;  %v4504_v25 = vpop.f32.mrb[49].mxu0  ;;  %v4521_v28 = vpop.f32.mrb[51].mxu1 }
 0xcf9   : > { %v2688_v29 = vpop.f32.mrb[50].mxu0 }
 0xcfa   : > { %v2691_v33 = vmul.f32 0.35355338, %v2686_v21  ;;  %v4505_v34 = vpop.f32.mrb[51].mxu0  ;;  %v2877_v35 = vsel %vm2875_vm8, %v5672_v41, 0 }
 0xcfb   : > { %4529 = vmatpush3.bf16.msra.mxu1 %v2877_v35 }
 0xcfc   : > { %v2692_v15 = vpack.c.bf16 %v2691_v33, %v2691_v33  ;;  %4540 = vmatprep.subr.bf16.mxu1 %v4858_v2 }
 0xcfe   : > { %2920 = vrot.lane.b32.xlu1 %v2692_v15, %s4860_s24 }
 0xcff   : > { %v2745_v30 = vpop.f32.mrb[52].mxu0 }
 0xd00   : > { %v2746_v40 = vadd.f32 %v4095_v37, %v2745_v30  ;;  %v4512_v42 = vpop.f32.mrb[53].mxu0 }
 0xd01   : > { %v2748_v27 = vpop.f32.mrb[54].mxu0 }
 0xd02   : > { %v2751_v43 = vpack.c.bf16 %v2746_v40, %v2746_v40  ;;  %3032 = vrot.lane.b32.xlu1 %v2692_v15, %s4861_s23  ;;  %v4513_v44 = vpop.f32.mrb[55].mxu0 }
 0xd04   : > { %2923 = vrot.lane.b32.xlu0 %v2751_v43, %s4860_s24  ;;  %v2818_v49 = vsel %vm1883_vm3, %v2751_v43, 0 }
 0xd05   : > { %4523 = vmatpush3.bf16.xpose.msra.mxu0 %v2818_v49 }
 0xd06   : > { %3142 = vrot.lane.b32.xlu1 %v2692_v15, %s4862_s11  ;;  %4534 = vmatprep.subr.bf16.mxu0 %v4858_v2 }
 0xd08   : > { %3034 = vrot.lane.b32.xlu0 %v2751_v43, %s4861_s23 }
 0xd0c   : > { %3144 = vrot.lane.b32.xlu0 %v2751_v43, %s4862_s11  ;;  %4525 = vmatmul.mubr.msk.bf16.vlgmr.msra.gmra.mrb[56].mxu0 %vm1883_vm3, %v2692_v15 }
 0xd0d   : > { %4536 = vmatprep.mubr.msk.bf16.mxu0 %vm4859_vm1, %v4858_v2 }
 0xd70   : > { %v2921_v36 = vpop.permute.xlu1 %2920 }
 0xd74   : > { %v3033_v57 = vpop.permute.xlu1 %3032 }
 0xd76   : > { %v2924_v50 = vpop.permute.xlu0 %2923 }
 0xd77   : > { %v2929_v51 = vsel %vm1883_vm3, %v2924_v50, 0 }
 0xd78   : > { %4535 = vmatpush3.bf16.xpose.msra.mxu0 %v2929_v51  ;;  %v3143_v53 = vpop.permute.xlu1 %3142 }
 0xd79   : > { %4546 = vmatprep.subr.bf16.mxu0 %v4858_v2 }
 0xd7a   : > { %v3035_v14 = vpop.permute.xlu0 %3034 }
 0xd7b   : > { %v3040_v62 = vsel %vm1883_vm3, %v3035_v14, 0 }
 0xd7e   : > { %v3145_v0 = vpop.permute.xlu0 %3144 }
 0xd7f   : > { %4537 = vmatmul.mubr.msk.bf16.vlgmr.msra.gmra.mrb[60].mxu0 %vm1883_vm3, %v2921_v36  ;;  %v3150_v13 = vsel %vm1883_vm3, %v3145_v0, 0 }
 0xd80   : > { %4547 = vmatpush3.bf16.xpose.msra.mxu0 %v3040_v62  ;;  %4548 = vmatprep.mubr.msk.bf16.mxu0 %vm4859_vm1, %v4858_v2 }
 0xd81   : > { %4558 = vmatprep.subr.bf16.mxu0 %v4858_v2 }
 0xd87   : > { %4549 = vmatmul.mubr.msk.bf16.vlgmr.msra.gmra.mrb[64].mxu0 %vm1883_vm3, %v3033_v57 }
 0xd88   : > { %4559 = vmatpush3.bf16.xpose.msra.mxu0 %v3150_v13  ;;  %4560 = vmatprep.mubr.msk.bf16.mxu0 %vm4859_vm1, %v4858_v2 }
 0xd89   : > { %4570 = vmatprep.subr.bf16.mxu0 %v4858_v2 }
 0xd8f   : > { %4561 = vmatmul.mubr.msk.bf16.vlgmr.msra.gmra.mrb[68].mxu0 %vm1883_vm3, %v3143_v53 }
 0xd90   : > { %4574 = vmatprep.mubr.msk.bf16.mxu0 %vm4859_vm1, %v4858_v2 }
 0xddf   : > { %v2854_v22 = vpop.f32.mrb[56].mxu0 }
 0xde0   : > { %v4526_v54 = vpop.f32.mrb[57].mxu0  ;;  %v2860_v55 = vsel %vm1883_vm3, %v2854_v22, -inf }
 0xde1   : > { %2861 = vmax.xlane.f32.xlu0 %v2860_v55  ;;  %v2857_v58 = vpop.f32.mrb[58].mxu0 }
 0xde2   : > { %v4527_v59 = vpop.f32.mrb[59].mxu0 }
 0xe52   : > { %v2965_v61 = vpop.f32.mrb[60].mxu0 }
 0xe53   : > { %v4538_v56 = vpop.f32.mrb[61].mxu0  ;;  %v2971_v63 = vsel %vm1883_vm3, %v2965_v61, -inf }
 0xe54   : > { %2972 = vmax.xlane.f32.xlu1 %v2971_v63  ;;  %v2968_v4 = vpop.f32.mrb[62].mxu0 }
 0xe55   : > { %v4539_v26 = vpop.f32.mrb[63].mxu0 }
 0xe5a   : > { %v3076_v48 = vpop.f32.mrb[64].mxu0 }
 0xe5b   : > { %v4550_v7 = vpop.f32.mrb[65].mxu0  ;;  %v3082_v1 = vsel %vm1883_vm3, %v3076_v48, -inf }
 0xe5c   : > { %3083 = vmax.xlane.f32.xlu0 %v3082_v1  ;;  %v3079_v5 = vpop.f32.mrb[66].mxu0 }
 0xe5d   : > { %v4551_v6 = vpop.f32.mrb[67].mxu0 }
 0xe62   : > { %v3186_v8 = vpop.f32.mrb[68].mxu0 }
 0xe63   : > { %v4562_v11 = vpop.f32.mrb[69].mxu0  ;;  %v3192_v12 = vsel %vm1883_vm3, %v3186_v8, -inf }
 0xe64   : > { %3193 = vmax.xlane.f32.xlu0 %v3192_v12  ;;  %v3189_v60 = vpop.f32.mrb[70].mxu0 }
 0xe65   : > { %v4563_v9 = vpop.f32.mrb[71].mxu0 }
 0xe6e   : > { %v2862_v10 = vpop.xlane.xlu0 %2861 }
 0xe6f   : > { %v2863_v16 = vsub.f32 %v2854_v22, %v2862_v10 }
 0xe71   : > { %v2864_v17 = vmul.f32 1.442695, %v2863_v16 }
 0xe73   : > { %4746 = vpow2.f32 %v2864_v17 }
 0xe7d   : > { %v4747_v24 = vpop.eup %4746 }
 0xe7e   : > { %v2866_v32 = vsel %vm1883_vm3, %v4747_v24, 0.0 }
 0xe7f   : > { %2867 = vadd.xlane.f32.xlu1 %v2866_v32 }
 0xe90   : > { %2984 = vrot.lane.b32.xlu1 %v5672_v41, %s4860_s24  ;;  %s5956_s24 = sld [smem:[#allocation45_spill]] }
 0xe96   : > { %v4720_v59 = vld [vmem:[%s5956_s24] sm:$0xff]   ;;  %v4721_v26 = vld [vmem:[%s5956_s24 + $0x8] sm:$0xff]  }
 0xe97   : > { %4571 = vmatpush3.bf16.msra.mxu0 %v4720_v59 }
 0xe98   : > { %4572 = vmatprep.subr.bf16.mxu0 %v4858_v2 }
 0xe9b   : > { %4573 = vmatpush3.bf16.msra.mxu0 %v4721_v26 }
 0xe9c   : > { %4586 = vmatprep.subr.bf16.mxu0 %v4858_v2 }
 0xee1   : > { %v2973_v38 = vpop.xlane.xlu1 %2972 }
 0xee2   : > { %v2974_v39 = vsub.f32 %v2965_v61, %v2973_v38  ;;  %v4111_v38 = vld [vmem:[%s1421_s6] ss:$0 sm:$0xff] }
 0xee4   : > { %v2975_v45 = vmul.f32 1.442695, %v2974_v39 }
 0xee6   : > { %4748 = vpow2.f32 %v2975_v45 }
 0xee9   : > { %v3084_v46 = vpop.xlane.xlu0 %3083 }
 0xeea   : > { %v3085_v52 = vsub.f32 %v3076_v48, %v3084_v46 }
 0xeec   : > { %v3086_v18 = vmul.f32 1.442695, %v3085_v52 }
 0xeee   : > { %4750 = vpow2.f32 %v3086_v18 }
 0xef0   : > { %v4749_v19 = vpop.eup %4748 }
 0xef1   : > { %v3194_v20 = vpop.xlane.xlu0 %3193  ;;  %v2977_v47 = vsel %vm1883_vm3, %v4749_v19, 0.0 }
 0xef2   : > { %v3195_v3 = vsub.f32 %v3186_v8, %v3194_v20  ;;  %2978 = vadd.xlane.f32.xlu0 %v2977_v47 }
 0xef4   : > { %v3196_v31 = vmul.f32 1.442695, %v3195_v3 }
 0xef6   : > { %4752 = vpow2.f32 %v3196_v31 }
 0xef8   : > { %v4751_v21 = vpop.eup %4750 }
 0xef9   : > { %v3088_v25 = vsel %vm1883_vm3, %v4751_v21, 0.0 }
 0xefa   : > { %3089 = vadd.xlane.f32.xlu1 %v3088_v25 }
 0xf00   : > { %v4753_v28 = vpop.eup %4752 }
 0xf01   : > { %v3198_v29 = vsel %vm1883_vm3, %v4753_v28, 0.0 }
 0xf02   : > { %3199 = vadd.xlane.f32.xlu0 %v3198_v29  ;;  %v4723_v29 = vld [vmem:[%s5153_s20 + $0x8] sm:$0xff]  }
 0xf0b   : > { %3204 = vrot.lane.b32.xlu1 %v5672_v41, %s4862_s11 }
 0xf0c   : > { %v2868_v33 = vpop.xlane.xlu1 %2867 }
 0xf0d   : > { %4754 = vrcp.f32 %v2868_v33  ;;  %v4725_v33 = vld [vmem:[%s5159_s14 + $0x8] sm:$0xff]  }
 0xf10   : > { %v2985_v15 = vpop.permute.xlu1 %2984 }
 0xf11   : > { %v2990_v30 = vsel %vm2875_vm8, %v2985_v15, 0 }
 0xf17   : > { %v4755_v34 = vpop.eup %4754 }
 0xf18   : > { %v2870_v35 = vmul.f32 %v4755_v34, %v4747_v24  ;;  %3094 = vrot.lane.b32.xlu0 %v5672_v41, %s4861_s23 }
 0xf1a   : > { %v2871_v37 = vpack.c.bf16 %v2870_v35, %v2870_v35 }
 0xf1c   : > { %4531 = vmatmul.mubr.msk.bf16.vlgmr.msra.gmra.mrb[52].mxu1 %vm1883_vm3, %v2871_v37 }
 0xf1d   : > { %4541 = vmatpush3.bf16.msra.mxu1 %v2990_v30  ;;  %4542 = vmatprep.mubr.msk.bf16.mxu1 %vm4859_vm1, %v4858_v2  ;;  %v4115_v30 = vld [vmem:[%s1424_s12] ss:$0 sm:$0xff]  ;;  %s5964_s12 = sld [smem:[#allocation36_spill]] }
 0xf1e   : > { %4552 = vmatprep.subr.bf16.mxu1 %v4858_v2 }
 0xf23   : > { %p4129_p12 = scmp.ne.s32.totalorder %s5964_s12, 1 }
 0xf24   : > { %vm4867_vm10 = vmmov (!%p4129_p12), 0  }
 0xf7f   : > { %v2979_v40 = vpop.xlane.xlu0 %2978 }
 0xf80   : > { %4756 = vrcp.f32 %v2979_v40 }
 0xf87   : > { %v3090_v42 = vpop.xlane.xlu1 %3089 }
 0xf88   : > { %4758 = vrcp.f32 %v3090_v42  ;;  %v4116_v42 = vld [vmem:[%s1427_s3] ss:$0 sm:$0xff] }
 0xf8a   : > { %v4757_v27 = vpop.eup %4756 }
 0xf8b   : > { %v2981_v43 = vmul.f32 %v4757_v27, %v4749_v19  ;;  %v3205_v36 = vpop.permute.xlu1 %3204 }
 0xf8c   : > { %v3210_v0 = vsel %vm2875_vm8, %v3205_v36, 0 }
 0xf8d   : > { %v2982_v44 = vpack.c.bf16 %v2981_v43, %v2981_v43 }
 0xf8f   : > { %v3200_v41 = vpop.xlane.xlu0 %3199  ;;  %4543 = vmatmul.mubr.msk.bf16.vlgmr.msra.gmra.mrb[56].mxu1 %vm1883_vm3, %v2982_v44 }
 0xf90   : > { %4760 = vrcp.f32 %v3200_v41  ;;  %4554 = vmatprep.mubr.msk.bf16.mxu1 %vm4859_vm1, %v4858_v2  ;;  %v4726_v41 = vld [vmem:[%s5159_s14 + $0x10] sm:$0xff]  }
 0xf92   : > { %v4759_v49 = vpop.eup %4758 }
 0xf93   : > { %v3092_v50 = vmul.f32 %v4759_v49, %v4751_v21  ;;  %v3095_v51 = vpop.permute.xlu0 %3094  ;;  %v4727_v49 = vld [vmem:[%s5159_s14 + $0x18] sm:$0xff]  }
 0xf94   : > { %v3100_v14 = vsel %vm2875_vm8, %v3095_v51, 0 }
 0xf95   : > { %4553 = vmatpush3.bf16.msra.mxu1 %v3100_v14  ;;  %v3093_v62 = vpack.c.bf16 %v3092_v50, %v3092_v50  ;;  %v4117_v50 = vld [vmem:[%s1435_s22] ss:$0 sm:$0xff]  ;;  %s5965_s22 = sld [smem:[#allocation33_spill]] (!%p4129_p12) }
 0xf96   : > { %4564 = vmatprep.subr.bf16.mxu1 %v4858_v2 }
 0xf98   : > { %4555 = vmatmul.mubr.msk.bf16.vlgmr.msra.gmra.mrb[60].mxu1 %vm1883_vm3, %v3093_v62 }
 0xf99   : > { %4565 = vmatpush3.bf16.msra.mxu1 %v3210_v0  ;;  %4566 = vmatprep.mubr.msk.bf16.mxu1 %vm4859_vm1, %v4858_v2 }
 0xf9a   : > { %v4761_v57 = vpop.eup %4760  ;;  %4578 = vmatprep.subr.bf16.mxu1 %v4858_v2 }
 0xf9b   : > { %v3202_v13 = vmul.f32 %v4761_v57, %v4753_v28  ;;  %v4722_v28 = vld [vmem:[%s5153_s20] sm:$0xff]  }
 0xf9d   : > { %v3203_v53 = vpack.c.bf16 %v3202_v13, %v3202_v13 }
 0xfa0   : > { %4567 = vmatmul.mubr.msk.bf16.vlgmr.msra.gmra.mrb[64].mxu1 %vm1883_vm3, %v3203_v53  ;;  %v4121_v53 = vld [vmem:[%s1443_s10] ss:$0 sm:$0xff]  ;;  %s5966_s10 = sld [smem:[#allocation34_spill]] (!%p4129_p12) }
 0xfa1   : > { %4582 = vmatprep.mubr.msk.bf16.mxu1 %vm4859_vm1, %v4858_v2  ;;  %4579 = vmatpush3.bf16.msra.mxu1 %v4722_v28 }
 0xfa2   : > { %4580 = vmatprep.subr.bf16.mxu1 %v4858_v2 }
 0xfa5   : > { %4581 = vmatpush3.bf16.msra.mxu1 %v4723_v29 }
 0xfef   : > { %v2913_v22 = vpop.f32.mrb[52].mxu1 }
 0xff0   : > { %v4532_v54 = vpop.f32.mrb[53].mxu1 }
 0xff1   : > { %v2916_v55 = vpop.f32.mrb[54].mxu1 }
 0xff2   : > { %v4533_v58 = vpop.f32.mrb[55].mxu1 }
0x1062   : > { %v3026_v61 = vpop.f32.mrb[56].mxu1 }
0x1063   : > { %3253 = vrot.lane.b32.xlu1 %v3026_v61, %s4864_s16  ;;  %v4544_v56 = vpop.f32.mrb[57].mxu1 }
0x1064   : > { %v3029_v63 = vpop.f32.mrb[58].mxu1 }
0x1065   : > { %v4545_v4 = vpop.f32.mrb[59].mxu1 }
0x106b   : > { %v3136_v48 = vpop.f32.mrb[60].mxu1 }
0x106c   : > { %3257 = vrot.lane.b32.xlu0 %v3136_v48, %s4863_s26  ;;  %v4556_v7 = vpop.f32.mrb[61].mxu1 }
0x106d   : > { %v3139_v1 = vpop.f32.mrb[62].mxu1 }
0x106e   : > { %v4557_v5 = vpop.f32.mrb[63].mxu1 }
0x1073   : > { %v3246_v6 = vpop.f32.mrb[64].mxu1 }
0x1074   : > { %3261 = vrot.lane.b32.xlu1 %v3246_v6, %s4865_s9  ;;  %v4568_v8 = vpop.f32.mrb[65].mxu1 }
0x1075   : > { %v3249_v11 = vpop.f32.mrb[66].mxu1  ;;  %v4127_v8 = vld [vmem:[%s1446_s21] ss:$0 sm:$0xff] }
0x1076   : > { %v4569_v12 = vpop.f32.mrb[67].mxu1 }
0x1077   : > { %v4128_v12 = vld [vmem:[%s1449_s2] ss:$0 sm:$0xff] }
0x10d5   : > { %v3254_v60 = vpop.permute.xlu1 %3253 }
0x10d6   : > { %v3264_v10 = vsel %vm1883_vm3, %v2913_v22, %v3254_v60 }
0x10de   : > { %v3258_v9 = vpop.permute.xlu0 %3257 }
0x10df   : > { %v3265_v16 = vsel %vm2510_vm6, %v3264_v10, %v3258_v9  ;;  %v4768_v10 = vld [vmem:[%s5965_s22] sm:$0xff] (!%p4129_p12)  }
0x10e6   : > { %v3262_v17 = vpop.permute.xlu1 %3261 }
0x10e7   : > { %v3266_v24 = vsel %vm2512_vm7, %v3265_v16, %v3262_v17  ;;  %v4866_v16 = vmov (!%p4129_p12), 0.0   ;;  %v4769_v17 = vld [vmem:[%s5965_s22 + $0x8] sm:$0xff] (!%p4129_p12)  }
0x10e8   : > { %v3267_v32 = vpack.c.bf16 %v3266_v24, %v3266_v24 }
0x10ea   : > { %4575 = vmatmul.mubr.msk.bf16.vlgmr.msra.gmra.mrb[72].mxu0 %vm1569_vm2, %v3267_v32  ;;  %v4130_v32 = vld [vmem:[%s5966_s10] ss:$0 sm:$0xff] (!%p4129_p12) }
0x10eb   : > { %4594 = vmatprep.mubr.msk.bf16.mxu0 %vm4859_vm1, %v4858_v2 }
0x11bd   : > { %v3323_v39 = vpop.f32.mrb[72].mxu0 }
0x11be   : > { %v3324_v45 = vadd.f32 %v4111_v38, %v3323_v39  ;;  %v4576_v46 = vpop.f32.mrb[73].mxu0 }
0x11bf   : > { %v3326_v52 = vpop.f32.mrb[74].mxu0 }
0x11c0   : > { %v4577_v18 = vpop.f32.mrb[75].mxu0  ;;  %v3329_v19 = vadd.f32 %v3324_v45, %v5647_v23  ;;  %v4724_v23 = vld [vmem:[%s5159_s14] sm:$0xff]  }
0x11c1   : > { %4587 = vmatpush3.bf16.msra.mxu0 %v4724_v23 }
0x11c2   : > { %v3330_v20 = vsel %vm1569_vm2, %v3329_v19, 0.0  ;;  %4588 = vmatprep.subr.bf16.mxu0 %v4858_v2 }
0x11c3   : > { %3331 = vadd.xlane.f32.xlu0 %v3330_v20 }
0x11c5   : > { %4589 = vmatpush3.bf16.msra.mxu0 %v4725_v33 }
0x11c6   : > { %4590 = vmatprep.subr.bf16.mxu0 %v4858_v2 }
0x11c9   : > { %4591 = vmatpush3.bf16.msra.mxu0 %v4726_v41 }
0x11ca   : > { %4592 = vmatprep.subr.bf16.mxu0 %v4858_v2 }
0x11cd   : > { %4593 = vmatpush3.bf16.msra.mxu0 %v4727_v49 }
0x11ce   : > { %4598 = vmatprep.subr.bf16.mxu0 (!%p4129_p12), %v4866_v16 }
0x1250   : > { %v3332_v47 = vpop.xlane.xlu0 %3331 }
0x1251   : > { %v3333_v3 = vmul.f32 0.03125, %v3332_v47 }
0x1253   : > { %v3334_v31 = vsub.f32 %v3329_v19, %v3333_v3 }
0x1255   : > { %v3335_v21 = vmul.f32 %v3334_v31, %v3334_v31 }
0x1257   : > { %v3336_v25 = vsel %vm1569_vm2, %v3335_v21, 0.0 }
0x1258   : > { %3337 = vadd.xlane.f32.xlu1 %v3336_v25 }
0x12e5   : > { %v3338_v34 = vpop.xlane.xlu1 %3337 }
0x12e6   : > { %v3339_v35 = vmul.f32 0.03125, %v3338_v34 }
0x12e8   : > { %v3340_v15 = vadd.f32 1e-05, %v3339_v35 }
0x12ea   : > { %4762 = vrsqrt.f32 %v3340_v15 }
0x12f4   : > { %v4763_v37 = vpop.eup %4762 }
0x12f5   : > { %v3342_v40 = vmul.f32 %v4763_v37, %v3334_v31 }
0x12f7   : > { %v3349_v27 = vmul.f32 %v4115_v30, %v3342_v40 }
0x12f9   : > { %v3356_v43 = vadd.f32 %v4116_v42, %v3349_v27 }
0x12fb   : > { %v3373_v44 = vpack.c.bf16 %v3356_v43, %v3356_v43 }
0x12fd   : > { %4583 = vmatmul.mubr.msk.bf16.vlgmr.msra.gmra.mrb[68].mxu1 %vm1569_vm2, %v3373_v44 }
0x13d0   : > { %v3429_v51 = vpop.f32.mrb[68].mxu1 }
0x13d1   : > { %v3430_v14 = vadd.f32 %v4117_v50, %v3429_v51  ;;  %v4584_v36 = vpop.f32.mrb[69].mxu1 }
0x13d2   : > { %v3432_v62 = vpop.f32.mrb[70].mxu1 }
0x13d3   : > { %v3435_v0 = vmax.f32 %v3430_v14, 0.0  ;;  %v4585_v57 = vpop.f32.mrb[71].mxu1 }
0x13d5   : > { %v3436_v13 = vpack.c.bf16 %v3435_v0, %v3435_v0 }
0x13d7   : > { %4595 = vmatmul.mubr.msk.bf16.vlgmr.msra.gmra.mrb[76].mxu0 %vm3467_vm9, %v3436_v13 }
0x13d8   : > { %4599 = vmatpush3.bf16.msra.mxu0 (!%p4129_p12), %v4768_v10  ;;  %4602 = vmatprep.mubr.msk.bf16.mxu0 (!%p4129_p12), %vm4867_vm10, %v4866_v16 }
0x13d9   : > { %4600 = vmatprep.subr.bf16.mxu0 (!%p4129_p12), %v4866_v16 }
0x13dc   : > { %4601 = vmatpush3.bf16.msra.mxu0 (!%p4129_p12), %v4769_v17 }
0x14aa   : > { %v3505_v22 = vpop.f32.mrb[76].mxu0 }
0x14ab   : > { %v3506_v54 = vadd.f32 %v4121_v53, %v3505_v22  ;;  %v4596_v55 = vpop.f32.mrb[77].mxu0 }
0x14ac   : > { %v3508_v58 = vpop.f32.mrb[78].mxu0 }
0x14ad   : > { %v4597_v2 = vpop.f32.mrb[79].mxu0  ;;  %v3511_v59 = vadd.f32 %v3506_v54, %v3356_v43 }
0x14af   : > { %v3512_v61 = vsel %vm1569_vm2, %v3511_v59, 0.0 }
0x14b0   : > { %3513 = vadd.xlane.f32.xlu0 %v3512_v61 }
0x153d   : > { %v3514_v56 = vpop.xlane.xlu0 %3513 }
0x153e   : > { %v3515_v63 = vmul.f32 0.03125, %v3514_v56 }
0x1540   : > { %v3516_v4 = vsub.f32 %v3511_v59, %v3515_v63 }
0x1542   : > { %v3517_v26 = vmul.f32 %v3516_v4, %v3516_v4 }
0x1544   : > { %v3518_v48 = vsel %vm1569_vm2, %v3517_v26, 0.0 }
0x1545   : > { %3519 = vadd.xlane.f32.xlu0 %v3518_v48 }
0x15d2   : > { %v3520_v7 = vpop.xlane.xlu0 %3519 }
0x15d3   : > { %v3521_v1 = vmul.f32 0.03125, %v3520_v7 }
0x15d5   : > { %v3522_v5 = vadd.f32 1e-05, %v3521_v1 }
0x15d7   : > { %4764 = vrsqrt.f32 %v3522_v5 }
0x15e1   : > { %v4765_v6 = vpop.eup %4764 }
0x15e2   : > { %v3524_v11 = vmul.f32 %v4765_v6, %v3516_v4  ;;  %3543 = sbr.rel (%p4129_p12) target bundleno = 5825 (0x16c1), region = 156 }
0x15e4   : > { %v3531_v60 = vmul.f32 %v4127_v8, %v3524_v11 }
0x15e6   : > { %v3538_v9 = vadd.f32 %v4128_v12, %v3531_v60 }
0x15e8   : > { %3539 = vst.msk [vmem:[%s5177_s18] sm:$0xff] %vm1569_vm2, %v3538_v9  ;;  %v3544_v24 = vpack.c.bf16 (!%p4129_p12), %v3538_v9, %v3538_v9 }
0x15ea   : > { %4603 = vmatmul.mubr.msk.bf16.vlgmr.msra.gmra.mrb[0].mxu0 %vm1569_vm2, %v3544_v24 }
0x16bd   : > { %v3605_v38 = vpop.f32.mrb[0].mxu0 }
0x16be   : > { %v3606_v39 = vadd.f32 %v4130_v32, %v3605_v38  ;;  %v4604_v45 = vpop.f32.mrb[1].mxu0 }
0x16bf   : > { %v3608_v46 = vpop.f32.mrb[2].mxu0 }
0x16c0   : > { %3611 = vst.msk [vmem:[#allocation2] sm:$0xff] %vm1569_vm2, %v3606_v39  ;;  %v4605_v52 = vpop.f32.mrb[3].mxu0 }
0x16c1 PF: > { %s5967_s21 = sld [smem:[#allocation36_spill]] }
0x16c7   : > { %p4134_p13 = scmp.eq.s32.totalorder %s5967_s21, 1 }
0x16c8   : > { %3616 = vst.msk [vmem:[#allocation2] sm:$0xff] (!%p4134_p13), %vm1569_vm2, %v3538_v9 }
0x16c9   : > { %3615 = sbr.rel (%p4134_p13) target bundleno = 5840 (0x16d0), region = 160 }
0x16d0 PF: > { %s5968_s2 = sld [smem:[#allocation41_spill]]  ;;  %s5969_s28 = sld [smem:[#allocation38_spill]] }
0x16d1   : > { %s5970_s1 = sld [smem:[#allocation39_spill]]  ;;  %s5972_s7 = sld [smem:[#allocation42_spill]] }
0x16d2   : > { %s5973_s10 = sld [smem:[#allocation43_spill]]  ;;  %s5974_s11 = sld [smem:[#allocation44_spill]] }
0x16d6   : > { %s75_s15 = sadd.s32 1, %s5968_s2   ;;  %s5971_s2 = sld [smem:[#allocation40_spill]] }
0x16d7   : > { %p72_p0 = scmp.ge.s32.totalorder %s75_s15, 10  }
0x16d9   :  { %74 = sbr.rel (!%p72_p0) target bundleno = 76 (0x4c), region = 300 }

</bundles_post_ra>
